<compile_context>
chip_gen: v6e
topology: v6e:2x2x1
jax: 0.10.0
libtpu: 0.0.40
codegen_flags: <defaults>
</compile_context>

<pallas_src>
import numpy as np
import jax
import jax.numpy as jnp
from jax.experimental import pallas as pl
from jax.experimental.pallas import tpu as pltpu


def _round_up(x, m):
    return ((x + m - 1) // m) * m


def _make_kernel(tH, W, Wp, Cp, Pp):
    Np = tH * Wp               # rows of one flattened output tile
    Np2 = (tH + 2) * Wp        # rows of the (halo-extended) y1 tile

    def kernel(x_mid_ref, x_top_ref, x_bot_ref, cmask_ref,
               w1_ref, b1_ref, w2_ref, b2_ref, w3_ref, b3_ref,
               out_ref, y1_scr):
        h = pl.program_id(1)
        n_h = pl.num_programs(1)

        # Hygiene rows of the scratch (only ever read into discarded border
        # columns, but keep them defined).  Aligned 8-row stores, tiny.
        zero8 = jnp.zeros((8, Pp), jnp.bfloat16)
        y1_scr[pl.ds(0, 8), :] = zero8
        y1_scr[pl.ds(8 + Np2, 8), :] = zero8

        w1 = w1_ref[...]                       # (Cp, Pp) bf16, bn1 scale folded
        b1 = b1_ref[...]                       # (1, Pp)  f32
        cm_mid = cmask_ref[...]                # (Np, 1)  f32: 1.0 on real image cols
        cm_row = cmask_ref[pl.ds(0, Wp), :]    # (Wp, 1)  per-row column mask

        def conv1_bn_relu(x_f32, mask):
            # 1x1 conv == matmul over channels; mask zeroes out-of-image pixels
            # so they act as the zero padding seen by the 3x3 conv.
            y = jnp.dot(x_f32.astype(jnp.bfloat16), w1,
                        preferred_element_type=jnp.float32)
            y = jnp.maximum(y + b1, 0.0)
            return (y * mask).astype(jnp.bfloat16)

        top_mask = cm_row * jnp.where(h > 0, 1.0, 0.0)
        bot_mask = cm_row * jnp.where(h < n_h - 1, 1.0, 0.0)

        # y1 laid out flat in the scratch: scratch row (8 + r*Wp + c) holds the
        # conv1 output at padded-tile position (r, c), r in [0, tH+2).
        y1_scr[pl.ds(8, Wp), :] = conv1_bn_relu(x_top_ref[0], top_mask)
        y1_scr[pl.ds(8 + Wp, Np), :] = conv1_bn_relu(x_mid_ref[0], cm_mid)
        y1_scr[pl.ds(8 + (tH + 1) * Wp, Wp), :] = conv1_bn_relu(x_bot_ref[0], bot_mask)

        # conv2 (3x3, stride 1, SAME): nine shifted flat views of the scratch.
        acc = None
        for t in range(9):
            dy, dx = divmod(t, 3)
            off = 7 + dy * Wp + dx
            patch = y1_scr[pl.ds(off, Np), :]
            part = jnp.dot(patch, w2_ref[t], preferred_element_type=jnp.float32)
            acc = part if acc is None else acc + part
        y2 = jnp.maximum(acc + b2_ref[...], 0.0).astype(jnp.bfloat16)

        # conv3 (1x1) + bn3 shift + identity residual + relu  (f32 elementwise).
        y3 = jnp.dot(y2, w3_ref[...], preferred_element_type=jnp.float32) + b3_ref[...]
        out_ref[0] = jnp.maximum(y3 + x_mid_ref[0], 0.0)

    return kernel


def bottleneck_pallas(x_nchw, params, tile_h=8):
    """x_nchw: (N, Cin, H, W) f32.  params: torch-layout weights + BN scale/shift."""
    (w1_oihw, s1, b1, w2_oihw, s2, b2, w3_oihw, s3, b3) = params
    N, Cin, H, W = x_nchw.shape
    planes = w1_oihw.shape[0]
    Cout = w3_oihw.shape[0]
    # identity residual requires planes * expansion == inplanes
    assert Cout == Cin, "identity residual needs planes*expansion == inplanes"
    # TODO(synk): stride>1 / downsample branch not implemented (stride=1, downsample=None).

    Cp = _round_up(Cin, 128)           # lane-dense channels
    Pp = _round_up(planes, 128)
    Wp = _round_up(W + 2, 8)           # sublane-dense padded width
    tH = tile_h if H % tile_h == 0 else H
    HT = H // tH
    Np = tH * Wp

    f32, bf16 = jnp.float32, jnp.bfloat16

    # ---- fold BN scales into conv weights, pad channels, cast matmul weights to bf16 ----
    w1 = jnp.transpose(w1_oihw[:, :, 0, 0], (1, 0)) * s1[None, :]            # (Cin, planes)
    w1p = jnp.zeros((Cp, Pp), f32).at[:Cin, :planes].set(w1).astype(bf16)
    b1p = jnp.zeros((1, Pp), f32).at[0, :planes].set(b1)

    w2 = jnp.transpose(w2_oihw, (2, 3, 1, 0)) * s2[None, None, None, :]      # (3,3,planes,planes)
    w2p = jnp.zeros((3, 3, Pp, Pp), f32).at[:, :, :planes, :planes].set(w2)
    w2p = w2p.reshape(9, Pp, Pp).astype(bf16)
    b2p = jnp.zeros((1, Pp), f32).at[0, :planes].set(b2)

    w3 = jnp.transpose(w3_oihw[:, :, 0, 0], (1, 0)) * s3[None, :]            # (planes, Cout)
    w3p = jnp.zeros((Pp, Cp), f32).at[:planes, :Cout].set(w3).astype(bf16)
    b3p = jnp.zeros((1, Cp), f32).at[0, :Cout].set(b3)

    # ---- NCHW -> NHWC, pad W (1 left + rest right) and channels, flatten (H, Wp) ----
    x_nhwc = jnp.transpose(x_nchw, (0, 2, 3, 1))
    x_pad = jnp.pad(x_nhwc, ((0, 0), (0, 0), (1, Wp - 1 - W), (0, Cp - Cin)))
    x_flat = x_pad.reshape(N, H * Wp, Cp)

    # column-validity mask (1.0 on real image columns), one row-tile worth.
    col = jnp.arange(Wp)
    cmask_row = ((col >= 1) & (col <= W)).astype(f32)
    cmask = jnp.tile(cmask_row, (tH,)).reshape(Np, 1)

    kernel = _make_kernel(tH, W, Wp, Cp, Pp)

    out_flat = pl.pallas_call(
        kernel,
        out_shape=jax.ShapeDtypeStruct((N, H * Wp, Cp), f32),
        grid=(N, HT),
        in_specs=[
            pl.BlockSpec((1, Np, Cp), lambda n, h: (n, h, 0)),                               # x, tile rows
            pl.BlockSpec((1, Wp, Cp),
                         lambda n, h: (n, jnp.maximum(h * tH - 1, 0), 0)),                   # top halo row
            pl.BlockSpec((1, Wp, Cp),
                         lambda n, h: (n, jnp.minimum(h * tH + tH, H - 1), 0)),              # bottom halo row
            pl.BlockSpec((Np, 1), lambda n, h: (0, 0)),                                      # column mask
            pl.BlockSpec((Cp, Pp), lambda n, h: (0, 0)),                                     # w1 (bn1 folded)
            pl.BlockSpec((1, Pp), lambda n, h: (0, 0)),                                      # b1
            pl.BlockSpec((9, Pp, Pp), lambda n, h: (0, 0, 0)),                               # w2 (bn2 folded)
            pl.BlockSpec((1, Pp), lambda n, h: (0, 0)),                                      # b2
            pl.BlockSpec((Pp, Cp), lambda n, h: (0, 0)),                                     # w3 (bn3 folded)
            pl.BlockSpec((1, Cp), lambda n, h: (0, 0)),                                      # b3
        ],
        out_specs=pl.BlockSpec((1, Np, Cp), lambda n, h: (n, h, 0)),
        scratch_shapes=[pltpu.VMEM(((tH + 2) * Wp + 16, Pp), bf16)],
        compiler_params=pltpu.CompilerParams(
            dimension_semantics=("parallel", "parallel")),
    )(x_flat, x_flat, x_flat, cmask, w1p, b1p, w2p, b2p, w3p, b3p)

    out = out_flat.reshape(N, H, Wp, Cp)[:, :, 1:W + 1, :Cout]
    return jnp.transpose(out, (0, 3, 1, 2))  # back to NCHW


# ----------------------------- reference (plain JAX, NCHW like PyTorch) -----
def bottleneck_reference(x, params):
    (w1_oihw, s1, b1, w2_oihw, s2, b2, w3_oihw, s3, b3) = params
    dn = ('NCHW', 'OIHW', 'NCHW')

    def bn(y, scale, shift):
        return y * scale.reshape(1, -1, 1, 1) + shift.reshape(1, -1, 1, 1)

    out = jax.lax.conv_general_dilated(x, w1_oihw, (1, 1), 'VALID',
                                       dimension_numbers=dn)
    out = jnp.maximum(bn(out, s1, b1), 0.0)
    out = jax.lax.conv_general_dilated(out, w2_oihw, (1, 1),
                                       ((1, 1), (1, 1)), dimension_numbers=dn)
    out = jnp.maximum(bn(out, s2, b2), 0.0)
    out = jax.lax.conv_general_dilated(out, w3_oihw, (1, 1), 'VALID',
                                       dimension_numbers=dn)
    out = bn(out, s3, b3)
    return jnp.maximum(out + x, 0.0)


if __name__ == "__main__":
    # Small shapes consistent with the module: inplanes = planes * expansion
    # so the identity residual (downsample=None) is valid.
    N, H, W = 2, 16, 16
    planes = 4
    inplanes = planes * 4          # expansion = 4
    eps = 1e-5

    key = jax.random.PRNGKey(0)
    ks = jax.random.split(key, 16)

    # PyTorch-shaped conv weights (OIHW), bias=False.
    w1_oihw = jax.random.normal(ks[0], (planes, inplanes, 1, 1), jnp.float32) * 0.1
    w2_oihw = jax.random.normal(ks[1], (planes, planes, 3, 3), jnp.float32) * 0.1
    w3_oihw = jax.random.normal(ks[2], (planes * 4, planes, 1, 1), jnp.float32) * 0.1

    def bn_params(kg, kb, km, kv, c):
        gamma = 1.0 + 0.1 * jax.random.normal(kg, (c,), jnp.float32)
        beta = 0.1 * jax.random.normal(kb, (c,), jnp.float32)
        mean = 0.1 * jax.random.normal(km, (c,), jnp.float32)
        var = 0.5 + jax.random.uniform(kv, (c,), jnp.float32)
        scale = gamma / jnp.sqrt(var + eps)
        shift = beta - mean * scale
        return scale, shift

    s1, b1 = bn_params(ks[3], ks[4], ks[5], ks[6], planes)
    s2, b2 = bn_params(ks[7], ks[8], ks[9], ks[10], planes)
    s3, b3 = bn_params(ks[11], ks[12], ks[13], ks[14], planes * 4)

    params = (w1_oihw, s1, b1, w2_oihw, s2, b2, w3_oihw, s3, b3)
    x = jax.random.normal(ks[15], (N, inplanes, H, W), jnp.float32)

    out = jax.jit(bottleneck_pallas)(x, params)
    out = jax.block_until_ready(out)
    ref = jax.block_until_ready(bottleneck_reference(x, params))

    # Tolerance reflects bf16 MXU inputs (f32 accumulation, f32 residual path).
    np.testing.assert_allclose(np.asarray(out), np.asarray(ref),
                               rtol=5e-2, atol=5e-2)
    print("KERNEL_OK")
</pallas_src>

<mosaic_0001>
module attributes {stable_mosaic.version = 11 : i64} {
  func.func @kernel(%arg0: i32, %arg1: i32, %arg2: memref<1x192x128xf32, #tpu.memory_space<vmem>>, %arg3: memref<1x24x128xf32, #tpu.memory_space<vmem>>, %arg4: memref<1x24x128xf32, #tpu.memory_space<vmem>>, %arg5: memref<192x1xf32, #tpu.memory_space<vmem>>, %arg6: memref<128x128xbf16, #tpu.memory_space<vmem>>, %arg7: memref<1x128xf32, #tpu.memory_space<vmem>>, %arg8: memref<9x128x128xbf16, #tpu.memory_space<vmem>>, %arg9: memref<1x128xf32, #tpu.memory_space<vmem>>, %arg10: memref<128x128xbf16, #tpu.memory_space<vmem>>, %arg11: memref<1x128xf32, #tpu.memory_space<vmem>>, %arg12: memref<1x192x128xf32, #tpu.memory_space<vmem>>, %arg13: memref<256x128xbf16, #tpu.memory_space<vmem>>) attributes {dimension_semantics = [#tpu.dimension_semantics<parallel>, #tpu.dimension_semantics<parallel>], iteration_bounds = array<i64: 2, 2>, scalar_prefetch = 0 : i64, scratch_operands = 1 : i64, tpu.core_type = #tpu.core_type<tc>, window_params = [{transform_indices = @transform_0, window_bounds = array<i64: 1, 192, 128>}, {transform_indices = @transform_1, window_bounds = array<i64: 1, 24, 128>}, {transform_indices = @transform_2, window_bounds = array<i64: 1, 24, 128>}, {pipeline_mode = #tpu.pipeline_mode<synchronous>, transform_indices = @transform_3, window_bounds = array<i64: 192, 1>}, {pipeline_mode = #tpu.pipeline_mode<synchronous>, transform_indices = @transform_4, window_bounds = array<i64: 128, 128>}, {pipeline_mode = #tpu.pipeline_mode<synchronous>, transform_indices = @transform_5, window_bounds = array<i64: 1, 128>}, {pipeline_mode = #tpu.pipeline_mode<synchronous>, transform_indices = @transform_6, window_bounds = array<i64: 9, 128, 128>}, {pipeline_mode = #tpu.pipeline_mode<synchronous>, transform_indices = @transform_7, window_bounds = array<i64: 1, 128>}, {pipeline_mode = #tpu.pipeline_mode<synchronous>, transform_indices = @transform_8, window_bounds = array<i64: 128, 128>}, {pipeline_mode = #tpu.pipeline_mode<synchronous>, transform_indices = @transform_9, window_bounds = array<i64: 1, 128>}, {transform_indices = @transform_10, window_bounds = array<i64: 1, 192, 128>}]} {
    %cst = arith.constant 0.000000e+00 : bf16
    %0 = vector.broadcast %cst : bf16 to vector<8x128xbf16>
    %c0 = arith.constant 0 : index
    %c0_0 = arith.constant 0 : index
    %1 = vector.load %arg13[%c0, %c0_0] : memref<256x128xbf16, #tpu.memory_space<vmem>>, vector<8x128xbf16>
    tpu.vector_store %arg13[%c0, %c0_0], %0 {strides = array<i32>} : memref<256x128xbf16, #tpu.memory_space<vmem>>, vector<8x128xbf16>,
    %c248 = arith.constant 248 : index
    %c0_1 = arith.constant 0 : index
    %2 = vector.load %arg13[%c248, %c0_1] : memref<256x128xbf16, #tpu.memory_space<vmem>>, vector<8x128xbf16>
    tpu.vector_store %arg13[%c248, %c0_1], %0 {strides = array<i32>} : memref<256x128xbf16, #tpu.memory_space<vmem>>, vector<8x128xbf16>,
    %c0_2 = arith.constant 0 : index
    %c0_3 = arith.constant 0 : index
    %3 = vector.load %arg6[%c0_2, %c0_3] : memref<128x128xbf16, #tpu.memory_space<vmem>>, vector<128x128xbf16>
    %c0_4 = arith.constant 0 : index
    %c0_5 = arith.constant 0 : index
    %4 = vector.load %arg7[%c0_4, %c0_5] : memref<1x128xf32, #tpu.memory_space<vmem>>, vector<1x128xf32>
    %c0_6 = arith.constant 0 : index
    %c0_7 = arith.constant 0 : index
    %5 = vector.load %arg5[%c0_6, %c0_7] : memref<192x1xf32, #tpu.memory_space<vmem>>, vector<192x1xf32>
    %c0_8 = arith.constant 0 : index
    %c0_9 = arith.constant 0 : index
    %6 = vector.load %arg5[%c0_8, %c0_9] : memref<192x1xf32, #tpu.memory_space<vmem>>, vector<24x1xf32>
    %c0_i32 = arith.constant 0 : i32
    %7 = arith.cmpi sgt, %arg1, %c0_i32 : i32
    %cst_10 = arith.constant 1.000000e+00 : f32
    %cst_11 = arith.constant 0.000000e+00 : f32
    %8 = arith.select %7, %cst_10, %cst_11 : f32
    %9 = vector.broadcast %8 : f32 to vector<24x1xf32>
    %10 = arith.mulf %6, %9 : vector<24x1xf32>
    %c1_i32 = arith.constant 1 : i32
    %11 = arith.cmpi slt, %arg1, %c1_i32 : i32
    %cst_12 = arith.constant 1.000000e+00 : f32
    %cst_13 = arith.constant 0.000000e+00 : f32
    %12 = arith.select %11, %cst_12, %cst_13 : f32
    %13 = vector.broadcast %12 : f32 to vector<24x1xf32>
    %14 = arith.mulf %6, %13 : vector<24x1xf32>
    %c0_14 = arith.constant 0 : index
    %c0_15 = arith.constant 0 : index
    %c0_16 = arith.constant 0 : index
    %15 = vector.load %arg3[%c0_14, %c0_15, %c0_16] : memref<1x24x128xf32, #tpu.memory_space<vmem>>, vector<1x24x128xf32>
    %16 = vector.shape_cast %15 : vector<1x24x128xf32> to vector<24x128xf32>
    %17 = arith.truncf %16 : vector<24x128xf32> to vector<24x128xbf16>
    %cst_17 = arith.constant dense<0.000000e+00> : vector<24x128xf32>
    %18 = tpu.matmul %17, %3, %cst_17 {dimension_numbers = #tpu.dot_dimension_numbers<[1], [0], [0], [1], [0, 0, 1, 1], [], []>} : vector<24x128xbf16>, vector<128x128xbf16>, vector<24x128xf32> -> vector<24x128xf32>
    %19 = vector.broadcast %4 : vector<1x128xf32> to vector<24x128xf32>
    %20 = arith.addf %18, %19 : vector<24x128xf32>
    %cst_18 = arith.constant 0.000000e+00 : f32
    %21 = vector.broadcast %cst_18 : f32 to vector<24x128xf32>
    %22 = arith.maximumf %20, %21 : vector<24x128xf32>
    %23 = vector.broadcast %10 : vector<24x1xf32> to vector<24x128xf32>
    %24 = arith.mulf %22, %23 : vector<24x128xf32>
    %25 = arith.truncf %24 : vector<24x128xf32> to vector<24x128xbf16>
    %c8 = arith.constant 8 : index
    %c0_19 = arith.constant 0 : index
    %26 = vector.load %arg13[%c8, %c0_19] : memref<256x128xbf16, #tpu.memory_space<vmem>>, vector<24x128xbf16>
    tpu.vector_store %arg13[%c8, %c0_19], %25 {strides = array<i32>} : memref<256x128xbf16, #tpu.memory_space<vmem>>, vector<24x128xbf16>,
    %c0_20 = arith.constant 0 : index
    %c0_21 = arith.constant 0 : index
    %c0_22 = arith.constant 0 : index
    %27 = vector.load %arg2[%c0_20, %c0_21, %c0_22] : memref<1x192x128xf32, #tpu.memory_space<vmem>>, vector<1x192x128xf32>
    %28 = vector.shape_cast %27 : vector<1x192x128xf32> to vector<192x128xf32>
    %29 = arith.truncf %28 : vector<192x128xf32> to vector<192x128xbf16>
    %cst_23 = arith.constant dense<0.000000e+00> : vector<192x128xf32>
    %30 = tpu.matmul %29, %3, %cst_23 {dimension_numbers = #tpu.dot_dimension_numbers<[1], [0], [0], [1], [0, 0, 1, 1], [], []>} : vector<192x128xbf16>, vector<128x128xbf16>, vector<192x128xf32> -> vector<192x128xf32>
    %31 = vector.broadcast %4 : vector<1x128xf32> to vector<192x128xf32>
    %32 = arith.addf %30, %31 : vector<192x128xf32>
    %cst_24 = arith.constant 0.000000e+00 : f32
    %33 = vector.broadcast %cst_24 : f32 to vector<192x128xf32>
    %34 = arith.maximumf %32, %33 : vector<192x128xf32>
    %35 = vector.broadcast %5 : vector<192x1xf32> to vector<192x128xf32>
    %36 = arith.mulf %34, %35 : vector<192x128xf32>
    %37 = arith.truncf %36 : vector<192x128xf32> to vector<192x128xbf16>
    %c32 = arith.constant 32 : index
    %c0_25 = arith.constant 0 : index
    %38 = vector.load %arg13[%c32, %c0_25] : memref<256x128xbf16, #tpu.memory_space<vmem>>, vector<192x128xbf16>
    tpu.vector_store %arg13[%c32, %c0_25], %37 {strides = array<i32>} : memref<256x128xbf16, #tpu.memory_space<vmem>>, vector<192x128xbf16>,
    %c0_26 = arith.constant 0 : index
    %c0_27 = arith.constant 0 : index
    %c0_28 = arith.constant 0 : index
    %39 = vector.load %arg4[%c0_26, %c0_27, %c0_28] : memref<1x24x128xf32, #tpu.memory_space<vmem>>, vector<1x24x128xf32>
    %40 = vector.shape_cast %39 : vector<1x24x128xf32> to vector<24x128xf32>
    %41 = arith.truncf %40 : vector<24x128xf32> to vector<24x128xbf16>
    %cst_29 = arith.constant dense<0.000000e+00> : vector<24x128xf32>
    %42 = tpu.matmul %41, %3, %cst_29 {dimension_numbers = #tpu.dot_dimension_numbers<[1], [0], [0], [1], [0, 0, 1, 1], [], []>} : vector<24x128xbf16>, vector<128x128xbf16>, vector<24x128xf32> -> vector<24x128xf32>
    %43 = vector.broadcast %4 : vector<1x128xf32> to vector<24x128xf32>
    %44 = arith.addf %42, %43 : vector<24x128xf32>
    %cst_30 = arith.constant 0.000000e+00 : f32
    %45 = vector.broadcast %cst_30 : f32 to vector<24x128xf32>
    %46 = arith.maximumf %44, %45 : vector<24x128xf32>
    %47 = vector.broadcast %14 : vector<24x1xf32> to vector<24x128xf32>
    %48 = arith.mulf %46, %47 : vector<24x128xf32>
    %49 = arith.truncf %48 : vector<24x128xf32> to vector<24x128xbf16>
    %c224 = arith.constant 224 : index
    %c0_31 = arith.constant 0 : index
    %50 = vector.load %arg13[%c224, %c0_31] : memref<256x128xbf16, #tpu.memory_space<vmem>>, vector<24x128xbf16>
    tpu.vector_store %arg13[%c224, %c0_31], %49 {strides = array<i32>} : memref<256x128xbf16, #tpu.memory_space<vmem>>, vector<24x128xbf16>,
    %c7 = arith.constant 7 : index
    %c0_32 = arith.constant 0 : index
    %51 = vector.load %arg13[%c7, %c0_32] : memref<256x128xbf16, #tpu.memory_space<vmem>>, vector<192x128xbf16>
    %c0_33 = arith.constant 0 : index
    %c0_34 = arith.constant 0 : index
    %c0_35 = arith.constant 0 : index
    %52 = vector.load %arg8[%c0_33, %c0_34, %c0_35] : memref<9x128x128xbf16, #tpu.memory_space<vmem>>, vector<1x128x128xbf16>
    %53 = vector.shape_cast %52 : vector<1x128x128xbf16> to vector<128x128xbf16>
    %cst_36 = arith.constant dense<0.000000e+00> : vector<192x128xf32>
    %54 = tpu.matmul %51, %53, %cst_36 {dimension_numbers = #tpu.dot_dimension_numbers<[1], [0], [0], [1], [0, 0, 1, 1], [], []>} : vector<192x128xbf16>, vector<128x128xbf16>, vector<192x128xf32> -> vector<192x128xf32>
    %c8_37 = arith.constant 8 : index
    %c0_38 = arith.constant 0 : index
    %55 = vector.load %arg13[%c8_37, %c0_38] : memref<256x128xbf16, #tpu.memory_space<vmem>>, vector<192x128xbf16>
    %c1 = arith.constant 1 : index
    %c0_39 = arith.constant 0 : index
    %c0_40 = arith.constant 0 : index
    %56 = vector.load %arg8[%c1, %c0_39, %c0_40] : memref<9x128x128xbf16, #tpu.memory_space<vmem>>, vector<1x128x128xbf16>
    %57 = vector.shape_cast %56 : vector<1x128x128xbf16> to vector<128x128xbf16>
    %cst_41 = arith.constant dense<0.000000e+00> : vector<192x128xf32>
    %58 = tpu.matmul %55, %57, %cst_41 {dimension_numbers = #tpu.dot_dimension_numbers<[1], [0], [0], [1], [0, 0, 1, 1], [], []>} : vector<192x128xbf16>, vector<128x128xbf16>, vector<192x128xf32> -> vector<192x128xf32>
    %59 = arith.addf %54, %58 : vector<192x128xf32>
    %c9 = arith.constant 9 : index
    %c0_42 = arith.constant 0 : index
    %60 = vector.load %arg13[%c9, %c0_42] : memref<256x128xbf16, #tpu.memory_space<vmem>>, vector<192x128xbf16>
    %c2 = arith.constant 2 : index
    %c0_43 = arith.constant 0 : index
    %c0_44 = arith.constant 0 : index
    %61 = vector.load %arg8[%c2, %c0_43, %c0_44] : memref<9x128x128xbf16, #tpu.memory_space<vmem>>, vector<1x128x128xbf16>
    %62 = vector.shape_cast %61 : vector<1x128x128xbf16> to vector<128x128xbf16>
    %cst_45 = arith.constant dense<0.000000e+00> : vector<192x128xf32>
    %63 = tpu.matmul %60, %62, %cst_45 {dimension_numbers = #tpu.dot_dimension_numbers<[1], [0], [0], [1], [0, 0, 1, 1], [], []>} : vector<192x128xbf16>, vector<128x128xbf16>, vector<192x128xf32> -> vector<192x128xf32>
    %64 = arith.addf %59, %63 : vector<192x128xf32>
    %c31 = arith.constant 31 : index
    %c0_46 = arith.constant 0 : index
    %65 = vector.load %arg13[%c31, %c0_46] : memref<256x128xbf16, #tpu.memory_space<vmem>>, vector<192x128xbf16>
    %c3 = arith.constant 3 : index
    %c0_47 = arith.constant 0 : index
    %c0_48 = arith.constant 0 : index
    %66 = vector.load %arg8[%c3, %c0_47, %c0_48] : memref<9x128x128xbf16, #tpu.memory_space<vmem>>, vector<1x128x128xbf16>
    %67 = vector.shape_cast %66 : vector<1x128x128xbf16> to vector<128x128xbf16>
    %cst_49 = arith.constant dense<0.000000e+00> : vector<192x128xf32>
    %68 = tpu.matmul %65, %67, %cst_49 {dimension_numbers = #tpu.dot_dimension_numbers<[1], [0], [0], [1], [0, 0, 1, 1], [], []>} : vector<192x128xbf16>, vector<128x128xbf16>, vector<192x128xf32> -> vector<192x128xf32>
    %69 = arith.addf %64, %68 : vector<192x128xf32>
    %c32_50 = arith.constant 32 : index
    %c0_51 = arith.constant 0 : index
    %70 = vector.load %arg13[%c32_50, %c0_51] : memref<256x128xbf16, #tpu.memory_space<vmem>>, vector<192x128xbf16>
    %c4 = arith.constant 4 : index
    %c0_52 = arith.constant 0 : index
    %c0_53 = arith.constant 0 : index
    %71 = vector.load %arg8[%c4, %c0_52, %c0_53] : memref<9x128x128xbf16, #tpu.memory_space<vmem>>, vector<1x128x128xbf16>
    %72 = vector.shape_cast %71 : vector<1x128x128xbf16> to vector<128x128xbf16>
    %cst_54 = arith.constant dense<0.000000e+00> : vector<192x128xf32>
    %73 = tpu.matmul %70, %72, %cst_54 {dimension_numbers = #tpu.dot_dimension_numbers<[1], [0], [0], [1], [0, 0, 1, 1], [], []>} : vector<192x128xbf16>, vector<128x128xbf16>, vector<192x128xf32> -> vector<192x128xf32>
    %74 = arith.addf %69, %73 : vector<192x128xf32>
    %c33 = arith.constant 33 : index
    %c0_55 = arith.constant 0 : index
    %75 = vector.load %arg13[%c33, %c0_55] : memref<256x128xbf16, #tpu.memory_space<vmem>>, vector<192x128xbf16>
    %c5 = arith.constant 5 : index
    %c0_56 = arith.constant 0 : index
    %c0_57 = arith.constant 0 : index
    %76 = vector.load %arg8[%c5, %c0_56, %c0_57] : memref<9x128x128xbf16, #tpu.memory_space<vmem>>, vector<1x128x128xbf16>
    %77 = vector.shape_cast %76 : vector<1x128x128xbf16> to vector<128x128xbf16>
    %cst_58 = arith.constant dense<0.000000e+00> : vector<192x128xf32>
    %78 = tpu.matmul %75, %77, %cst_58 {dimension_numbers = #tpu.dot_dimension_numbers<[1], [0], [0], [1], [0, 0, 1, 1], [], []>} : vector<192x128xbf16>, vector<128x128xbf16>, vector<192x128xf32> -> vector<192x128xf32>
    %79 = arith.addf %74, %78 : vector<192x128xf32>
    %c55 = arith.constant 55 : index
    %c0_59 = arith.constant 0 : index
    %80 = vector.load %arg13[%c55, %c0_59] : memref<256x128xbf16, #tpu.memory_space<vmem>>, vector<192x128xbf16>
    %c6 = arith.constant 6 : index
    %c0_60 = arith.constant 0 : index
    %c0_61 = arith.constant 0 : index
    %81 = vector.load %arg8[%c6, %c0_60, %c0_61] : memref<9x128x128xbf16, #tpu.memory_space<vmem>>, vector<1x128x128xbf16>
    %82 = vector.shape_cast %81 : vector<1x128x128xbf16> to vector<128x128xbf16>
    %cst_62 = arith.constant dense<0.000000e+00> : vector<192x128xf32>
    %83 = tpu.matmul %80, %82, %cst_62 {dimension_numbers = #tpu.dot_dimension_numbers<[1], [0], [0], [1], [0, 0, 1, 1], [], []>} : vector<192x128xbf16>, vector<128x128xbf16>, vector<192x128xf32> -> vector<192x128xf32>
    %84 = arith.addf %79, %83 : vector<192x128xf32>
    %c56 = arith.constant 56 : index
    %c0_63 = arith.constant 0 : index
    %85 = vector.load %arg13[%c56, %c0_63] : memref<256x128xbf16, #tpu.memory_space<vmem>>, vector<192x128xbf16>
    %c7_64 = arith.constant 7 : index
    %c0_65 = arith.constant 0 : index
    %c0_66 = arith.constant 0 : index
    %86 = vector.load %arg8[%c7_64, %c0_65, %c0_66] : memref<9x128x128xbf16, #tpu.memory_space<vmem>>, vector<1x128x128xbf16>
    %87 = vector.shape_cast %86 : vector<1x128x128xbf16> to vector<128x128xbf16>
    %cst_67 = arith.constant dense<0.000000e+00> : vector<192x128xf32>
    %88 = tpu.matmul %85, %87, %cst_67 {dimension_numbers = #tpu.dot_dimension_numbers<[1], [0], [0], [1], [0, 0, 1, 1], [], []>} : vector<192x128xbf16>, vector<128x128xbf16>, vector<192x128xf32> -> vector<192x128xf32>
    %89 = arith.addf %84, %88 : vector<192x128xf32>
    %c57 = arith.constant 57 : index
    %c0_68 = arith.constant 0 : index
    %90 = vector.load %arg13[%c57, %c0_68] : memref<256x128xbf16, #tpu.memory_space<vmem>>, vector<192x128xbf16>
    %c8_69 = arith.constant 8 : index
    %c0_70 = arith.constant 0 : index
    %c0_71 = arith.constant 0 : index
    %91 = vector.load %arg8[%c8_69, %c0_70, %c0_71] : memref<9x128x128xbf16, #tpu.memory_space<vmem>>, vector<1x128x128xbf16>
    %92 = vector.shape_cast %91 : vector<1x128x128xbf16> to vector<128x128xbf16>
    %cst_72 = arith.constant dense<0.000000e+00> : vector<192x128xf32>
    %93 = tpu.matmul %90, %92, %cst_72 {dimension_numbers = #tpu.dot_dimension_numbers<[1], [0], [0], [1], [0, 0, 1, 1], [], []>} : vector<192x128xbf16>, vector<128x128xbf16>, vector<192x128xf32> -> vector<192x128xf32>
    %94 = arith.addf %89, %93 : vector<192x128xf32>
    %c0_73 = arith.constant 0 : index
    %c0_74 = arith.constant 0 : index
    %95 = vector.load %arg9[%c0_73, %c0_74] : memref<1x128xf32, #tpu.memory_space<vmem>>, vector<1x128xf32>
    %96 = vector.broadcast %95 : vector<1x128xf32> to vector<192x128xf32>
    %97 = arith.addf %94, %96 : vector<192x128xf32>
    %cst_75 = arith.constant 0.000000e+00 : f32
    %98 = vector.broadcast %cst_75 : f32 to vector<192x128xf32>
    %99 = arith.maximumf %97, %98 : vector<192x128xf32>
    %100 = arith.truncf %99 : vector<192x128xf32> to vector<192x128xbf16>
    %c0_76 = arith.constant 0 : index
    %c0_77 = arith.constant 0 : index
    %101 = vector.load %arg10[%c0_76, %c0_77] : memref<128x128xbf16, #tpu.memory_space<vmem>>, vector<128x128xbf16>
    %cst_78 = arith.constant dense<0.000000e+00> : vector<192x128xf32>
    %102 = tpu.matmul %100, %101, %cst_78 {dimension_numbers = #tpu.dot_dimension_numbers<[1], [0], [0], [1], [0, 0, 1, 1], [], []>} : vector<192x128xbf16>, vector<128x128xbf16>, vector<192x128xf32> -> vector<192x128xf32>
    %c0_79 = arith.constant 0 : index
    %c0_80 = arith.constant 0 : index
    %103 = vector.load %arg11[%c0_79, %c0_80] : memref<1x128xf32, #tpu.memory_space<vmem>>, vector<1x128xf32>
    %104 = vector.broadcast %103 : vector<1x128xf32> to vector<192x128xf32>
    %105 = arith.addf %102, %104 : vector<192x128xf32>
    %c0_81 = arith.constant 0 : index
    %c0_82 = arith.constant 0 : index
    %c0_83 = arith.constant 0 : index
    %106 = vector.load %arg2[%c0_81, %c0_82, %c0_83] : memref<1x192x128xf32, #tpu.memory_space<vmem>>, vector<1x192x128xf32>
    %107 = vector.shape_cast %106 : vector<1x192x128xf32> to vector<192x128xf32>
    %108 = arith.addf %105, %107 : vector<192x128xf32>
    %cst_84 = arith.constant 0.000000e+00 : f32
    %109 = vector.broadcast %cst_84 : f32 to vector<192x128xf32>
    %110 = arith.maximumf %108, %109 : vector<192x128xf32>
    %c0_85 = arith.constant 0 : index
    %c0_86 = arith.constant 0 : index
    %c0_87 = arith.constant 0 : index
    %111 = vector.load %arg12[%c0_85, %c0_86, %c0_87] : memref<1x192x128xf32, #tpu.memory_space<vmem>>, vector<1x192x128xf32>
    %112 = vector.shape_cast %111 : vector<1x192x128xf32> to vector<192x128xf32>
    %113 = vector.shape_cast %110 : vector<192x128xf32> to vector<1x192x128xf32>
    tpu.vector_store %arg12[%c0_85, %c0_86, %c0_87], %113 {strides = array<i32>} : memref<1x192x128xf32, #tpu.memory_space<vmem>>, vector<1x192x128xf32>,
    return
  }
  func.func @transform_0(%arg0: i32, %arg1: i32) -> (i32, i32, i32) {
    %c0_i32 = arith.constant 0 : i32
    %c0_i32_0 = arith.constant 0 : i32
    return %arg0, %arg1, %c0_i32 : i32, i32, i32
  }
  func.func @transform_1(%arg0: i32, %arg1: i32) -> (i32, i32, i32) {
    %c8_i32 = arith.constant 8 : i32
    %0 = arith.muli %arg1, %c8_i32 : i32
    %c1_i32 = arith.constant 1 : i32
    %1 = arith.subi %0, %c1_i32 : i32
    %c0_i32 = arith.constant 0 : i32
    %2 = arith.maxsi %1, %c0_i32 : i32
    %c0_i32_0 = arith.constant 0 : i32
    %c0_i32_1 = arith.constant 0 : i32
    return %arg0, %2, %c0_i32_0 : i32, i32, i32
  }
  func.func @transform_2(%arg0: i32, %arg1: i32) -> (i32, i32, i32) {
    %c8_i32 = arith.constant 8 : i32
    %0 = arith.muli %arg1, %c8_i32 : i32
    %c8_i32_0 = arith.constant 8 : i32
    %1 = arith.addi %0, %c8_i32_0 : i32
    %c15_i32 = arith.constant 15 : i32
    %2 = arith.minsi %1, %c15_i32 : i32
    %c0_i32 = arith.constant 0 : i32
    %c0_i32_1 = arith.constant 0 : i32
    return %arg0, %2, %c0_i32 : i32, i32, i32
  }
  func.func @transform_3(%arg0: i32, %arg1: i32) -> (i32, i32) {
    %c0_i32 = arith.constant 0 : i32
    %c0_i32_0 = arith.constant 0 : i32
    %c0_i32_1 = arith.constant 0 : i32
    return %c0_i32, %c0_i32_0 : i32, i32
  }
  func.func @transform_4(%arg0: i32, %arg1: i32) -> (i32, i32) {
    %c0_i32 = arith.constant 0 : i32
    %c0_i32_0 = arith.constant 0 : i32
    %c0_i32_1 = arith.constant 0 : i32
    return %c0_i32, %c0_i32_0 : i32, i32
  }
  func.func @transform_5(%arg0: i32, %arg1: i32) -> (i32, i32) {
    %c0_i32 = arith.constant 0 : i32
    %c0_i32_0 = arith.constant 0 : i32
    %c0_i32_1 = arith.constant 0 : i32
    return %c0_i32, %c0_i32_0 : i32, i32
  }
  func.func @transform_6(%arg0: i32, %arg1: i32) -> (i32, i32, i32) {
    %c0_i32 = arith.constant 0 : i32
    %c0_i32_0 = arith.constant 0 : i32
    %c0_i32_1 = arith.constant 0 : i32
    %c0_i32_2 = arith.constant 0 : i32
    return %c0_i32, %c0_i32_0, %c0_i32_1 : i32, i32, i32
  }
  func.func @transform_7(%arg0: i32, %arg1: i32) -> (i32, i32) {
    %c0_i32 = arith.constant 0 : i32
    %c0_i32_0 = arith.constant 0 : i32
    %c0_i32_1 = arith.constant 0 : i32
    return %c0_i32, %c0_i32_0 : i32, i32
  }
  func.func @transform_8(%arg0: i32, %arg1: i32) -> (i32, i32) {
    %c0_i32 = arith.constant 0 : i32
    %c0_i32_0 = arith.constant 0 : i32
    %c0_i32_1 = arith.constant 0 : i32
    return %c0_i32, %c0_i32_0 : i32, i32
  }
  func.func @transform_9(%arg0: i32, %arg1: i32) -> (i32, i32) {
    %c0_i32 = arith.constant 0 : i32
    %c0_i32_0 = arith.constant 0 : i32
    %c0_i32_1 = arith.constant 0 : i32
    return %c0_i32, %c0_i32_0 : i32, i32
  }
  func.func @transform_10(%arg0: i32, %arg1: i32) -> (i32, i32, i32) {
    %c0_i32 = arith.constant 0 : i32
    %c0_i32_0 = arith.constant 0 : i32
    return %arg0, %arg1, %c0_i32 : i32, i32, i32
  }
}

</mosaic_0001>

<bundles_post_ra>
// kernel: tile.8
= control target key start
LH: loop header
LB: loop body
LE: loop exit
PB: predicated region body
PF: predicated region fallthrough
CT: control target
= control target key end

     0   :  { %s22_s0 = inlined_call_operand.vmem [shape: f32[24], index: 0, kind: input, shape index: {}]   ;;  %s23_s1 = inlined_call_operand.vmem [shape: f32[8,24], index: 1, kind: output, shape index: {}]  }
   0x1   :  { %v4_v0 = vld [vmem:[%s22_s0] ss:$0 sm:$0xff] }
   0x2   :  { %5 = vst [vmem:[%s23_s1] sm:$0xff] %v4_v0 }

// kernel: tile.0
= control target key start
LH: loop header
LB: loop body
LE: loop exit
PB: predicated region body
PF: predicated region fallthrough
CT: control target
= control target key end

     0   :  { %s397_s8 = smov 127   ;;  %s398_s9 = smov 125   ;;  %vm3_vm0 = vcmask 7168   ;;  %s818_s0 = inlined_call_operand.vmem [shape: f32[8,24], index: 0, kind: input, shape index: {}]   ;;  %s819_s1 = inlined_call_operand.vmem [shape: f32[192,1], index: 1, kind: output, shape index: {}]  }
   0x1   :  { %v6_v0 = vld.sshfl [vmem:[%s818_s0] sm:$0xff pattern:$0x56741230]   ;;  %s399_s10 = smov 126   ;;  %s400_s11 = smov 124  }
   0x2   :  { %7 = vrot.lane.b32.xlu0 %v6_v0, %s397_s8  ;;  %31 = vrot.lane.b32.xlu1 %v6_v0, %s398_s9  ;;  %s401_s12 = smov 123   ;;  %s402_s13 = smov 122   ;;  %v90_v1 = vld.sshfl [vmem:[%s818_s0] sm:$0xff pattern:$0x67452301]  }
   0x3   :  { %s403_s16 = smov 121   ;;  %s404_s17 = smov 120   ;;  %v186_v2 = vld.sshfl [vmem:[%s818_s0] sm:$0xff pattern:$0x74563012]  }
   0x4   :  { %s405_s18 = smov 119   ;;  %s406_s19 = smov 118   ;;  %v2_v3 = vld [vmem:[%s818_s0] sm:$0xff]  }
   0x5   :  { %s407_s20 = smov 117   ;;  %s408_s21 = smov 116   ;;  %4 = vst.msk [vmem:[%s819_s1] ss:$24 sm:$0xf] %vm3_vm0, %v2_v3  }
   0x6   :  { %19 = vrot.lane.b32.xlu0 %v6_v0, %s399_s10  ;;  %43 = vrot.lane.b32.xlu1 %v6_v0, %s400_s11  ;;  %s409_s22 = smov 115   ;;  %s410_s23 = smov 114   ;;  %5 = vst.msk [vmem:[%s819_s1] ss:$24 sm:$0xf0] %vm3_vm0, %v2_v3  }
   0x7   :  { %s411_s26 = smov 113   ;;  %s412_s27 = smov 112  }
   0x8   :  { %s413_s4 = smov 111   ;;  %s414_s5 = smov 110  }
   0x9   :  { %s415_s6 = smov 109   ;;  %s416_s7 = smov 108  }
   0xa   :  { %55 = vrot.lane.b32.xlu0 %v6_v0, %s401_s12  ;;  %67 = vrot.lane.b32.xlu1 %v6_v0, %s402_s13  ;;  %s417_s8 = smov 107   ;;  %s418_s9 = smov 106  }
   0xb   :  { %s419_s10 = smov 105  }
   0xe   :  { %79 = vrot.lane.b32.xlu0 %v6_v0, %s403_s16  ;;  %91 = vrot.lane.b32.xlu1 %v90_v1, %s404_s17 }
  0x12   :  { %103 = vrot.lane.b32.xlu0 %v90_v1, %s405_s18  ;;  %115 = vrot.lane.b32.xlu1 %v90_v1, %s406_s19 }
  0x16   :  { %127 = vrot.lane.b32.xlu0 %v90_v1, %s407_s20  ;;  %139 = vrot.lane.b32.xlu1 %v90_v1, %s408_s21 }
  0x1a   :  { %151 = vrot.lane.b32.xlu0 %v90_v1, %s409_s22  ;;  %163 = vrot.lane.b32.xlu1 %v90_v1, %s410_s23 }
  0x1e   :  { %175 = vrot.lane.b32.xlu0 %v90_v1, %s411_s26  ;;  %187 = vrot.lane.b32.xlu1 %v186_v2, %s412_s27 }
  0x22   :  { %199 = vrot.lane.b32.xlu0 %v186_v2, %s413_s4  ;;  %211 = vrot.lane.b32.xlu1 %v186_v2, %s414_s5 }
  0x26   :  { %223 = vrot.lane.b32.xlu0 %v186_v2, %s415_s6  ;;  %235 = vrot.lane.b32.xlu1 %v186_v2, %s416_s7 }
  0x2a   :  { %247 = vrot.lane.b32.xlu0 %v186_v2, %s417_s8  ;;  %259 = vrot.lane.b32.xlu1 %v186_v2, %s418_s9 }
  0x2e   :  { %271 = vrot.lane.b32.xlu0 %v186_v2, %s419_s10 }
  0x74   :  { %v8_v4 = vpop.permute.xlu0 %7   ;;  %v32_v5 = vpop.permute.xlu1 %31  }
  0x75   :  { %282 = vst.msk [vmem:[%s819_s1 + $0x1] ss:$72 sm:$0x3] %vm3_vm0, %v8_v4   ;;  %283 = vst.msk [vmem:[%s819_s1 + $0x61] ss:$-24 sm:$0xc] %vm3_vm0, %v8_v4  }
  0x76   :  { %284 = vst.msk [vmem:[%s819_s1 - $0xbf] ss:$72 sm:$0x30] %vm3_vm0, %v8_v4   ;;  %285 = vst.msk [vmem:[%s819_s1 + $0x121] ss:$-24 sm:$0xc0] %vm3_vm0, %v8_v4  }
  0x77   :  { %290 = vst.msk [vmem:[%s819_s1 + $0x3] ss:$72 sm:$0x3] %vm3_vm0, %v32_v5   ;;  %291 = vst.msk [vmem:[%s819_s1 + $0x63] ss:$-24 sm:$0xc] %vm3_vm0, %v32_v5  }
  0x78   :  { %292 = vst.msk [vmem:[%s819_s1 - $0xbd] ss:$72 sm:$0x30] %vm3_vm0, %v32_v5   ;;  %293 = vst.msk [vmem:[%s819_s1 + $0x123] ss:$-24 sm:$0xc0] %vm3_vm0, %v32_v5   ;;  %v20_v6 = vpop.permute.xlu0 %19   ;;  %v44_v7 = vpop.permute.xlu1 %43  }
  0x79   :  { %286 = vst.msk [vmem:[%s819_s1 + $0x2] ss:$72 sm:$0x3] %vm3_vm0, %v20_v6   ;;  %287 = vst.msk [vmem:[%s819_s1 + $0x62] ss:$-24 sm:$0xc] %vm3_vm0, %v20_v6  }
  0x7a   :  { %288 = vst.msk [vmem:[%s819_s1 - $0xbe] ss:$72 sm:$0x30] %vm3_vm0, %v20_v6   ;;  %289 = vst.msk [vmem:[%s819_s1 + $0x122] ss:$-24 sm:$0xc0] %vm3_vm0, %v20_v6  }
  0x7b   :  { %294 = vst.msk [vmem:[%s819_s1 + $0x4] ss:$72 sm:$0x3] %vm3_vm0, %v44_v7   ;;  %295 = vst.msk [vmem:[%s819_s1 + $0x64] ss:$-24 sm:$0xc] %vm3_vm0, %v44_v7  }
  0x7c   :  { %296 = vst.msk [vmem:[%s819_s1 - $0xbc] ss:$72 sm:$0x30] %vm3_vm0, %v44_v7   ;;  %297 = vst.msk [vmem:[%s819_s1 + $0x124] ss:$-24 sm:$0xc0] %vm3_vm0, %v44_v7   ;;  %v56_v8 = vpop.permute.xlu0 %55   ;;  %v68_v9 = vpop.permute.xlu1 %67  }
  0x7d   :  { %298 = vst.msk [vmem:[%s819_s1 + $0x5] ss:$72 sm:$0x3] %vm3_vm0, %v56_v8   ;;  %299 = vst.msk [vmem:[%s819_s1 + $0x65] ss:$-24 sm:$0xc] %vm3_vm0, %v56_v8  }
  0x7e   :  { %300 = vst.msk [vmem:[%s819_s1 - $0xbb] ss:$72 sm:$0x30] %vm3_vm0, %v56_v8   ;;  %301 = vst.msk [vmem:[%s819_s1 + $0x125] ss:$-24 sm:$0xc0] %vm3_vm0, %v56_v8  }
  0x7f   :  { %302 = vst.msk [vmem:[%s819_s1 + $0x6] ss:$72 sm:$0x3] %vm3_vm0, %v68_v9   ;;  %303 = vst.msk [vmem:[%s819_s1 + $0x66] ss:$-24 sm:$0xc] %vm3_vm0, %v68_v9  }
  0x80   :  { %304 = vst.msk [vmem:[%s819_s1 - $0xba] ss:$72 sm:$0x30] %vm3_vm0, %v68_v9   ;;  %305 = vst.msk [vmem:[%s819_s1 + $0x126] ss:$-24 sm:$0xc0] %vm3_vm0, %v68_v9   ;;  %v80_v10 = vpop.permute.xlu0 %79   ;;  %v92_v11 = vpop.permute.xlu1 %91  }
  0x81   :  { %306 = vst.msk [vmem:[%s819_s1 + $0x7] ss:$72 sm:$0x3] %vm3_vm0, %v80_v10   ;;  %307 = vst.msk [vmem:[%s819_s1 + $0x67] ss:$-24 sm:$0xc] %vm3_vm0, %v80_v10  }
  0x82   :  { %308 = vst.msk [vmem:[%s819_s1 - $0xb9] ss:$72 sm:$0x30] %vm3_vm0, %v80_v10   ;;  %309 = vst.msk [vmem:[%s819_s1 + $0x127] ss:$-24 sm:$0xc0] %vm3_vm0, %v80_v10  }
  0x83   :  { %310 = vst.msk [vmem:[%s819_s1 + $0x20] ss:$-24 sm:$0x3] %vm3_vm0, %v92_v11   ;;  %311 = vst.msk [vmem:[%s819_s1 + $0x80] ss:$-24 sm:$0xc] %vm3_vm0, %v92_v11  }
  0x84   :  { %312 = vst.msk [vmem:[%s819_s1 + $0xe0] ss:$-24 sm:$0x30] %vm3_vm0, %v92_v11   ;;  %313 = vst.msk [vmem:[%s819_s1 + $0x140] ss:$-24 sm:$0xc0] %vm3_vm0, %v92_v11   ;;  %v104_v12 = vpop.permute.xlu0 %103   ;;  %v116_v13 = vpop.permute.xlu1 %115  }
  0x85   :  { %314 = vst.msk [vmem:[%s819_s1 + $0x21] ss:$-24 sm:$0x3] %vm3_vm0, %v104_v12   ;;  %315 = vst.msk [vmem:[%s819_s1 + $0x81] ss:$-24 sm:$0xc] %vm3_vm0, %v104_v12  }
  0x86   :  { %316 = vst.msk [vmem:[%s819_s1 + $0xe1] ss:$-24 sm:$0x30] %vm3_vm0, %v104_v12   ;;  %317 = vst.msk [vmem:[%s819_s1 + $0x141] ss:$-24 sm:$0xc0] %vm3_vm0, %v104_v12  }
  0x87   :  { %318 = vst.msk [vmem:[%s819_s1 + $0x22] ss:$-24 sm:$0x3] %vm3_vm0, %v116_v13   ;;  %319 = vst.msk [vmem:[%s819_s1 + $0x82] ss:$-24 sm:$0xc] %vm3_vm0, %v116_v13  }
  0x88   :  { %320 = vst.msk [vmem:[%s819_s1 + $0xe2] ss:$-24 sm:$0x30] %vm3_vm0, %v116_v13   ;;  %321 = vst.msk [vmem:[%s819_s1 + $0x142] ss:$-24 sm:$0xc0] %vm3_vm0, %v116_v13   ;;  %v128_v14 = vpop.permute.xlu0 %127   ;;  %v140_v15 = vpop.permute.xlu1 %139  }
  0x89   :  { %322 = vst.msk [vmem:[%s819_s1 + $0x23] ss:$-24 sm:$0x3] %vm3_vm0, %v128_v14   ;;  %323 = vst.msk [vmem:[%s819_s1 + $0x83] ss:$-24 sm:$0xc] %vm3_vm0, %v128_v14  }
  0x8a   :  { %324 = vst.msk [vmem:[%s819_s1 + $0xe3] ss:$-24 sm:$0x30] %vm3_vm0, %v128_v14   ;;  %325 = vst.msk [vmem:[%s819_s1 + $0x143] ss:$-24 sm:$0xc0] %vm3_vm0, %v128_v14  }
  0x8b   :  { %326 = vst.msk [vmem:[%s819_s1 + $0x24] ss:$-24 sm:$0x3] %vm3_vm0, %v140_v15   ;;  %327 = vst.msk [vmem:[%s819_s1 + $0x84] ss:$-24 sm:$0xc] %vm3_vm0, %v140_v15  }
  0x8c   :  { %328 = vst.msk [vmem:[%s819_s1 + $0xe4] ss:$-24 sm:$0x30] %vm3_vm0, %v140_v15   ;;  %329 = vst.msk [vmem:[%s819_s1 + $0x144] ss:$-24 sm:$0xc0] %vm3_vm0, %v140_v15   ;;  %v152_v16 = vpop.permute.xlu0 %151   ;;  %v164_v17 = vpop.permute.xlu1 %163  }
  0x8d   :  { %330 = vst.msk [vmem:[%s819_s1 + $0x25] ss:$-24 sm:$0x3] %vm3_vm0, %v152_v16   ;;  %331 = vst.msk [vmem:[%s819_s1 + $0x85] ss:$-24 sm:$0xc] %vm3_vm0, %v152_v16  }
  0x8e   :  { %332 = vst.msk [vmem:[%s819_s1 + $0xe5] ss:$-24 sm:$0x30] %vm3_vm0, %v152_v16   ;;  %333 = vst.msk [vmem:[%s819_s1 + $0x145] ss:$-24 sm:$0xc0] %vm3_vm0, %v152_v16  }
  0x8f   :  { %334 = vst.msk [vmem:[%s819_s1 + $0x26] ss:$-24 sm:$0x3] %vm3_vm0, %v164_v17   ;;  %335 = vst.msk [vmem:[%s819_s1 + $0x86] ss:$-24 sm:$0xc] %vm3_vm0, %v164_v17  }
  0x90   :  { %336 = vst.msk [vmem:[%s819_s1 + $0xe6] ss:$-24 sm:$0x30] %vm3_vm0, %v164_v17   ;;  %337 = vst.msk [vmem:[%s819_s1 + $0x146] ss:$-24 sm:$0xc0] %vm3_vm0, %v164_v17   ;;  %v176_v18 = vpop.permute.xlu0 %175   ;;  %v188_v19 = vpop.permute.xlu1 %187  }
  0x91   :  { %338 = vst.msk [vmem:[%s819_s1 + $0x27] ss:$-24 sm:$0x3] %vm3_vm0, %v176_v18   ;;  %339 = vst.msk [vmem:[%s819_s1 + $0x87] ss:$-24 sm:$0xc] %vm3_vm0, %v176_v18  }
  0x92   :  { %340 = vst.msk [vmem:[%s819_s1 + $0xe7] ss:$-24 sm:$0x30] %vm3_vm0, %v176_v18   ;;  %341 = vst.msk [vmem:[%s819_s1 + $0x147] ss:$-24 sm:$0xc0] %vm3_vm0, %v176_v18  }
  0x93   :  { %342 = vst.msk [vmem:[%s819_s1 + $0x40] ss:$-24 sm:$0x7] %vm3_vm0, %v188_v19   ;;  %343 = vst.msk [vmem:[%s819_s1 - $0x80] ss:$72 sm:$0x18] %vm3_vm0, %v188_v19  }
  0x94   :  { %344 = vst.msk [vmem:[%s819_s1 + $0x100] ss:$-24 sm:$0x60] %vm3_vm0, %v188_v19   ;;  %345 = vst.msk [vmem:[%s819_s1 + $0xb1] sm:$0x80] %vm3_vm0, %v188_v19   ;;  %v200_v20 = vpop.permute.xlu0 %199   ;;  %v212_v21 = vpop.permute.xlu1 %211  }
  0x95   :  { %346 = vst.msk [vmem:[%s819_s1 + $0x41] ss:$-24 sm:$0x7] %vm3_vm0, %v200_v20   ;;  %347 = vst.msk [vmem:[%s819_s1 - $0x7f] ss:$72 sm:$0x18] %vm3_vm0, %v200_v20  }
  0x96   :  { %348 = vst.msk [vmem:[%s819_s1 + $0x101] ss:$-24 sm:$0x60] %vm3_vm0, %v200_v20   ;;  %349 = vst.msk [vmem:[%s819_s1 + $0xb2] sm:$0x80] %vm3_vm0, %v200_v20  }
  0x97   :  { %350 = vst.msk [vmem:[%s819_s1 + $0x42] ss:$-24 sm:$0x7] %vm3_vm0, %v212_v21   ;;  %351 = vst.msk [vmem:[%s819_s1 - $0x7e] ss:$72 sm:$0x18] %vm3_vm0, %v212_v21  }
  0x98   :  { %352 = vst.msk [vmem:[%s819_s1 + $0x102] ss:$-24 sm:$0x60] %vm3_vm0, %v212_v21   ;;  %353 = vst.msk [vmem:[%s819_s1 + $0xb3] sm:$0x80] %vm3_vm0, %v212_v21   ;;  %v224_v22 = vpop.permute.xlu0 %223   ;;  %v236_v23 = vpop.permute.xlu1 %235  }
  0x99   :  { %354 = vst.msk [vmem:[%s819_s1 + $0x43] ss:$-24 sm:$0x7] %vm3_vm0, %v224_v22   ;;  %355 = vst.msk [vmem:[%s819_s1 - $0x7d] ss:$72 sm:$0x18] %vm3_vm0, %v224_v22  }
  0x9a   :  { %356 = vst.msk [vmem:[%s819_s1 + $0x103] ss:$-24 sm:$0x60] %vm3_vm0, %v224_v22   ;;  %357 = vst.msk [vmem:[%s819_s1 + $0xb4] sm:$0x80] %vm3_vm0, %v224_v22  }
  0x9b   :  { %358 = vst.msk [vmem:[%s819_s1 + $0x44] ss:$-24 sm:$0x7] %vm3_vm0, %v236_v23   ;;  %359 = vst.msk [vmem:[%s819_s1 - $0x7c] ss:$72 sm:$0x18] %vm3_vm0, %v236_v23  }
  0x9c   :  { %360 = vst.msk [vmem:[%s819_s1 + $0x104] ss:$-24 sm:$0x60] %vm3_vm0, %v236_v23   ;;  %361 = vst.msk [vmem:[%s819_s1 + $0xb5] sm:$0x80] %vm3_vm0, %v236_v23   ;;  %v248_v24 = vpop.permute.xlu0 %247   ;;  %v260_v25 = vpop.permute.xlu1 %259  }
  0x9d   :  { %362 = vst.msk [vmem:[%s819_s1 + $0x45] ss:$-24 sm:$0x7] %vm3_vm0, %v248_v24   ;;  %363 = vst.msk [vmem:[%s819_s1 - $0x7b] ss:$72 sm:$0x18] %vm3_vm0, %v248_v24  }
  0x9e   :  { %364 = vst.msk [vmem:[%s819_s1 + $0x105] ss:$-24 sm:$0x60] %vm3_vm0, %v248_v24   ;;  %365 = vst.msk [vmem:[%s819_s1 + $0xb6] sm:$0x80] %vm3_vm0, %v248_v24  }
  0x9f   :  { %366 = vst.msk [vmem:[%s819_s1 + $0x46] ss:$-24 sm:$0x7] %vm3_vm0, %v260_v25   ;;  %367 = vst.msk [vmem:[%s819_s1 - $0x7a] ss:$72 sm:$0x18] %vm3_vm0, %v260_v25  }
  0xa0   :  { %368 = vst.msk [vmem:[%s819_s1 + $0x106] ss:$-24 sm:$0x60] %vm3_vm0, %v260_v25   ;;  %369 = vst.msk [vmem:[%s819_s1 + $0xb7] sm:$0x80] %vm3_vm0, %v260_v25   ;;  %v272_v26 = vpop.permute.xlu0 %271  }
  0xa1   :  { %370 = vst.msk [vmem:[%s819_s1 + $0x47] ss:$-24 sm:$0x7] %vm3_vm0, %v272_v26   ;;  %371 = vst.msk [vmem:[%s819_s1 - $0x79] ss:$72 sm:$0x18] %vm3_vm0, %v272_v26  }
  0xa2   :  { %372 = vst.msk [vmem:[%s819_s1 + $0x107] ss:$-24 sm:$0x60] %vm3_vm0, %v272_v26   ;;  %373 = vst.msk [vmem:[%s819_s1 + $0xb8] sm:$0x80] %vm3_vm0, %v272_v26  }

// kernel: bottleneck_pallas.1
= control target key start
LH: loop header
LB: loop body
LE: loop exit
PB: predicated region body
PF: predicated region fallthrough
CT: control target
= control target key end

     0   :  { %s6569_s13 = smov 0   ;;  %s6571_s14 = smov 0   ;;  %s8033_s0 = inlined_call_operand.vmem [shape: f32[2,384,128], index: 0, kind: input, shape index: {}, may-alias: {0,1,2}]   ;;  %s8034_s1 = inlined_call_operand.vmem [shape: f32[2,384,128], index: 1, kind: input, shape index: {}, may-alias: {0,1,2}]   ;;  %s8035_s2 = inlined_call_operand.vmem [shape: f32[2,384,128], index: 2, kind: input, shape index: {}, may-alias: {0,1,2}]   ;;  %s8036_s3 = inlined_call_operand.vmem [shape: f32[192,1], index: 3, kind: input, shape index: {}]   ;;  %s8037_s4 = inlined_call_operand.vmem [shape: bf16[128,128], index: 4, kind: input, shape index: {}]   ;;  %s8038_s5 = inlined_call_operand.vmem [shape: f32[1,128], index: 5, kind: input, shape index: {}]   ;;  %s8039_s6 = inlined_call_operand.vmem [shape: bf16[9,128,128], index: 6, kind: input, shape index: {}]   ;;  %s8040_s7 = inlined_call_operand.vmem [shape: f32[1,128], index: 7, kind: input, shape index: {}]   ;;  %s8041_s8 = inlined_call_operand.vmem [shape: bf16[128,128], index: 8, kind: input, shape index: {}]   ;;  %s8042_s9 = inlined_call_operand.vmem [shape: f32[1,128], index: 9, kind: input, shape index: {}]   ;;  %s8043_s10 = inlined_call_operand.vmem [shape: f32[2,384,128], index: 10, kind: output, shape index: {}]  }
   0x1   :  { %s6573_s15 = smov 0   ;;  %s6575_s16 = smov 0  }
   0x2   :  { %s6577_s17 = smov 0  }
   0x3 LB: > { %s29_s18 = sadd.s32 1, %s6503_s15  ;;  %s32_s19 = sadd.s32 1, %s6507_s16  ;;  %s6511_s17 = sphi %s6577_s17, %s20_s17   ;;  %s6507_s16 = sphi %s6575_s16, %s8109_s16   ;;  %s6503_s15 = sphi %s6573_s15, %s8108_s15   ;;  %s6499_s14 = sphi %s6571_s14, %s8107_s14   ;;  %s6495_s13 = sphi %s6569_s13, %s8106_s13  }
   0x4   : > { %p30_p0 = scmp.ge.s32.totalorder %s29_s18, 2  ;;  %p5004_p1 = scmp.ge.s32.totalorder %s6511_s17, 1 }
   0x5   : > { %p399_p2 = scmp.lt.s32.totalorder %s6511_s17, 5 }
   0x6   : > { %s8111_s18 = smov (%p30_p0, %s29_s18), 0  ;;  %s8113_s19 = smov (!%p30_p0, %s32_s19), %s6507_s16 }
   0x7   : > { %p400_p3 = pnand %p5004_p1, %p399_p2  ;;  %p34_p4 = scmp.ge.s32.totalorder %s8113_s19, 2 }
   0x9   : > { %s8115_s19 = smov (%p34_p4, %s8113_s19), 0  ;;  %403 = sbr.rel (%p400_p3) target bundleno = 914 (0x392), region = 60 }
   0xe   : > { %v6604_v0 = vld [vmem:[%s8037_s4 + $0x38] sm:$0xff]   ;;  %s471_s22 = smul.u32 24, %s6495_s13  ;;  %v6610_v1 = vld [vmem:[%s8037_s4 + $0x30] sm:$0xff]   ;;  %p472_p5 = scmp.lt.s32.totalorder %s6499_s14, 1  ;;  %v6621_v2 = vld [vmem:[%s8037_s4 + $0x28] sm:$0xff]   ;;  %v6513_v4 = vmov 0  }
   0xf   : > { %5731 = vmatprep.subr.bf16.mxu0 %v6604_v0  ;;  %5751 = vmatprep.subr.bf16.mxu1 %v6604_v0  ;;  %s5006_s28 = sshll.u32 %s6495_s13, 3  ;;  %v6634_v3 = vld [vmem:[%s8037_s4 + $0x20] sm:$0xff]   ;;  %528 = vst [vmem:[#allocation2] sm:$0xf] %v6513_v4  ;;  %529 = vst [vmem:[#allocation2 + $0x7c] sm:$0xf] %v6513_v4 }
  0x10   : > { %p474_p6 = scmp.lt.s32.totalorder %s471_s22, 47  ;;  %5732 = vmatpush3.bf16.msra.mxu0 %v6604_v0  ;;  %5752 = vmatpush3.bf16.msra.mxu1 %v6604_v0  ;;  %s8117_s14 = smov (!%p472_p5, %s6499_s14), 1  ;;  %v6653_v8 = vld [vmem:[%s8037_s4 + $0x18] sm:$0xff]   ;;  %v6663_v9 = vld [vmem:[%s8036_s3] sm:$0xff]  ;;  %v6668_v10 = vld [vmem:[%s8036_s3 + $0x10] sm:$0xff] }
  0x11   : > { %5733 = vmatprep.subr.bf16.mxu0 %v6610_v1  ;;  %5753 = vmatprep.subr.bf16.mxu1 %v6610_v1  ;;  %s6623_s27 = smul.u32 48, %s8117_s14  ;;  %s5007_s30 = sadd.s32 4294967295, %s5006_s28  ;;  %v6675_v11 = vld [vmem:[%s8037_s4 + $0x10] sm:$0xff]   ;;  %v6684_v15 = vld [vmem:[%s8036_s3 + $0x8] sm:$0xff]  ;;  %v6708_v21 = vld [vmem:[%s8037_s4] sm:$0xff]  }
  0x12   : > { %s8119_s22 = smov (!%p474_p6, %s471_s22), 47  ;;  %p483_p7 = scmp.gt.s32.totalorder %s5007_s30, 0  ;;  %6269 = vset.pattern.permute.xlu0 %v6513_v4  ;;  %6270 = vset.pattern.permute.xlu1 %v6513_v4  ;;  %v6693_v16 = vld [vmem:[%s8037_s4 + $0x8] sm:$0xff]   ;;  %v550_v29 = vld [vmem:[%s8036_s3 + $0x18] sm:$0xff]  ;;  %v551_v34 = vld [vmem:[%s8036_s3 + $0x20] sm:$0xff] }
  0x13   : > { %s477_s29 = sadd.s32 %s6623_s27, %s8119_s22  ;;  %s500_s22 = sadd.s32 8, %s5006_s28  ;;  %v552_v35 = vld [vmem:[%s8036_s3 + $0x28] sm:$0xff]  ;;  %v553_v40 = vld [vmem:[%s8036_s3 + $0x30] sm:$0xff]  ;;  %v554_v41 = vld [vmem:[%s8036_s3 + $0x38] sm:$0xff]  ;;  %vm1592_vm0 = vsmask.f32 4352 }
  0x14   : > { %5734 = vmatpush3.bf16.msra.mxu0 %v6610_v1  ;;  %5754 = vmatpush3.bf16.msra.mxu1 %v6610_v1  ;;  %s6636_s20 = sshll.u32 %s477_s29, 3  ;;  %s8121_s30 = smov (!%p483_p7, %s5007_s30), 0  ;;  %v555_v44 = vld [vmem:[%s8036_s3 + $0x40] sm:$0xff]  ;;  %v556_v45 = vld [vmem:[%s8036_s3 + $0x48] sm:$0xff]  ;;  %v557_v50 = vld [vmem:[%s8036_s3 + $0x50] sm:$0xff] }
  0x15   : > { %5735 = vmatprep.subr.bf16.mxu0 %v6621_v2  ;;  %5755 = vmatprep.subr.bf16.mxu1 %v6621_v2  ;;  %s6642_s23 = scalar_lea.vmem %s8033_s0, %s6636_s20  ;;  %p501_p8 = scmp.lt.s32.totalorder %s500_s22, 15  ;;  %v558_v51 = vld [vmem:[%s8036_s3 + $0x58] sm:$0xff]  ;;  %v559_v55 = vld [vmem:[%s8036_s3 + $0x60] sm:$0xff]  ;;  %v560_v56 = vld [vmem:[%s8036_s3 + $0x68] sm:$0xff]  ;;  %vm2003_vm1 = vsmask.f32 7424 }
  0x16   : > { %v727_v5 = vld [vmem:[%s6642_s23] sm:$0xff]  ;;  %v728_v6 = vld [vmem:[%s6642_s23 + $0x8] sm:$0xff]  ;;  %s485_s26 = smul.u32 3, %s8121_s30  ;;  %p571_p9 = scmp.gt.s32.totalorder %s6495_s13, 0  ;;  %v729_v22 = vld [vmem:[%s6642_s23 + $0x10] sm:$0xff] }
  0x17   : > { %v751_v7 = vpack.c.bf16 %v728_v6, %v727_v5  ;;  %s8123_s22 = smov (!%p501_p8, %s500_s22), 15  ;;  %p577_p12 = scmp.lt.s32.totalorder %s6495_s13, 1  ;;  %v730_v23 = vld [vmem:[%s6642_s23 + $0x18] sm:$0xff]  ;;  %v731_v25 = vld [vmem:[%s6642_s23 + $0x20] sm:$0xff]  ;;  %v732_v26 = vld [vmem:[%s6642_s23 + $0x28] sm:$0xff] }
  0x18   : > { %5736 = vmatpush3.bf16.msra.mxu0 %v6621_v2  ;;  %5756 = vmatpush3.bf16.msra.mxu1 %v6621_v2  ;;  %p488_p10 = scmp.lt.s32.totalorder %s485_s26, 47  ;;  %s503_s24 = smul.u32 3, %s8123_s22  ;;  %v752_v31 = vpack.c.bf16 %v730_v23, %v729_v22  ;;  %v753_v32 = vpack.c.bf16 %v732_v26, %v731_v25  ;;  %v733_v36 = vld [vmem:[%s6642_s23 + $0x30] sm:$0xff]  ;;  %v734_v37 = vld [vmem:[%s6642_s23 + $0x38] sm:$0xff]  ;;  %v735_v38 = vld [vmem:[%s6642_s23 + $0x40] sm:$0xff] }
  0x19   : > { %5737 = vmatprep.subr.bf16.mxu0 %v6634_v3  ;;  %5757 = vmatprep.subr.bf16.mxu1 %v6634_v3  ;;  %s572_s11 = scalar_select %p571_p9, 1.0, 0.0  ;;  %v736_v39 = vld [vmem:[%s6642_s23 + $0x48] sm:$0xff]  ;;  %v754_v42 = vpack.c.bf16 %v734_v37, %v733_v36  ;;  %v737_v46 = vld [vmem:[%s6642_s23 + $0x50] sm:$0xff]  ;;  %v738_v47 = vld [vmem:[%s6642_s23 + $0x58] sm:$0xff] }
  0x1a   : > { %5767 = vmatprep.mubr.bf16.mxu1 %v751_v7  ;;  %s8125_s26 = smov (!%p488_p10, %s485_s26), 47  ;;  %p506_p11 = scmp.lt.s32.totalorder %s503_s24, 47  ;;  %v755_v43 = vpack.c.bf16 %v736_v39, %v735_v38  ;;  %v739_v48 = vld [vmem:[%s6642_s23 + $0x60] sm:$0xff]  ;;  %v740_v49 = vld [vmem:[%s6642_s23 + $0x68] sm:$0xff]  ;;  %v6279_v52 = vld [vmem:[%s8039_s6 + $0x78] sm:$0xff]   ;;  %v756_v53 = vpack.c.bf16 %v738_v47, %v737_v46 }
  0x1b   : > { %v573_v12 = vstv %s572_s11  ;;  %s491_s25 = sadd.s32 %s6623_s27, %s8125_s26  ;;  %v757_v54 = vpack.c.bf16 %v740_v49, %v739_v48  ;;  %v741_v57 = vld [vmem:[%s6642_s23 + $0x70] sm:$0xff]  ;;  %v742_v58 = vld [vmem:[%s6642_s23 + $0x78] sm:$0xff]  ;;  %v743_v59 = vld [vmem:[%s6642_s23 + $0x80] sm:$0xff]  ;;  %s7948_s28 = scalar_lea.vmem %s8043_s10, %s6636_s20 }
  0x1c   : > { %5738 = vmatpush3.bf16.msra.mxu0 %v6634_v3  ;;  %5758 = vmatpush3.bf16.msra.mxu1 %v6634_v3  ;;  %v574_v13 = vmul.f32 %v573_v12, %v6663_v9  ;;  %v576_v14 = vmul.f32 %v573_v12, %v6668_v10  ;;  %s5008_s12 = sshll.u32 %s491_s25, 3  ;;  %v575_v19 = vmul.f32 %v573_v12, %v6684_v15  ;;  %s8127_s24 = smov (!%p506_p11, %s503_s24), 47  ;;  %v744_v60 = vld [vmem:[%s6642_s23 + $0x88] sm:$0xff]  ;;  %v561_v61 = vld [vmem:[%s8036_s3 + $0x70] sm:$0xff]  ;;  %v562_v62 = vld [vmem:[%s8036_s3 + $0x78] sm:$0xff] }
  0x1d   : > { %5739 = vmatprep.subr.bf16.mxu0 %v6653_v8  ;;  %5759 = vmatprep.subr.bf16.mxu1 %v6653_v8  ;;  %s493_s30 = scalar_lea.vmem %s8034_s1, %s5008_s12  ;;  %s509_s21 = sadd.s32 %s6623_s27, %s8127_s24  ;;  %v6280_v63 = vld [vmem:[%s8039_s6 + $0x70] sm:$0xff]   ;;  %v6281_v4 = vld [vmem:[%s8039_s6 + $0x68] sm:$0xff]   ;;  %v746_v6 = vld [vmem:[%s6642_s23 + $0x98] sm:$0xff] }
  0x1e   : > { %v583_v17 = vld [vmem:[%s493_s30] sm:$0xff]  ;;  %v584_v18 = vld [vmem:[%s493_s30 + $0x8] sm:$0xff]  ;;  %695 = vperm.xlu0 %6269, %v574_v13   ;;  %705 = vperm.xlu1 %6270, %v576_v14   ;;  %s5010_s29 = sshll.u32 %s509_s21, 3  ;;  %v585_v24 = vld [vmem:[%s493_s30 + $0x10] sm:$0xff] }
  0x1f   : > { %v586_v20 = vpack.c.bf16 %v584_v18, %v583_v17  ;;  %s6715_s26 = scalar_lea.vmem %s8035_s2, %s5010_s29  ;;  %v587_v30 = vpack.c.bf16 %v585_v24, %v585_v24  ;;  %v745_v5 = vld [vmem:[%s6642_s23 + $0x90] sm:$0xff]  ;;  %v566_v13 = vld [vmem:[%s8036_s3 + $0x98] sm:$0xff]  ;;  %v567_v18 = vld [vmem:[%s8036_s3 + $0xa0] sm:$0xff] }
  0x20   : > { %5740 = vmatpush3.bf16.msra.mxu0 %v6653_v8  ;;  %5760 = vmatpush3.bf16.msra.mxu1 %v6653_v8  ;;  %s6722_s27 = scalar_select %p577_p12, 1.0, 0.0  ;;  %v1180_v27 = vld [vmem:[%s6715_s26] sm:$0xff]  ;;  %v1181_v28 = vld [vmem:[%s6715_s26 + $0x8] sm:$0xff]  ;;  %v1182_v7 = vld [vmem:[%s6715_s26 + $0x10] sm:$0xff]  ;;  %v760_v14 = vpack.c.bf16 %v746_v6, %v745_v5 }
  0x21   : > { %5741 = vmatprep.subr.bf16.mxu0 %v6675_v11  ;;  %5761 = vmatprep.subr.bf16.mxu1 %v6675_v11  ;;  %v1183_v33 = vpack.c.bf16 %v1181_v28, %v1180_v27  ;;  %v565_v12 = vld [vmem:[%s8036_s3 + $0x90] sm:$0xff]  ;;  %v1184_v17 = vpack.c.bf16 %v1182_v7, %v1182_v7  ;;  %v750_v23 = vld [vmem:[%s6642_s23 + $0xb8] sm:$0xff]  ;;  %v6291_v36 = vld [vmem:[%s8039_s6 + $0x40] sm:$0xff]  }
  0x22   : > { %5747 = vmatprep.mubr.bf16.mxu0 %v586_v20  ;;  %700 = vperm.xlu0 %6269, %v575_v19   ;;  %v568_v19 = vld [vmem:[%s8036_s3 + $0xa8] sm:$0xff]  ;;  %v6282_v20 = vld [vmem:[%s8039_s6 + $0x60] sm:$0xff]   ;;  %v749_v22 = vld [vmem:[%s6642_s23 + $0xb0] sm:$0xff]  ;;  %v579_v26 = vstv %s6722_s27 }
  0x23   : > { %918 = vperm.xlu1 %6270, %v6663_v9   ;;  %v570_v24 = vld [vmem:[%s8036_s3 + $0xb8] sm:$0xff]  ;;  %v762_v25 = vpack.c.bf16 %v750_v23, %v749_v22  ;;  %v580_v27 = vmul.f32 %v579_v26, %v6663_v9  ;;  %v581_v28 = vmul.f32 %v579_v26, %v6684_v15  ;;  %v6297_v37 = vld [vmem:[%s8039_s6 + $0x8] sm:$0xff]   ;;  %v6301_v38 = vld [vmem:[%s8039_s6] sm:$0xff]  }
  0x24   : > { %5742 = vmatpush3.bf16.msra.mxu0 %v6675_v11  ;;  %5762 = vmatpush3.bf16.msra.mxu1 %v6675_v11  ;;  %v6283_v9 = vld [vmem:[%s8039_s6 + $0x58] sm:$0xff]  }
  0x25   : > { %5743 = vmatprep.subr.bf16.mxu0 %v6693_v16  ;;  %5763 = vmatprep.subr.bf16.mxu1 %v6693_v16  ;;  %v6887_v39 = vld [vmem:[%s8039_s6 + $0xb8] sm:$0xff]  }
  0x26   : > { %923 = vperm.xlu0 %6269, %v6684_v15   ;;  %v6289_v15 = vld [vmem:[%s8039_s6 + $0x20] sm:$0xff]  }
  0x27   : > { %928 = vperm.xlu1 %6270, %v6668_v10  }
  0x28   : > { %5744 = vmatpush3.bf16.msra.mxu0 %v6693_v16  ;;  %5764 = vmatpush3.bf16.msra.mxu1 %v6693_v16 }
  0x29   : > { %5745 = vmatprep.subr.bf16.mxu0 %v6708_v21  ;;  %5765 = vmatprep.subr.bf16.mxu1 %v6708_v21 }
  0x2a   : > { %933 = vperm.xlu0 %6269, %v550_v29   ;;  %v582_v29 = vmul.f32 %v579_v26, %v6668_v10  ;;  %v6287_v10 = vld [vmem:[%s8039_s6 + $0x28] sm:$0xff]  }
  0x2b   : > { %938 = vperm.xlu1 %6270, %v551_v34   ;;  %v6288_v34 = vld [vmem:[%s8039_s6 + $0x48] sm:$0xff]  }
  0x2c   : > { %5746 = vmatpush3.bf16.msra.mxu0 %v6708_v21  ;;  %5766 = vmatpush3.bf16.msra.mxu1 %v6708_v21 }
  0x2d   : > { %5791 = vmatprep.subr.bf16.mxu0 %v6604_v0  ;;  %5811 = vmatprep.subr.bf16.mxu1 %v6279_v52 }
  0x2e   : > { %943 = vperm.xlu0 %6269, %v552_v35   ;;  %v6292_v35 = vld [vmem:[%s8039_s6 + $0x10] sm:$0xff]  }
  0x2f   : > { %5748 = vmatmul.mubr.bf16.vlgmr.msra.gmra.mxu0 %v587_v30  ;;  %5768 = vmatmul.mubr.bf16.vlgmr.msra.gmra.mxu1 %v752_v31  ;;  %v6284_v30 = vld [vmem:[%s8039_s6 + $0x38] sm:$0xff]   ;;  %v6285_v31 = vld [vmem:[%s8039_s6 + $0x30] sm:$0xff]  }
  0x30   : > { %5792 = vmatpush3.bf16.msra.mxu0 %v6604_v0  ;;  %5771 = vmatprep.mubr.bf16.mxu1 %v753_v32  ;;  %v758_v0 = vpack.c.bf16 %v742_v58, %v741_v57  ;;  %v6286_v32 = vld [vmem:[%s8039_s6 + $0x50] sm:$0xff]   ;;  %v6917_v57 = vld [vmem:[%s8038_s5] ss:$0 sm:$0xff] }
  0x31   : > { %5793 = vmatprep.subr.bf16.mxu0 %v6610_v1  ;;  %5807 = vmatprep.mubr.bf16.mxu0 %v1183_v33  ;;  %v6290_v33 = vld [vmem:[%s8039_s6 + $0x18] sm:$0xff]  }
  0x32   : > { %948 = vperm.xlu1 %6270, %v553_v40   ;;  %953 = vperm.xlu0 %6269, %v554_v41   ;;  %v6893_v40 = vld [vmem:[%s8039_s6 + $0xf8] sm:$0xff]  }
  0x33   : > { %5812 = vmatpush3.bf16.msra.mxu1 %v6279_v52 }
  0x34   : > { %5794 = vmatpush3.bf16.msra.mxu0 %v6610_v1  ;;  %5813 = vmatprep.subr.bf16.mxu1 %v6280_v63  ;;  %v759_v1 = vpack.c.bf16 %v744_v60, %v743_v59 }
  0x35   : > { %5795 = vmatprep.subr.bf16.mxu0 %v6621_v2 }
  0x36   : > { %958 = vperm.xlu1 %6270, %v555_v44   ;;  %963 = vperm.xlu0 %6269, %v556_v45  }
  0x37   : > { %5772 = vmatmul.mubr.bf16.gmra.mxu1 %v754_v42 }
  0x38   : > { %5796 = vmatpush3.bf16.msra.mxu0 %v6621_v2  ;;  %5775 = vmatprep.mubr.bf16.mxu1 %v755_v43  ;;  %v563_v2 = vld [vmem:[%s8036_s3 + $0x80] sm:$0xff] }
  0x39   : > { %5797 = vmatprep.subr.bf16.mxu0 %v6634_v3  ;;  %5814 = vmatpush3.bf16.msra.mxu1 %v6280_v63 }
  0x3a   : > { %968 = vperm.xlu1 %6270, %v557_v50   ;;  %973 = vperm.xlu0 %6269, %v558_v51  }
  0x3b   : > { %5815 = vmatprep.subr.bf16.mxu1 %v6281_v4 }
  0x3c   : > { %5798 = vmatpush3.bf16.msra.mxu0 %v6634_v3  ;;  %v564_v3 = vld [vmem:[%s8036_s3 + $0x88] sm:$0xff] }
  0x3d   : > { %5799 = vmatprep.subr.bf16.mxu0 %v6653_v8  ;;  %5816 = vmatpush3.bf16.msra.mxu1 %v6281_v4 }
  0x3e   : > { %978 = vperm.xlu1 %6270, %v559_v55   ;;  %983 = vperm.xlu0 %6269, %v560_v56  }
  0x3f   : > { %5776 = vmatmul.mubr.bf16.gmra.mxu1 %v756_v53  ;;  %5817 = vmatprep.subr.bf16.mxu1 %v6282_v20 }
  0x40   : > { %5800 = vmatpush3.bf16.msra.mxu0 %v6653_v8  ;;  %5779 = vmatprep.mubr.bf16.mxu1 %v757_v54  ;;  %v747_v8 = vld [vmem:[%s6642_s23 + $0xa0] sm:$0xff] }
  0x41   : > { %5801 = vmatprep.subr.bf16.mxu0 %v6675_v11  ;;  %5818 = vmatpush3.bf16.msra.mxu1 %v6282_v20 }
  0x42   : > { %988 = vperm.xlu1 %6270, %v561_v61   ;;  %993 = vperm.xlu0 %6269, %v562_v62  }
  0x43   : > { %5819 = vmatprep.subr.bf16.mxu1 %v6283_v9 }
  0x44   : > { %5802 = vmatpush3.bf16.msra.mxu0 %v6675_v11  ;;  %v748_v11 = vld [vmem:[%s6642_s23 + $0xa8] sm:$0xff] }
  0x45   : > { %5803 = vmatprep.subr.bf16.mxu0 %v6693_v16  ;;  %5820 = vmatpush3.bf16.msra.mxu1 %v6283_v9 }
  0x46   : > { %998 = vperm.xlu1 %6270, %v563_v2   ;;  %1003 = vperm.xlu0 %6269, %v564_v3  }
  0x47   : > { %5780 = vmatmul.mubr.bf16.gmra.mxu1 %v758_v0  ;;  %5821 = vmatprep.subr.bf16.mxu1 %v6286_v32 }
  0x48   : > { %5804 = vmatpush3.bf16.msra.mxu0 %v6693_v16  ;;  %5783 = vmatprep.mubr.bf16.mxu1 %v759_v1  ;;  %v761_v16 = vpack.c.bf16 %v748_v11, %v747_v8 }
  0x49   : > { %5805 = vmatprep.subr.bf16.mxu0 %v6708_v21  ;;  %5822 = vmatpush3.bf16.msra.mxu1 %v6286_v32 }
  0x4a   : > { %1008 = vperm.xlu1 %6270, %v565_v12   ;;  %1013 = vperm.xlu0 %6269, %v566_v13  }
  0x4b   : > { %5823 = vmatprep.subr.bf16.mxu1 %v6288_v34 }
  0x4c   : > { %5806 = vmatpush3.bf16.msra.mxu0 %v6708_v21  ;;  %v569_v21 = vld [vmem:[%s8036_s3 + $0xb0] sm:$0xff] }
  0x4d   : > { %5851 = vmatprep.subr.bf16.mxu0 %v6284_v30  ;;  %5824 = vmatpush3.bf16.msra.mxu1 %v6288_v34 }
  0x4e   : > { %1018 = vperm.xlu1 %6270, %v567_v18   ;;  %1023 = vperm.xlu0 %6269, %v568_v19  }
  0x4f   : > { %5784 = vmatmul.mubr.bf16.gmra.mxu1 %v760_v14  ;;  %5808 = vmatmul.mubr.bf16.vlgmr.msra.gmra.mxu0 %v1184_v17 }
  0x50   : > { %5787 = vmatprep.mubr.bf16.mxu1 %v761_v16  ;;  %5852 = vmatpush3.bf16.msra.mxu0 %v6284_v30 }
  0x51   : > { %5853 = vmatprep.subr.bf16.mxu0 %v6285_v31  ;;  %5825 = vmatprep.subr.bf16.mxu1 %v6291_v36 }
  0x52   : > { %1028 = vperm.xlu1 %6270, %v569_v21   ;;  %1033 = vperm.xlu0 %6269, %v570_v24  }
  0x53   : > { %5826 = vmatpush3.bf16.msra.mxu1 %v6291_v36 }
  0x54   : > { %5854 = vmatpush3.bf16.msra.mxu0 %v6285_v31  ;;  %5891 = vmatprep.subr.bf16.mxu1 %v6887_v39 }
  0x55   : > { %5855 = vmatprep.subr.bf16.mxu0 %v6287_v10 }
  0x56   : > { %1238 = vperm.xlu1 %6270, %v580_v27   ;;  %1243 = vperm.xlu0 %6269, %v581_v28  }
  0x57   : > { %5788 = vmatmul.mubr.bf16.gmra.mxu1 %v762_v25 }
  0x58   : > { %5856 = vmatpush3.bf16.msra.mxu0 %v6287_v10 }
  0x59   : > { %5857 = vmatprep.subr.bf16.mxu0 %v6289_v15 }
  0x5a   : > { %1248 = vperm.xlu1 %6270, %v582_v29  }
  0x5c   : > { %5858 = vmatpush3.bf16.msra.mxu0 %v6289_v15 }
  0x5d   : > { %5859 = vmatprep.subr.bf16.mxu0 %v6290_v33 }
  0x60   : > { %5860 = vmatpush3.bf16.msra.mxu0 %v6290_v33 }
  0x61   : > { %5861 = vmatprep.subr.bf16.mxu0 %v6292_v35 }
  0x64   : > { %5862 = vmatpush3.bf16.msra.mxu0 %v6292_v35 }
  0x65   : > { %5863 = vmatprep.subr.bf16.mxu0 %v6297_v37 }
  0x68   : > { %5864 = vmatpush3.bf16.msra.mxu0 %v6297_v37 }
  0x69   : > { %5865 = vmatprep.subr.bf16.mxu0 %v6301_v38 }
  0x6c   : > { %5866 = vmatpush3.bf16.msra.mxu0 %v6301_v38 }
  0x6d   : > { %5931 = vmatprep.subr.bf16.mxu0 %v6893_v40 }
  0x99   : > { %v706_v41 = vpop.permute.xlu1 %705  ;;  %v696_v43 = vpop.permute.xlu0 %695 }
  0x9d   : > { %v701_v45 = vpop.permute.xlu0 %700 }
  0x9e   : > { %v919_v42 = vpop.permute.xlu1 %918 }
  0xa1   : > { %v924_v47 = vpop.permute.xlu0 %923 }
  0xa2   : > { %v929_v44 = vpop.permute.xlu1 %928 }
  0xa5   : > { %v934_v49 = vpop.permute.xlu0 %933 }
  0xa6   : > { %v6896_v46 = vpop.permute.xlu1 %938 }
  0xa9   : > { %v6902_v51 = vpop.permute.xlu0 %943 }
  0xad   : > { %v6898_v48 = vpop.permute.xlu1 %948  ;;  %v6906_v53 = vpop.permute.xlu0 %953 }
  0xb1   : > { %v6900_v50 = vpop.permute.xlu1 %958  ;;  %v6910_v55 = vpop.permute.xlu0 %963 }
  0xb5   : > { %v6904_v52 = vpop.permute.xlu1 %968  ;;  %v6919_v60 = vpop.permute.xlu0 %973 }
  0xb9   : > { %v6908_v54 = vpop.permute.xlu1 %978  ;;  %v6928_v14 = vpop.permute.xlu0 %983 }
  0xbd   : > { %v6912_v56 = vpop.permute.xlu1 %988  ;;  %v6936_v34 = vpop.permute.xlu0 %993 }
  0xc1   : > { %v6925_v5 = vpop.permute.xlu1 %998 }
  0xc5   : > { %v6933_v30 = vpop.permute.xlu1 %1008 }
  0xef   : > { %v5749_v58 = vpop.f32.mrf.mxu0  ;;  %v5769_v59 = vpop.f32.mrf.mxu1 }
  0xf0   : > { %v685_v61 = vadd.f32 %v5749_v58, %v6917_v57  ;;  %v806_v62 = vadd.f32 %v5769_v59, %v6917_v57  ;;  %v1270_v59 = vld [vmem:[#allocation2] sm:$0x8] }
  0xf1   : > { %v676_v63 = vpop.f32.mrf.mxu0  ;;  %v797_v0 = vpop.f32.mrf.mxu1 }
  0xf2   : > { %v677_v1 = vadd.f32 %v6917_v57, %v676_v63  ;;  %v798_v2 = vadd.f32 %v6917_v57, %v797_v0  ;;  %v692_v7 = vmax.f32 %v685_v61, 0.0  ;;  %v894_v8 = vmax.f32 %v806_v62, 0.0 }
  0xf3   : > { %v5750_v3 = vpop.f32.mrf.mxu0  ;;  %v5770_v4 = vpop.f32.mrf.mxu1 }
  0xf4   : > { %v690_v6 = vmax.f32 %v677_v1, 0.0  ;;  %v809_v11 = vadd.f32 %v5770_v4, %v6917_v57  ;;  %v892_v16 = vmax.f32 %v798_v2, 0.0  ;;  %v710_v25 = vmul.f32 %v706_v41, %v692_v7  ;;  %v6945_v1 = vpop.permute.xlu0 %1003 }
  0xf5   : > { %v679_v12 = vpop.f32.mrf.mxu0  ;;  %v800_v13 = vpop.f32.mrf.mxu1  ;;  %v1038_v26 = vmul.f32 %v929_v44, %v894_v8 }
  0xf6   : > { %v708_v17 = vmul.f32 %v696_v43, %v690_v6  ;;  %v680_v18 = vadd.f32 %v6917_v57, %v679_v12  ;;  %v801_v19 = vadd.f32 %v6917_v57, %v800_v13  ;;  %v895_v20 = vmax.f32 %v809_v11, 0.0 }
  0xf7   : > { %v5773_v22 = vpop.f32.mrf.mxu1  ;;  %v1036_v31 = vmul.f32 %v919_v42, %v892_v16 }
  0xf8   : > { %v5377_v23 = vpack.c.bf16 %v708_v17, %v708_v17  ;;  %v691_v21 = vmax.f32 %v680_v18, 0.0  ;;  %v893_v24 = vmax.f32 %v801_v19, 0.0  ;;  %v1039_v27 = vmul.f32 %v934_v49, %v895_v20 }
  0xf9   : > { %v822_v28 = vadd.f32 %v5773_v22, %v6917_v57  ;;  %v813_v29 = vpop.f32.mrf.mxu1 }
  0xfa   : > { %724 = vst [vmem:[#allocation2 + $0x4] sm:$0xf] %v5377_v23  ;;  %v709_v9 = vmul.f32 %v701_v45, %v691_v21  ;;  %v1037_v10 = vmul.f32 %v924_v47, %v893_v24  ;;  %v814_v15 = vadd.f32 %v6917_v57, %v813_v29  ;;  %v5420_v32 = vpack.c.bf16 %v1039_v27, %v1038_v26  ;;  %v6940_v47 = vpop.permute.xlu1 %1018 }
  0xfb   : > { %v5774_v33 = vpop.f32.mrf.mxu1  ;;  %v898_v37 = vmax.f32 %v822_v28, 0.0 }
  0xfc   : > { %v5410_v35 = vpack.c.bf16 %v710_v25, %v709_v9  ;;  %v5415_v36 = vpack.c.bf16 %v1037_v10, %v1036_v31  ;;  %5479 = vst [vmem:[#allocation2 + $0x18] sm:$0xff] %v5420_v32   ;;  %v825_v38 = vadd.f32 %v5774_v33, %v6917_v57  ;;  %v896_v43 = vmax.f32 %v814_v15, 0.0  ;;  %v6964_v10 = vpop.permute.xlu0 %1013 }
  0xfd   : > { %v816_v41 = vpop.f32.mrf.mxu1  ;;  %v1042_v61 = vmul.f32 %v6898_v48, %v898_v37 }
  0xfe   : > { %5477 = vst [vmem:[#allocation2 + $0x8] sm:$0xff] %v5410_v35   ;;  %5478 = vst [vmem:[#allocation2 + $0x10] sm:$0xff] %v5415_v36   ;;  %v817_v42 = vadd.f32 %v6917_v57, %v816_v41  ;;  %v899_v44 = vmax.f32 %v825_v38, 0.0  ;;  %v1040_v2 = vmul.f32 %v6896_v46, %v896_v43  ;;  %v6957_v22 = vpop.permute.xlu1 %1028 }
  0xff   : > { %v5777_v45 = vpop.f32.mrf.mxu1 }
 0x100   : > { %v897_v49 = vmax.f32 %v817_v42, 0.0  ;;  %v838_v58 = vadd.f32 %v5777_v45, %v6917_v57  ;;  %v1043_v62 = vmul.f32 %v6906_v53, %v899_v44 }
 0x101   : > { %v829_v63 = vpop.f32.mrf.mxu1  ;;  %v1271_v0 = vld [vmem:[#allocation2 + $0x4] sm:$0xf] }
 0x102   : > { %v1041_v3 = vmul.f32 %v6902_v51, %v897_v49  ;;  %v902_v4 = vmax.f32 %v838_v58, 0.0  ;;  %v830_v6 = vadd.f32 %v6917_v57, %v829_v63  ;;  %v5430_v7 = vpack.c.bf16 %v1043_v62, %v1042_v61  ;;  %v6307_v62 = vld [vmem:[%s8039_s6 + $0xa8] sm:$0xff]   ;;  %v6974_v63 = vpop.permute.xlu1 %1238 }
 0x103   : > { %v5778_v8 = vpop.f32.mrf.mxu1  ;;  %v5087_v11 = vcombine.low %v1270_v59, %v1271_v0  ;;  %v1276_v17 = vld [vmem:[#allocation2 + $0x18] sm:$0xf]  ;;  %v6951_v53 = vld [vmem:[#allocation2 + $0x1c] sm:$0xf] }
 0x104   : > { %v5425_v12 = vpack.c.bf16 %v1041_v3, %v1040_v2  ;;  %v900_v13 = vmax.f32 %v830_v6, 0.0  ;;  %v841_v48 = vadd.f32 %v5778_v8, %v6917_v57  ;;  %5481 = vst [vmem:[#allocation2 + $0x28] sm:$0xff] %v5430_v7   ;;  %v1046_v16 = vmul.f32 %v6904_v52, %v902_v4  ;;  %v6302_v52 = vld [vmem:[%s8039_s6 + $0xb0] sm:$0xff]  }
 0x105   : > { %v832_v18 = vpop.f32.mrf.mxu1  ;;  %v1272_v46 = vld [vmem:[#allocation2 + $0x8] sm:$0xf]  ;;  %v1273_v19 = vld [vmem:[#allocation2 + $0xc] sm:$0xf]  ;;  %v1274_v51 = vld [vmem:[#allocation2 + $0x10] sm:$0xf]  ;;  %v6955_v20 = vcombine.low %v1276_v17, %v6951_v53 }
 0x106   : > { %5480 = vst [vmem:[#allocation2 + $0x20] sm:$0xff] %v5425_v12   ;;  %v1044_v23 = vmul.f32 %v6900_v50, %v900_v13  ;;  %v903_v21 = vmax.f32 %v841_v48, 0.0  ;;  %v833_v24 = vadd.f32 %v6917_v57, %v832_v18  ;;  %v5067_v25 = vcombine.low %v1271_v0, %v1272_v46  ;;  %v1275_v26 = vld [vmem:[#allocation2 + $0x14] sm:$0xf]  ;;  %v6978_v12 = vpop.permute.xlu0 %1023 }
 0x107   : > { %v5781_v27 = vpop.f32.mrf.mxu1  ;;  %v5068_v28 = vcombine.low %v1273_v19, %v1274_v51  ;;  %v5088_v29 = vcombine.low %v1272_v46, %v1273_v19  ;;  %v1594_v31 = vshrl.u32 %v5087_v11, 16  ;;  %v1597_v9 = vshll.u32 %v5087_v11, 16 }
 0x108   : > { %v1047_v15 = vmul.f32 %v6919_v60, %v903_v21  ;;  %v901_v50 = vmax.f32 %v833_v24, 0.0  ;;  %v854_v32 = vadd.f32 %v5781_v27, %v6917_v57  ;;  %5827 = vmatprep.mubr.bf16.mxu1 %v5067_v25  ;;  %v5069_v33 = vcombine.low %v1275_v26, %v1276_v17 }
 0x109   : > { %v1602_v35 = vshrl.u32 %v5088_v29, 16  ;;  %v1605_v36 = vshll.u32 %v5088_v29, 16  ;;  %v845_v37 = vpop.f32.mrf.mxu1  ;;  %5828 = vmatmul.mubr.bf16.vlgmr.msra.gmra.mxu1 %v5068_v28  ;;  %v5089_v38 = vcombine.low %v1274_v51, %v1275_v26  ;;  %v1596_v41 = vrot.slane %v1594_v31, 3 }
 0x10a   : > { %v5440_v43 = vpack.c.bf16 %v1047_v15, %v1046_v16  ;;  %v1045_v42 = vmul.f32 %v6910_v55, %v901_v50  ;;  %v906_v44 = vmax.f32 %v854_v32, 0.0  ;;  %v846_v45 = vadd.f32 %v6917_v57, %v845_v37  ;;  %5892 = vmatpush3.bf16.msra.mxu1 %v6887_v39  ;;  %5831 = vmatprep.mubr.bf16.mxu1 %v5069_v33 }
 0x10b   : > { %v1611_v60 = vshrl.u32 %v5089_v38, 16  ;;  %v1614_v49 = vshll.u32 %v5089_v38, 16  ;;  %v5782_v58 = vpop.f32.mrf.mxu1  ;;  %5893 = vmatprep.subr.bf16.mxu1 %v6302_v52  ;;  %v1599_v59 = vrot.slane %v1597_v9, 4  ;;  %v1604_v61 = vrot.slane %v1602_v35, 3  ;;  %v1280_v33 = vld [vmem:[#allocation2 + $0x28] sm:$0xf] }
 0x10c   : > { %5483 = vst [vmem:[#allocation2 + $0x38] sm:$0xff] %v5440_v43   ;;  %v5435_v55 = vpack.c.bf16 %v1045_v42, %v1044_v23  ;;  %v1050_v0 = vmul.f32 %v6912_v56, %v906_v44  ;;  %v904_v2 = vmax.f32 %v846_v45, 0.0  ;;  %v857_v39 = vadd.f32 %v5782_v58, %v6917_v57  ;;  %v6313_v42 = vld [vmem:[%s8039_s6 + $0x98] sm:$0xff]   ;;  %v7004_v44 = vpop.permute.xlu0 %1033 }
 0x10d   : > { %v1613_v3 = vrot.slane %v1611_v60, 3  ;;  %v1616_v4 = vrot.slane %v1614_v49, 4  ;;  %v848_v6 = vpop.f32.mrf.mxu1  ;;  %v1600_v7 = vor.u32 %v1599_v59, %v1596_v41  ;;  %v1607_v8 = vrot.slane %v1605_v36, 4  ;;  %v1278_v11 = vld [vmem:[#allocation2 + $0x20] sm:$0xf] }
 0x10e   : > { %5482 = vst [vmem:[#allocation2 + $0x30] sm:$0xff] %v5435_v55   ;;  %v1048_v13 = vmul.f32 %v6908_v54, %v904_v2  ;;  %v907_v48 = vmax.f32 %v857_v39, 0.0  ;;  %v849_v17 = vadd.f32 %v6917_v57, %v848_v6  ;;  %5894 = vmatpush3.bf16.msra.mxu1 %v6302_v52  ;;  %v5070_v56 = vcombine.low %v6951_v53, %v1278_v11  ;;  %v1279_v26 = vld [vmem:[#allocation2 + $0x24] sm:$0xf]  ;;  %v1281_v39 = vld [vmem:[#allocation2 + $0x2c] sm:$0xf] }
 0x10f   : > { %v5785_v16 = vpop.f32.mrf.mxu1  ;;  %v5809_v18 = vpop.f32.mrf.mxu0  ;;  %v1608_v46 = vor.u32 %v1607_v8, %v1604_v61  ;;  %v1617_v19 = vor.u32 %v1616_v4, %v1613_v3  ;;  %v1620_v51 = vshrl.u32 %v6955_v20, 16  ;;  %v1623_v23 = vshll.u32 %v6955_v20, 16  ;;  %5895 = vmatprep.subr.bf16.mxu1 %v6307_v62  ;;  %v6312_v53 = vld [vmem:[%s8039_s6 + $0xa0] sm:$0xff]  }
 0x110   : > { %v1051_v21 = vmul.f32 %v6936_v34, %v907_v48  ;;  %v905_v24 = vmax.f32 %v849_v17, 0.0  ;;  %v870_v54 = vadd.f32 %v5785_v16, %v6917_v57  ;;  %v1228_v25 = vadd.f32 %v5809_v18, %v6917_v57  ;;  %v1249_v34 = vpop.permute.xlu1 %1248 }
 0x111   : > { %v1609_v52 = vsel %vm1592_vm0, %v1600_v7, %v1608_v46  ;;  %v1618_v27 = vsel %vm1592_vm0, %v1608_v46, %v1617_v19  ;;  %v861_v28 = vpop.f32.mrf.mxu1  ;;  %v1219_v29 = vpop.f32.mrf.mxu0  ;;  %5832 = vmatmul.mubr.bf16.gmra.mxu1 %v5070_v56  ;;  %v1622_v20 = vrot.slane %v1620_v51, 3  ;;  %v1625_v31 = vrot.slane %v1623_v23, 4  ;;  %v6320_v56 = vld [vmem:[%s8039_s6 + $0x90] sm:$0xff]  }
 0x112   : > { %v5450_v9 = vpack.c.bf16 %v1051_v21, %v1050_v0  ;;  %v1049_v15 = vmul.f32 %v6928_v14, %v905_v24  ;;  %v910_v50 = vmax.f32 %v870_v54, 0.0  ;;  %v1235_v32 = vmax.f32 %v1228_v25, 0.0  ;;  %5867 = vmatprep.mubr.bf16.mxu0 %v1609_v52  ;;  %5896 = vmatpush3.bf16.msra.mxu1 %v6307_v62  ;;  %v6319_v14 = vld [vmem:[%s8039_s6 + $0xf0] sm:$0xff]   ;;  %v1244_v54 = vpop.permute.xlu0 %1243 }
 0x113   : > { %5868 = vmatmul.mubr.bf16.vlgmr.msra.gmra.mxu0 %v1618_v27  ;;  %v862_v35 = vadd.f32 %v6917_v57, %v861_v28  ;;  %v1220_v36 = vadd.f32 %v6917_v57, %v1219_v29  ;;  %v6996_v37 = vor.u32 %v1625_v31, %v1622_v20  ;;  %v5071_v38 = vcombine.low %v1279_v26, %v1280_v33  ;;  %v5786_v41 = vpop.f32.mrf.mxu1  ;;  %v5810_v43 = vpop.f32.mrf.mxu0  ;;  %v1284_v20 = vld [vmem:[#allocation2 + $0x38] sm:$0xf] }
 0x114   : > { %5485 = vst [vmem:[#allocation2 + $0x48] sm:$0xff] %v5450_v9   ;;  %v5445_v45 = vpack.c.bf16 %v1049_v15, %v1048_v13  ;;  %v7007_v60 = vmul.f32 %v6933_v30, %v910_v50  ;;  %v1253_v49 = vmul.f32 %v1249_v34, %v1235_v32  ;;  %v5091_v58 = vcombine.low %v1278_v11, %v1279_v26  ;;  %v7016_v30 = vld [vmem:[%s8039_s6 + $0xe8] sm:$0xff]   ;;  %v1285_v32 = vld [vmem:[#allocation2 + $0x3c] sm:$0xf] }
 0x115   : > { %5897 = vmatprep.subr.bf16.mxu1 %v6312_v53  ;;  %v908_v59 = vmax.f32 %v862_v35, 0.0  ;;  %v1233_v61 = vmax.f32 %v1220_v36, 0.0  ;;  %v1627_v62 = vsel %vm1592_vm0, %v1617_v19, %v6996_v37  ;;  %5835 = vmatprep.mubr.bf16.mxu1 %v5071_v38  ;;  %v873_v55 = vadd.f32 %v5786_v41, %v6917_v57  ;;  %v864_v0 = vpop.f32.mrf.mxu1  ;;  %v1222_v2 = vpop.f32.mrf.mxu0  ;;  %v1282_v8 = vld [vmem:[#allocation2 + $0x30] sm:$0xf]  ;;  %v1283_v24 = vld [vmem:[#allocation2 + $0x34] sm:$0xf] }
 0x116   : > { %5932 = vmatpush3.bf16.msra.mxu0 %v6893_v40  ;;  %5484 = vst [vmem:[#allocation2 + $0x40] sm:$0xff] %v5445_v45   ;;  %v5406_v3 = vpack.c.bf16 %v1253_v49, %v1253_v49  ;;  %5871 = vmatprep.mubr.bf16.mxu0 %v1627_v62  ;;  %v1629_v4 = vshrl.u32 %v5091_v58, 16  ;;  %v1632_v6 = vshll.u32 %v5091_v58, 16  ;;  %v865_v7 = vadd.f32 %v6917_v57, %v864_v0 }
 0x117   : > { %5898 = vmatpush3.bf16.msra.mxu1 %v6312_v53  ;;  %v1052_v11 = vmul.f32 %v6925_v5, %v908_v59  ;;  %v1251_v13 = vmul.f32 %v6974_v63, %v1233_v61  ;;  %v911_v48 = vmax.f32 %v873_v55, 0.0  ;;  %v1223_v40 = vadd.f32 %v6917_v57, %v1222_v2  ;;  %v5789_v17 = vpop.f32.mrf.mxu1  ;;  %5933 = vmatprep.subr.bf16.mxu0 %v6319_v14  ;;  %v6332_v55 = vld [vmem:[%s8039_s6 + $0x80] sm:$0xff]  }
 0x118   : > { %5899 = vmatprep.subr.bf16.mxu1 %v6313_v42  ;;  %1269 = vst [vmem:[#allocation2 + $0x78] sm:$0xf] %v5406_v3  ;;  %v909_v16 = vmax.f32 %v865_v7, 0.0  ;;  %v886_v18 = vadd.f32 %v5789_v17, %v6917_v57  ;;  %v1631_v46 = vrot.slane %v1629_v4, 3  ;;  %v1634_v19 = vrot.slane %v1632_v6, 4 }
 0x119   : > { %v1055_v5 = vmul.f32 %v6964_v10, %v911_v48  ;;  %v1234_v51 = vmax.f32 %v1223_v40, 0.0  ;;  %v877_v63 = vpop.f32.mrf.mxu1  ;;  %v5072_v23 = vcombine.low %v1281_v39, %v1282_v8  ;;  %v5092_v21 = vcombine.low %v1280_v33, %v1281_v39  ;;  %v6327_v33 = vld [vmem:[%s8039_s6 + $0xe0] sm:$0xff]  }
 0x11a   : > { %5934 = vmatpush3.bf16.msra.mxu0 %v6319_v14  ;;  %v1053_v25 = vmul.f32 %v6945_v1, %v909_v16  ;;  %v914_v26 = vmax.f32 %v886_v18, 0.0  ;;  %v1635_v53 = vor.u32 %v1634_v19, %v1631_v46  ;;  %v878_v52 = vadd.f32 %v6917_v57, %v877_v63  ;;  %v6326_v1 = vld [vmem:[%s8039_s6 + $0x88] sm:$0xff]  }
 0x11b   : > { %5900 = vmatpush3.bf16.msra.mxu1 %v6313_v42  ;;  %5935 = vmatprep.subr.bf16.mxu0 %v7016_v30  ;;  %v5460_v27 = vpack.c.bf16 %v1055_v5, %v7007_v60  ;;  %v1252_v28 = vmul.f32 %v1244_v54, %v1234_v51  ;;  %v1638_v10 = vshrl.u32 %v5092_v21, 16  ;;  %v1641_v29 = vshll.u32 %v5092_v21, 16  ;;  %v5790_v31 = vpop.f32.mrf.mxu1  ;;  %v1288_v49 = vld [vmem:[#allocation2 + $0x48] sm:$0xf] }
 0x11c   : > { %5836 = vmatmul.mubr.bf16.gmra.mxu1 %v5072_v23  ;;  %5901 = vmatprep.subr.bf16.mxu1 %v6320_v56  ;;  %v5455_v34 = vpack.c.bf16 %v1053_v25, %v1052_v11  ;;  %v7035_v9 = vmul.f32 %v6957_v22, %v914_v26  ;;  %v1636_v15 = vsel %vm1592_vm0, %v6996_v37, %v1635_v53  ;;  %v912_v50 = vmax.f32 %v878_v52, 0.0  ;;  %v6333_v52 = vld [vmem:[#allocation2 + $0x4] sm:$0xff]  }
 0x11d   : > { %5487 = vst [vmem:[#allocation2 + $0x58] sm:$0xff] %v5460_v27   ;;  %v5475_v35 = vpack.c.bf16 %v1252_v28, %v1251_v13  ;;  %5872 = vmatmul.mubr.bf16.gmra.mxu0 %v1636_v15  ;;  %v1640_v36 = vrot.slane %v1638_v10, 3  ;;  %v1643_v38 = vrot.slane %v1641_v29, 4  ;;  %v5073_v41 = vcombine.low %v1283_v24, %v1284_v20  ;;  %v880_v43 = vpop.f32.mrf.mxu1  ;;  %v1286_v42 = vld [vmem:[#allocation2 + $0x40] sm:$0xf]  ;;  %v6335_v27 = vld [vmem:[%s8039_s6 + $0xd0] sm:$0xff]  }
 0x11e   : > { %v1287_v14 = vld [vmem:[#allocation2 + $0x44] sm:$0xf]  ;;  %5486 = vst [vmem:[#allocation2 + $0x50] sm:$0xff] %v5455_v34   ;;  %v1056_v22 = vmul.f32 %v6940_v47, %v912_v50  ;;  %v5093_v45 = vcombine.low %v1282_v8, %v1283_v24  ;;  %v889_v37 = vadd.f32 %v5790_v31, %v6917_v57  ;;  %v881_v60 = vadd.f32 %v6917_v57, %v880_v43  ;;  %v6328_v57 = vld [vmem:[%s8039_s6 + $0xd8] sm:$0xff]   ;;  %v1289_v8 = vld [vmem:[#allocation2 + $0x4c] sm:$0xf] }
 0x11f   : > { %5902 = vmatpush3.bf16.msra.mxu1 %v6320_v56  ;;  %5490 = vst [vmem:[#allocation2 + $0x70] sm:$0xff] %v5475_v35   ;;  %v1644_v58 = vor.u32 %v1643_v38, %v1640_v36  ;;  %5839 = vmatprep.mubr.bf16.mxu1 %v5073_v41  ;;  %v5074_v59 = vcombine.low %v1285_v32, %v1286_v42  ;;  %v2317_v34 = vld [vmem:[#allocation2 + $0xc] sm:$0x8]  ;;  %v2007_v35 = vshll.u32 %v6333_v52, 16  ;;  %v7075_v38 = vld [vmem:[#allocation2 + $0x10] sm:$0xf] }
 0x120   : > { %v5094_v61 = vcombine.low %v1284_v20, %v1285_v32  ;;  %v5075_v62 = vcombine.low %v1287_v14, %v1288_v49  ;;  %v1647_v0 = vshrl.u32 %v5093_v45, 16  ;;  %v1650_v2 = vshll.u32 %v5093_v45, 16  ;;  %5936 = vmatpush3.bf16.msra.mxu0 %v7016_v30  ;;  %5903 = vmatprep.subr.bf16.mxu1 %v6326_v1  ;;  %v7058_v30 = vld [vmem:[%s8039_s6 + $0x138] sm:$0xff]   ;;  %v6336_v36 = vld [vmem:[%s8039_s6 + $0xc8] sm:$0xff]   ;;  %v7077_v41 = vld [vmem:[#allocation2 + $0x14] sm:$0xf] }
 0x121   : > { %v915_v47 = vmax.f32 %v889_v37, 0.0  ;;  %v913_v39 = vmax.f32 %v881_v60, 0.0  ;;  %v1645_v3 = vsel %vm1592_vm0, %v1635_v53, %v1644_v58  ;;  %v5095_v7 = vcombine.low %v1286_v42, %v1287_v14  ;;  %5937 = vmatprep.subr.bf16.mxu0 %v6327_v33  ;;  %v7081_v45 = vld [vmem:[#allocation2 + $0x18] sm:$0xf] }
 0x122   : > { %v1656_v4 = vshrl.u32 %v5094_v61, 16  ;;  %v1659_v6 = vshll.u32 %v5094_v61, 16  ;;  %5875 = vmatprep.mubr.bf16.mxu0 %v1645_v3  ;;  %v1649_v48 = vrot.slane %v1647_v0, 3  ;;  %v1652_v40 = vrot.slane %v1650_v2, 4 }
 0x123   : > { %v1059_v11 = vmul.f32 %v7004_v44, %v915_v47  ;;  %v1057_v13 = vmul.f32 %v6978_v12, %v913_v39  ;;  %5904 = vmatpush3.bf16.msra.mxu1 %v6326_v1  ;;  %v1665_v16 = vshrl.u32 %v5095_v7, 16  ;;  %v1668_v18 = vshll.u32 %v5095_v7, 16  ;;  %v7069_v1 = vld [vmem:[#allocation2 + $0xc] sm:$0xff]   ;;  %v6342_v47 = vld [vmem:[%s8039_s6 + $0xc0] sm:$0xff]  }
 0x124   : > { %5840 = vmatmul.mubr.bf16.gmra.mxu1 %v5074_v59  ;;  %v1658_v17 = vrot.slane %v1656_v4, 3  ;;  %v1661_v56 = vrot.slane %v1659_v6, 4  ;;  %5905 = vmatprep.subr.bf16.mxu1 %v6332_v55  ;;  %v1653_v44 = vor.u32 %v1652_v40, %v1649_v48  ;;  %v5096_v12 = vcombine.low %v1288_v49, %v1289_v8  ;;  %v1292_v5 = vld [vmem:[#allocation2 + $0x58] sm:$0xf]  ;;  %v7061_v51 = vld [vmem:[#allocation2 + $0x5c] sm:$0xf] }
 0x125   : > { %v5470_v46 = vpack.c.bf16 %v1059_v11, %v7035_v9  ;;  %v5465_v19 = vpack.c.bf16 %v1057_v13, %v1056_v22  ;;  %5843 = vmatprep.mubr.bf16.mxu1 %v5075_v62  ;;  %v1667_v23 = vrot.slane %v1665_v16, 3  ;;  %v1670_v21 = vrot.slane %v1668_v18, 4  ;;  %v1290_v24 = vld [vmem:[#allocation2 + $0x50] sm:$0xf]  ;;  %v1291_v54 = vld [vmem:[#allocation2 + $0x54] sm:$0xf]  ;;  %5938 = vmatpush3.bf16.msra.mxu0 %v6327_v33 }
 0x126   : > { %v1662_v63 = vor.u32 %v1661_v56, %v1658_v17  ;;  %v1654_v25 = vsel %vm1592_vm0, %v1644_v58, %v1653_v44  ;;  %v1674_v26 = vshrl.u32 %v5096_v12, 16  ;;  %v1677_v53 = vshll.u32 %v5096_v12, 16  ;;  %5939 = vmatprep.subr.bf16.mxu0 %v6328_v57  ;;  %v7079_v22 = vld [vmem:[#allocation2 + $0x14] sm:$0xff]   ;;  %v7093_v6 = vld [vmem:[#allocation2 + $0x1c] sm:$0xff]  }
 0x127   : > { %5489 = vst [vmem:[#allocation2 + $0x68] sm:$0xff] %v5470_v46   ;;  %5488 = vst [vmem:[#allocation2 + $0x60] sm:$0xff] %v5465_v19   ;;  %5906 = vmatpush3.bf16.msra.mxu1 %v6332_v55  ;;  %5876 = vmatmul.mubr.bf16.gmra.mxu0 %v1654_v25  ;;  %v5076_v10 = vcombine.low %v1289_v8, %v1290_v24  ;;  %v5097_v29 = vcombine.low %v1290_v24, %v1291_v54  ;;  %v2009_v49 = vrot.slane %v2007_v35, 1  ;;  %v7096_v16 = vld [vmem:[#allocation2 + $0x1c] sm:$0xf] }
 0x128   : > { %v1663_v28 = vsel %vm1592_vm0, %v1653_v44, %v1662_v63  ;;  %v5098_v20 = vcombine.low %v1292_v5, %v7061_v51  ;;  %v1671_v31 = vor.u32 %v1670_v21, %v1667_v23  ;;  %5971 = vmatprep.subr.bf16.mxu1 %v7058_v30  ;;  %v1676_v9 = vrot.slane %v1674_v26, 3  ;;  %v7098_v18 = vld [vmem:[#allocation2 + $0x20] sm:$0xf]  ;;  %v7100_v19 = vld [vmem:[#allocation2 + $0x24] sm:$0xf]  ;;  %v7105_v44 = vld [vmem:[%s8039_s6 + $0x178] sm:$0xff]  }
 0x129   : > { %5879 = vmatprep.mubr.bf16.mxu0 %v1663_v28  ;;  %v1679_v15 = vrot.slane %v1677_v53, 4  ;;  %v1683_v50 = vshrl.u32 %v5097_v29, 16  ;;  %v1686_v32 = vshll.u32 %v5097_v29, 16  ;;  %5940 = vmatpush3.bf16.msra.mxu0 %v6328_v57  ;;  %v5077_v33 = vcombine.low %v1291_v54, %v1292_v5  ;;  %v7110_v23 = vld [vmem:[#allocation2 + $0x24] sm:$0xff]  }
 0x12a   : > { %5941 = vmatprep.subr.bf16.mxu0 %v6335_v27  ;;  %v1692_v42 = vshrl.u32 %v5098_v20, 16  ;;  %v1695_v14 = vshll.u32 %v5098_v20, 16  ;;  %v1672_v37 = vsel %vm1592_vm0, %v1662_v63, %v1671_v31  ;;  %v2005_v61 = vshrl.u32 %v6333_v52, 16  ;;  %v7112_v21 = vld [vmem:[#allocation2 + $0x28] sm:$0xf] }
 0x12b   : > { %v1685_v43 = vrot.slane %v1683_v50, 3  ;;  %v1688_v60 = vrot.slane %v1686_v32, 4  ;;  %v1680_v58 = vor.u32 %v1679_v15, %v1676_v9  ;;  %v2012_v62 = vshll.u32 %v7069_v1, 16  ;;  %v6343_v32 = vld [vmem:[%s8039_s6 + $0x130] sm:$0xff]  }
 0x12c   : > { %5844 = vmatmul.mubr.bf16.gmra.mxu1 %v5076_v10  ;;  %v5161_v55 = vcombine.low %v2317_v34, %v7075_v38  ;;  %v5162_v2 = vcombine.low %v7077_v41, %v7081_v45  ;;  %v1694_v3 = vrot.slane %v1692_v42, 3  ;;  %v2010_v4 = vor.u32 %v2009_v49, %v2005_v61  ;;  %v7117_v10 = vld [vmem:[#allocation2 + $0x2c] sm:$0xff]  }
 0x12d   : > { %5847 = vmatprep.mubr.bf16.mxu1 %v5077_v33  ;;  %5942 = vmatpush3.bf16.msra.mxu0 %v6335_v27  ;;  %v1681_v39 = vsel %vm1592_vm0, %v1671_v31, %v1680_v58  ;;  %v1689_v7 = vor.u32 %v1688_v60, %v1685_v43  ;;  %v1697_v13 = vrot.slane %v1695_v14, 4  ;;  %v2014_v48 = vrot.slane %v2012_v62, 1 }
 0x12e   : > { %v1294_v59 = vld [vmem:[#allocation2 + $0x60] sm:$0xf]  ;;  %5943 = vmatprep.subr.bf16.mxu0 %v6336_v36  ;;  %v2020_v40 = vshll.u32 %v7079_v22, 16  ;;  %v2423_v17 = vshrl.u32 %v5161_v55, 16  ;;  %v2426_v56 = vshll.u32 %v5161_v55, 16  ;;  %v2431_v46 = vshrl.u32 %v5162_v2, 16 }
 0x12f   : > { %v5099_v0 = vcombine.low %v1294_v59, %v1294_v59  ;;  %5880 = vmatmul.mubr.bf16.gmra.mxu0 %v1672_v37  ;;  %v5078_v57 = vcombine.low %v7061_v51, %v1294_v59  ;;  %v2015_v12 = vsel %vm2003_vm1, %v2010_v4, %v2014_v48  ;;  %v2016_v5 = vshrl.u32 %v7069_v1, 16  ;;  %v7131_v59 = vld [vmem:[#allocation2 + $0x30] sm:$0xf]  ;;  %v6348_v55 = vld [vmem:[%s8039_s6 + $0x128] sm:$0xff]  }
 0x130   : > { %5883 = vmatprep.mubr.bf16.mxu0 %v1681_v39  ;;  %v2434_v51 = vshll.u32 %v5162_v2, 16  ;;  %v2028_v63 = vshll.u32 %v7093_v6, 16  ;;  %v1690_v24 = vsel %vm1592_vm0, %v1680_v58, %v1689_v7  ;;  %v5163_v26 = vcombine.low %v7096_v16, %v7098_v18 }
 0x131   : > { %v1701_v8 = vshrl.u32 %v5099_v0, 16  ;;  %v1704_v11 = vshll.u32 %v5099_v0, 16  ;;  %5944 = vmatpush3.bf16.msra.mxu0 %v6336_v36  ;;  %v1698_v53 = vor.u32 %v1697_v13, %v1694_v3  ;;  %v2022_v52 = vrot.slane %v2020_v40, 1  ;;  %v7139_v0 = vld [vmem:[#allocation2 + $0x34] sm:$0xf] }
 0x132   : > { %5945 = vmatprep.subr.bf16.mxu0 %v6342_v47  ;;  %v2425_v27 = vrot.slane %v2423_v17, 3  ;;  %v2428_v28 = vrot.slane %v2426_v56, 4  ;;  %v2018_v29 = vor.u32 %v2016_v5, %v2014_v48  ;;  %v2433_v20 = vrot.slane %v2431_v46, 3  ;;  %v6350_v3 = vld [vmem:[#allocation2 + $0x34] sm:$0xff]   ;;  %v7151_v17 = vld [vmem:[#allocation2 + $0x3c] sm:$0xff]  }
 0x133   : > { %v1703_v54 = vrot.slane %v1701_v8, 3  ;;  %v1706_v25 = vrot.slane %v1704_v11, 4  ;;  %v2024_v31 = vshrl.u32 %v7079_v22, 16  ;;  %v5164_v1 = vcombine.low %v7100_v19, %v7112_v21  ;;  %v6353_v5 = vld [vmem:[%s8039_s6 + $0x120] sm:$0xff]  }
 0x134   : > { %5848 = vmatmul.mubr.bf16.gmra.mxu1 %v5078_v57  ;;  %v1699_v34 = vsel %vm1592_vm0, %v1689_v7, %v1698_v53  ;;  %v2436_v9 = vrot.slane %v2434_v51, 4  ;;  %v2030_v15 = vrot.slane %v2028_v63, 1  ;;  %v2440_v33 = vshrl.u32 %v5163_v26, 16  ;;  %v7141_v57 = vld [vmem:[#allocation2 + $0x2c] sm:$0xf] }
 0x135   : > { %5907 = vmatprep.mubr.bf16.mxu1 %v2015_v12  ;;  %5946 = vmatpush3.bf16.msra.mxu0 %v6342_v47  ;;  %v1707_v50 = vor.u32 %v1706_v25, %v1703_v54  ;;  %v2026_v35 = vor.u32 %v2024_v31, %v2022_v52  ;;  %v2443_v36 = vshll.u32 %v5163_v26, 16  ;;  %v2036_v43 = vshll.u32 %v7110_v23, 16  ;;  %v7159_v54 = vld [vmem:[#allocation2 + $0x40] sm:$0xf] }
 0x136   : > { %6011 = vmatprep.subr.bf16.mxu0 %v7105_v44  ;;  %v2023_v42 = vsel %vm2003_vm1, %v2018_v29, %v2022_v52  ;;  %v2449_v14 = vshrl.u32 %v5164_v1, 16  ;;  %v2452_v22 = vshll.u32 %v5164_v1, 16  ;;  %v2429_v37 = vor.u32 %v2428_v28, %v2425_v27  ;;  %v7163_v27 = vld [vmem:[#allocation2 + $0x44] sm:$0xf]  ;;  %v7166_v29 = vld [vmem:[#allocation2 + $0x3c] sm:$0xf] }
 0x137   : > { %5884 = vmatmul.mubr.bf16.gmra.mxu0 %v1690_v24  ;;  %v2437_v60 = vor.u32 %v2436_v9, %v2433_v20  ;;  %v2031_v49 = vsel %vm2003_vm1, %v2026_v35, %v2030_v15  ;;  %v2044_v58 = vshll.u32 %v7117_v10, 16  ;;  %v1708_v61 = vsel %vm1592_vm0, %v1698_v53, %v1707_v50  ;;  %v6355_v9 = vld [vmem:[%s8039_s6 + $0x118] sm:$0xff]   ;;  %v7176_v50 = vld [vmem:[#allocation2 + $0x48] sm:$0xf] }
 0x138   : > { %5887 = vmatprep.mubr.bf16.mxu0 %v1699_v34  ;;  %v2032_v62 = vshrl.u32 %v7093_v6, 16  ;;  %v2442_v2 = vrot.slane %v2440_v33, 3  ;;  %v2445_v47 = vrot.slane %v2443_v36, 4  ;;  %v2038_v39 = vrot.slane %v2036_v43, 1  ;;  %v7145_v6 = vld [vmem:[#allocation2 + $0x38] sm:$0xf] }
 0x139   : > { %v2451_v7 = vrot.slane %v2449_v14, 3  ;;  %v2454_v8 = vrot.slane %v2452_v22, 4  ;;  %v2438_v11 = vsel %vm1592_vm0, %v2429_v37, %v2437_v60  ;;  %v2040_v13 = vshrl.u32 %v7110_v23, 16  ;;  %v6360_v36 = vld [vmem:[%s8039_s6 + $0x170] sm:$0xff]  }
 0x13a   : > { %v2034_v4 = vor.u32 %v2032_v62, %v2030_v15  ;;  %v2046_v48 = vrot.slane %v2044_v58, 1  ;;  %v5166_v40 = vcombine.low %v7139_v0, %v7145_v6  ;;  %v2446_v56 = vor.u32 %v2445_v47, %v2442_v2  ;;  %v7174_v15 = vld [vmem:[#allocation2 + $0x44] sm:$0xff]   ;;  %v7185_v37 = vld [vmem:[#allocation2 + $0x4c] sm:$0xff]  }
 0x13b   : > { %v2042_v46 = vor.u32 %v2040_v13, %v2038_v39  ;;  %v2052_v12 = vshll.u32 %v6350_v3, 16  ;;  %v7157_v63 = vor.u32 %v2454_v8, %v2451_v7  ;;  %v2060_v52 = vshll.u32 %v7151_v17, 16  ;;  %v6361_v62 = vld [vmem:[%s8039_s6 + $0x110] sm:$0xff]   ;;  %v7204_v13 = vld [vmem:[#allocation2 + $0x4c] sm:$0xf] }
 0x13c   : > { %5908 = vmatmul.mubr.bf16.vlgmr.msra.gmra.mxu1 %v2023_v42  ;;  %v2039_v51 = vsel %vm2003_vm1, %v2034_v4, %v2038_v39  ;;  %v2467_v26 = vshrl.u32 %v5166_v40, 16  ;;  %v2470_v53 = vshll.u32 %v5166_v40, 16  ;;  %v2048_v28 = vshrl.u32 %v7117_v10, 16  ;;  %v6363_v4 = vld [vmem:[%s8039_s6 + $0x168] sm:$0xff]   ;;  %v7208_v40 = vld [vmem:[#allocation2 + $0x54] sm:$0xf] }
 0x13d   : > { %5972 = vmatpush3.bf16.msra.mxu1 %v7058_v30  ;;  %5911 = vmatprep.mubr.bf16.mxu1 %v2031_v49  ;;  %v5165_v30 = vcombine.low %v7141_v57, %v7131_v59  ;;  %v2047_v25 = vsel %vm2003_vm1, %v2042_v46, %v2046_v48  ;;  %v2447_v20 = vsel %vm1592_vm0, %v2437_v60, %v2446_v56  ;;  %v2054_v31 = vrot.slane %v2052_v12, 1 }
 0x13e   : > { %5973 = vmatprep.subr.bf16.mxu1 %v6343_v32  ;;  %v2056_v1 = vshrl.u32 %v6350_v3, 16  ;;  %v5167_v34 = vcombine.low %v7166_v29, %v7159_v54  ;;  %v2050_v33 = vor.u32 %v2048_v28, %v2046_v48  ;;  %v5168_v35 = vcombine.low %v7163_v27, %v7176_v50  ;;  %v7193_v3 = vld [vmem:[#allocation2 + $0x50] sm:$0xf]  ;;  %v7206_v48 = vld [vmem:[#allocation2 + $0x54] sm:$0xff]  }
 0x13f   : > { %5888 = vmatmul.mubr.bf16.gmra.mxu0 %v1708_v61  ;;  %v2458_v23 = vshrl.u32 %v5165_v30, 16  ;;  %v2461_v24 = vshll.u32 %v5165_v30, 16  ;;  %v2456_v43 = vsel %vm1592_vm0, %v2446_v56, %v7157_v63  ;;  %v2469_v42 = vrot.slane %v2467_v26, 3  ;;  %v6367_v30 = vld [vmem:[%s8039_s6 + $0x108] sm:$0xff]   ;;  %v6368_v56 = vld [vmem:[%s8039_s6 + $0x160] sm:$0xff]  }
 0x140   : > { %5947 = vmatprep.mubr.bf16.mxu0 %v2438_v11  ;;  %v2472_v14 = vrot.slane %v2470_v53, 4  ;;  %v2062_v22 = vrot.slane %v2060_v52, 1  ;;  %v2058_v60 = vor.u32 %v2056_v1, %v2054_v31  ;;  %v2476_v49 = vshrl.u32 %v5167_v34, 16  ;;  %v6373_v1 = vld [vmem:[%s8039_s6 + $0x100] sm:$0xff]  }
 0x141   : > { %5974 = vmatpush3.bf16.msra.mxu1 %v6343_v32  ;;  %v2460_v32 = vrot.slane %v2458_v23, 3  ;;  %v2463_v10 = vrot.slane %v2461_v24, 4  ;;  %v2479_v58 = vshll.u32 %v5167_v34, 16  ;;  %v2068_v61 = vshll.u32 %v7174_v15, 16  ;;  %v7217_v23 = vld [vmem:[#allocation2 + $0x5c] sm:$0xff]  }
 0x142   : > { %5975 = vmatprep.subr.bf16.mxu1 %v6348_v55  ;;  %v2055_v2 = vsel %vm2003_vm1, %v2050_v33, %v2054_v31  ;;  %v2485_v47 = vshrl.u32 %v5168_v35, 16  ;;  %v2488_v39 = vshll.u32 %v5168_v35, 16  ;;  %v2473_v7 = vor.u32 %v2472_v14, %v2469_v42 }
 0x143   : > { %v2076_v8 = vshll.u32 %v7185_v37, 16  ;;  %v2064_v11 = vshrl.u32 %v7151_v17, 16  ;;  %v2478_v46 = vrot.slane %v2476_v49, 3  ;;  %v2481_v12 = vrot.slane %v2479_v58, 4  ;;  %v7215_v17 = vld [vmem:[#allocation2 + $0x58] sm:$0xf] }
 0x144   : > { %5912 = vmatmul.mubr.bf16.gmra.mxu1 %v2039_v51  ;;  %v5169_v51 = vcombine.low %v7204_v13, %v7193_v3  ;;  %v2487_v26 = vrot.slane %v2485_v47, 3  ;;  %v2490_v53 = vrot.slane %v2488_v39, 4  ;;  %v2072_v28 = vshrl.u32 %v7174_v15, 16  ;;  %v7239_v49 = vld [vmem:[#allocation2 + $0x5c] sm:$0xf] }
 0x145   : > { %5915 = vmatprep.mubr.bf16.mxu1 %v2047_v25  ;;  %5976 = vmatpush3.bf16.msra.mxu1 %v6348_v55  ;;  %v2464_v55 = vor.u32 %v2463_v10, %v2460_v32  ;;  %v2066_v25 = vor.u32 %v2064_v11, %v2062_v22  ;;  %v5170_v31 = vcombine.low %v7208_v40, %v7215_v17  ;;  %v2084_v32 = vshll.u32 %v7206_v48, 16  ;;  %v7229_v10 = vld [vmem:[#allocation2 + $0x60] sm:$0xf]  ;;  %v7249_v39 = vld [vmem:[%s8039_s6 + $0x1b8] sm:$0xff]  }
 0x146   : > { %5977 = vmatprep.subr.bf16.mxu1 %v6353_v5  ;;  %v2491_v33 = vor.u32 %v2490_v53, %v2487_v26  ;;  %v2497_v35 = vshll.u32 %v5169_v51, 16  ;;  %v2080_v58 = vshrl.u32 %v7185_v37, 16  ;;  %v2088_v47 = vshrl.u32 %v7206_v48, 16  ;;  %v6377_v26 = vld [vmem:[%s8039_s6 + $0x148] sm:$0xff]  }
 0x147   : > { %5948 = vmatmul.mubr.bf16.vlgmr.msra.gmra.mxu0 %v2447_v20  ;;  %v2465_v24 = vsel %vm1592_vm0, %v7157_v63, %v2464_v55  ;;  %v2474_v52 = vsel %vm1592_vm0, %v2464_v55, %v2473_v7  ;;  %v2078_v20 = vrot.slane %v2076_v8, 1  ;;  %v2482_v63 = vor.u32 %v2481_v12, %v2478_v46 }
 0x148   : > { %5951 = vmatprep.mubr.bf16.mxu0 %v2456_v43  ;;  %6012 = vmatpush3.bf16.msra.mxu0 %v7105_v44  ;;  %v2063_v44 = vsel %vm2003_vm1, %v2058_v60, %v2062_v22  ;;  %v7235_v43 = vld [vmem:[#allocation2 + $0x64] sm:$0xf]  ;;  %v2503_v14 = vshrl.u32 %v5170_v31, 16  ;;  %v2506_v22 = vshll.u32 %v5170_v31, 16  ;;  %v2092_v60 = vshll.u32 %v7217_v23, 16 }
 0x149   : > { %5978 = vmatpush3.bf16.msra.mxu1 %v6353_v5  ;;  %6013 = vmatprep.subr.bf16.mxu0 %v6360_v36  ;;  %v2070_v5 = vrot.slane %v2068_v61, 1  ;;  %v7242_v61 = vld [vmem:[#allocation2 + $0x68] sm:$0xf]  ;;  %v2082_v37 = vor.u32 %v2080_v58, %v2078_v20  ;;  %v5171_v8 = vcombine.low %v7239_v49, %v7229_v10  ;;  %v2096_v31 = vshrl.u32 %v7217_v23, 16  ;;  %v6380_v23 = vld [vmem:[#allocation2 + $0x10] sm:$0xff]  }
 0x14a   : > { %5979 = vmatprep.subr.bf16.mxu1 %v6355_v9  ;;  %v2505_v11 = vrot.slane %v2503_v14, 3  ;;  %v2508_v48 = vrot.slane %v2506_v22, 4  ;;  %v5172_v46 = vcombine.low %v7235_v43, %v7242_v61 }
 0x14b   : > { %v2074_v34 = vor.u32 %v2072_v28, %v2070_v5  ;;  %v2071_v15 = vsel %vm2003_vm1, %v2066_v25, %v2070_v5  ;;  %v2515_v25 = vshll.u32 %v5171_v8, 16 }
 0x14c   : > { %5916 = vmatmul.mubr.bf16.gmra.mxu1 %v2055_v2  ;;  %6014 = vmatpush3.bf16.msra.mxu0 %v6360_v36  ;;  %v6370_v36 = vld [vmem:[%s8039_s6 + $0x158] sm:$0xff]   ;;  %v2086_v2 = vrot.slane %v2084_v32, 1  ;;  %v2509_v53 = vor.u32 %v2508_v48, %v2505_v11  ;;  %v2521_v28 = vshrl.u32 %v5172_v46, 16  ;;  %v5199_v48 = vcombine.low %v7081_v45, %v7096_v16  ;;  %v6389_v45 = vld [vmem:[%s8039_s6 + $0x1a8] sm:$0xff]  }
 0x14d   : > { %5919 = vmatprep.mubr.bf16.mxu1 %v2063_v44  ;;  %5980 = vmatpush3.bf16.msra.mxu1 %v6355_v9  ;;  %v2494_v9 = vshrl.u32 %v5169_v51, 16  ;;  %v2079_v42 = vsel %vm2003_vm1, %v2074_v34, %v2078_v20  ;;  %v2499_v44 = vrot.slane %v2497_v35, 4  ;;  %v2524_v20 = vshll.u32 %v5172_v46, 16  ;;  %v6383_v35 = vld [vmem:[%s8039_s6 + $0x140] sm:$0xff]  }
 0x14e   : > { %5981 = vmatprep.subr.bf16.mxu1 %v6361_v62  ;;  %6015 = vmatprep.subr.bf16.mxu0 %v6363_v4  ;;  %v2090_v12 = vor.u32 %v2088_v47, %v2086_v2  ;;  %v2087_v51 = vsel %vm2003_vm1, %v2082_v37, %v2086_v2  ;;  %v2517_v32 = vrot.slane %v2515_v25, 4  ;;  %v3101_v47 = vshll.u32 %v6380_v23, 16  ;;  %v6381_v37 = vld [vmem:[#allocation2 + $0x18] sm:$0xff]  }
 0x14f   : > { %5952 = vmatmul.mubr.bf16.gmra.mxu0 %v2465_v24  ;;  %v2496_v55 = vrot.slane %v2494_v9, 3  ;;  %v2512_v24 = vshrl.u32 %v5171_v8, 16  ;;  %v2526_v14 = vrot.slane %v2524_v20, 4  ;;  %v3106_v46 = vshll.u32 %v6381_v37, 16 }
 0x150   : > { %5955 = vmatprep.mubr.bf16.mxu0 %v2474_v52  ;;  %6016 = vmatpush3.bf16.msra.mxu0 %v6363_v4  ;;  %v2492_v4 = vsel %vm1592_vm0, %v2482_v63, %v2491_v33 }
 0x151   : > { %5982 = vmatpush3.bf16.msra.mxu1 %v6361_v62  ;;  %6017 = vmatprep.subr.bf16.mxu0 %v6368_v56  ;;  %v2483_v62 = vsel %vm1592_vm0, %v2473_v7, %v2482_v63  ;;  %v6371_v7 = vld [vmem:[#allocation2 + $0x64] ss:$0 sps:$4 sm:$0x11]   ;;  %v2500_v5 = vor.u32 %v2499_v44, %v2496_v55  ;;  %v7266_v63 = vld [vmem:[#allocation2 + $0x6c] sm:$0xf]  ;;  %v2514_v9 = vrot.slane %v2512_v24, 3 }
 0x152   : > { %5983 = vmatprep.subr.bf16.mxu1 %v6367_v30  ;;  %v7281_v55 = vld [vmem:[%s8039_s6 + $0x1f8] sm:$0xff]  }
 0x153   : > { %v2501_v34 = vsel %vm1592_vm0, %v2491_v33, %v2500_v5  ;;  %v2518_v33 = vor.u32 %v2517_v32, %v2514_v9 }
 0x154   : > { %5920 = vmatmul.mubr.bf16.gmra.mxu1 %v2071_v15  ;;  %6018 = vmatpush3.bf16.msra.mxu0 %v6368_v56  ;;  %v2094_v56 = vrot.slane %v2092_v60, 1  ;;  %v5173_v60 = vcombine.low %v7266_v63, %v7266_v63 }
 0x155   : > { %5923 = vmatprep.mubr.bf16.mxu1 %v2079_v42  ;;  %5984 = vmatpush3.bf16.msra.mxu1 %v6367_v30  ;;  %v6375_v30 = vld [vmem:[%s8039_s6 + $0x150] sm:$0xff]   ;;  %v2523_v42 = vrot.slane %v2521_v28, 3  ;;  %v2519_v8 = vsel %vm1592_vm0, %v2509_v53, %v2518_v33 }
 0x156   : > { %5985 = vmatprep.subr.bf16.mxu1 %v6373_v1  ;;  %6019 = vmatprep.subr.bf16.mxu0 %v6370_v36  ;;  %v2095_v52 = vsel %vm2003_vm1, %v2090_v12, %v2094_v56  ;;  %v2098_v15 = vor.u32 %v2096_v31, %v2094_v56  ;;  %v2533_v44 = vshll.u32 %v5173_v60, 16  ;;  %v3099_v56 = vshrl.u32 %v6380_v23, 16  ;;  %v6384_v12 = vld [vmem:[%s8039_s6 + $0x1b0] sm:$0xff]   ;;  %v6394_v31 = vld [vmem:[%s8039_s6 + $0x1a0] sm:$0xff]  }
 0x157   : > { %5956 = vmatmul.mubr.bf16.gmra.mxu0 %v2483_v62  ;;  %v5198_v62 = vcombine.low %v7075_v38, %v7077_v41  ;;  %v2527_v2 = vor.u32 %v2526_v14, %v2523_v42  ;;  %v3103_v41 = vrot.slane %v3101_v47, 1  ;;  %v6401_v42 = vld [vmem:[%s8039_s6 + $0x1f0] sm:$0xff]   ;;  %v6395_v14 = vld [vmem:[#allocation2 + $0x40] sm:$0xff]   ;;  %v5203_v23 = vcombine.low %v7145_v6, %v7166_v29 }
 0x158   : > { %5959 = vmatprep.mubr.bf16.mxu0 %v2492_v4  ;;  %6020 = vmatpush3.bf16.msra.mxu0 %v6370_v36  ;;  %v2510_v36 = vsel %vm1592_vm0, %v2500_v5, %v2509_v53  ;;  %v2530_v4 = vshrl.u32 %v5173_v60, 16  ;;  %v2535_v11 = vrot.slane %v2533_v44, 4  ;;  %v5200_v5 = vcombine.low %v7098_v18, %v7100_v19  ;;  %v6387_v53 = vld [vmem:[#allocation2 + $0x28] sm:$0xff]   ;;  %v6390_v19 = vld [vmem:[#allocation2 + $0x30] sm:$0xff]   ;;  %v6409_v44 = vld [vmem:[%s8039_s6 + $0x1e0] sm:$0xff]  }
 0x159   : > { %5986 = vmatpush3.bf16.msra.mxu1 %v6373_v1  ;;  %6021 = vmatprep.subr.bf16.mxu0 %v6375_v30  ;;  %v2100_v1 = vshll.u32 %v6371_v7, 16  ;;  %v2528_v38 = vsel %vm1592_vm0, %v2518_v33, %v2527_v2  ;;  %v6385_v7 = vld [vmem:[#allocation2 + $0x20] sm:$0xff]   ;;  %v3122_v20 = vshll.u32 %v6387_v53, 16  ;;  %v3130_v32 = vshll.u32 %v6390_v19, 16  ;;  %v6402_v33 = vld [vmem:[%s8039_s6 + $0x190] sm:$0xff]  }
 0x15a   : > { %6051 = vmatprep.subr.bf16.mxu1 %v7249_v39  ;;  %v3114_v24 = vshll.u32 %v6385_v7, 16  ;;  %v3118_v28 = vshrl.u32 %v6385_v7, 16  ;;  %v3146_v29 = vshll.u32 %v6395_v14, 16  ;;  %v7337_v7 = vld [vmem:[#allocation2 + $0x24] sm:$0xf] }
 0x15b   : > { %v2102_v22 = vrot.slane %v2100_v1, 1  ;;  %v3110_v1 = vshrl.u32 %v6381_v37, 16 }
 0x15c   : > { %5924 = vmatmul.mubr.bf16.gmra.mxu1 %v2087_v51  ;;  %6022 = vmatpush3.bf16.msra.mxu0 %v6375_v30  ;;  %v2532_v30 = vrot.slane %v2530_v4, 3  ;;  %v3104_v51 = vor.u32 %v3103_v41, %v3099_v56  ;;  %v3116_v18 = vrot.slane %v3114_v24, 1  ;;  %v7325_v4 = vld [vmem:[#allocation2 + $0x48] sm:$0xff]   ;;  %v7335_v41 = vld [vmem:[#allocation2 + $0x20] sm:$0xf] }
 0x15d   : > { %5927 = vmatprep.mubr.bf16.mxu1 %v2095_v52  ;;  %6023 = vmatprep.subr.bf16.mxu0 %v6377_v26  ;;  %v2103_v58 = vsel %vm2003_vm1, %v2098_v15, %v2102_v22  ;;  %v3134_v22 = vshrl.u32 %v6390_v19, 16  ;;  %v6414_v56 = vld [vmem:[%s8039_s6 + $0x180] sm:$0xff]  }
 0x15e   : > { %v2536_v25 = vor.u32 %v2535_v11, %v2532_v30  ;;  %v3120_v9 = vor.u32 %v3118_v28, %v3116_v18  ;;  %v5205_v30 = vcombine.low %v7176_v50, %v7204_v13  ;;  %v3150_v11 = vshrl.u32 %v6395_v14, 16  ;;  %v7350_v50 = vld [vmem:[#allocation2 + $0x1c] sm:$0xf] }
 0x15f   : > { %5960 = vmatmul.mubr.bf16.gmra.mxu0 %v2501_v34  ;;  %v5202_v34 = vcombine.low %v7131_v59, %v7139_v0  ;;  %v3132_v0 = vrot.slane %v3130_v32, 1 }
 0x160   : > { %5963 = vmatprep.mubr.bf16.mxu0 %v2510_v36  ;;  %6024 = vmatpush3.bf16.msra.mxu0 %v6377_v26  ;;  %v3108_v26 = vrot.slane %v3106_v46, 1  ;;  %v2537_v16 = vsel %vm1592_vm0, %v2527_v2, %v2536_v25  ;;  %v6392_v36 = vld [vmem:[#allocation2 + $0x38] sm:$0xff]   ;;  %v6404_v2 = vld [vmem:[%s8039_s6 + $0x1e8] sm:$0xff]   ;;  %v5272_v25 = vcombine.low %v7335_v41, %v7337_v7 }
 0x161   : > { %6025 = vmatprep.subr.bf16.mxu0 %v6383_v35  ;;  %v3138_v60 = vshll.u32 %v6392_v36, 16  ;;  %v3136_v6 = vor.u32 %v3134_v22, %v3132_v0  ;;  %v3142_v46 = vshrl.u32 %v6392_v36, 16 }
 0x162   : > { %v3109_v52 = vsel %vm2003_vm1, %v3104_v51, %v3108_v26  ;;  %v3112_v15 = vor.u32 %v3110_v1, %v3108_v26  ;;  %v3411_v51 = vld [vmem:[#allocation2 + $0x18] sm:$0x8]  ;;  %v3525_v28 = vshrl.u32 %v5272_v25, 16  ;;  %v7369_v1 = vld [vmem:[#allocation2 + $0x28] sm:$0xf] }
 0x164   : > { %5928 = vmatmul.mubr.bf16.gmra.mxu1 %v2103_v58  ;;  %6026 = vmatpush3.bf16.msra.mxu0 %v6383_v35  ;;  %v3124_v35 = vrot.slane %v3122_v20, 1  ;;  %v3126_v58 = vshrl.u32 %v6387_v53, 16  ;;  %v3528_v20 = vshll.u32 %v5272_v25, 16 }
 0x165   : > { %5987 = vmatprep.mubr.bf16.mxu1 %v5198_v62  ;;  %6091 = vmatprep.subr.bf16.mxu0 %v7281_v55  ;;  %v5204_v62 = vcombine.low %v7159_v54, %v7163_v27  ;;  %v6408_v54 = vld [vmem:[%s8039_s6 + $0x188] sm:$0xff]  }
 0x166   : > { %v3125_v59 = vsel %vm2003_vm1, %v3120_v9, %v3124_v35  ;;  %v3128_v47 = vor.u32 %v3126_v58, %v3124_v35  ;;  %v7373_v9 = vld [vmem:[#allocation2 + $0x34] sm:$0xf]  ;;  %v3530_v14 = vrot.slane %v3528_v20, 4 }
 0x167   : > { %5964 = vmatmul.mubr.bf16.gmra.mxu0 %v2519_v8  ;;  %v3148_v8 = vrot.slane %v3146_v29, 1 }
 0x168   : > { %5967 = vmatprep.mubr.bf16.mxu0 %v2528_v38  ;;  %v3133_v27 = vsel %vm2003_vm1, %v3128_v47, %v3132_v0  ;;  %v6403_v38 = vld [vmem:[#allocation2 + $0x50] sm:$0xff]   ;;  %v3527_v0 = vrot.slane %v3525_v28, 3 }
 0x169   : > { %v3152_v13 = vor.u32 %v3150_v11, %v3148_v8  ;;  %v3162_v24 = vshll.u32 %v6403_v38, 16  ;;  %v3166_v32 = vshrl.u32 %v6403_v38, 16  ;;  %v5209_v38 = vcombine.low %v7242_v61, %v7266_v63  ;;  %v6418_v63 = vld [vmem:[#allocation2 + $0x70] ss:$0 sps:$4 sm:$0x11]  }
 0x16a   : > { %v3531_v47 = vor.u32 %v3530_v14, %v3527_v0  ;;  %v7412_v28 = vld [vmem:[#allocation2 + $0x50] sm:$0xf]  ;;  %v3194_v20 = vshll.u32 %v6418_v63, 16 }
 0x16c   : > { %5988 = vmatmul.mubr.bf16.vlgmr.msra.gmra.mxu1 %v5199_v48  ;;  %v3154_v48 = vshll.u32 %v7325_v4, 16 }
 0x16d   : > { %6052 = vmatpush3.bf16.msra.mxu1 %v7249_v39  ;;  %5991 = vmatprep.mubr.bf16.mxu1 %v5200_v5  ;;  %v5201_v39 = vcombine.low %v7112_v21, %v7141_v57  ;;  %v6396_v21 = vld [vmem:[%s8039_s6 + $0x198] sm:$0xff]   ;;  %v3117_v57 = vsel %vm2003_vm1, %v3112_v15, %v3116_v18  ;;  %v6417_v18 = vld [vmem:[%s8039_s6 + $0x1d0] sm:$0xff]  }
 0x16e   : > { %6053 = vmatprep.subr.bf16.mxu1 %v6384_v12  ;;  %v6411_v5 = vld [vmem:[%s8039_s6 + $0x1d8] sm:$0xff]   ;;  %v3156_v53 = vrot.slane %v3154_v48, 1 }
 0x16f   : > { %5968 = vmatmul.mubr.bf16.gmra.mxu0 %v2537_v16  ;;  %v7400_v48 = vld [vmem:[#allocation2 + $0x38] sm:$0xf] }
 0x170   : > { %6027 = vmatprep.mubr.bf16.mxu0 %v3109_v52  ;;  %v6410_v52 = vld [vmem:[#allocation2 + $0x60] sm:$0xff]   ;;  %v3157_v19 = vsel %vm2003_vm1, %v3152_v13, %v3156_v53 }
 0x171   : > { %6054 = vmatpush3.bf16.msra.mxu1 %v6384_v12  ;;  %v5206_v12 = vcombine.low %v7193_v3, %v7208_v40  ;;  %v5271_v3 = vcombine.low %v3411_v51, %v7350_v50  ;;  %v7360_v40 = vld [vmem:[%s8039_s6 + $0x238] sm:$0xff]  }
 0x172   : > { %6055 = vmatprep.subr.bf16.mxu1 %v6389_v45 }
 0x173   : > { %v3517_v35 = vshrl.u32 %v5271_v3, 16  ;;  %v3520_v36 = vshll.u32 %v5271_v3, 16 }
 0x174   : > { %5992 = vmatmul.mubr.bf16.gmra.mxu1 %v5201_v39  ;;  %v3164_v39 = vrot.slane %v3162_v24, 1 }
 0x175   : > { %5995 = vmatprep.mubr.bf16.mxu1 %v5202_v34  ;;  %6056 = vmatpush3.bf16.msra.mxu1 %v6389_v45  ;;  %v7354_v45 = vld [vmem:[#allocation2 + $0x58] sm:$0xff]   ;;  %v7371_v34 = vld [vmem:[#allocation2 + $0x30] sm:$0xf]  ;;  %v3522_v58 = vrot.slane %v3520_v36, 4 }
 0x176   : > { %6057 = vmatprep.subr.bf16.mxu1 %v6394_v31  ;;  %v3170_v15 = vshll.u32 %v7354_v45, 16  ;;  %v6425_v36 = vld [vmem:[%s8039_s6 + $0x230] sm:$0xff]  }
 0x177   : > { %6028 = vmatmul.mubr.bf16.vlgmr.msra.gmra.mxu0 %v3117_v57  ;;  %v3158_v57 = vshrl.u32 %v7325_v4, 16 }
 0x178   : > { %6031 = vmatprep.mubr.bf16.mxu0 %v3125_v59  ;;  %6092 = vmatpush3.bf16.msra.mxu0 %v7281_v55  ;;  %v3140_v55 = vrot.slane %v3138_v60, 1  ;;  %v3168_v59 = vor.u32 %v3166_v32, %v3164_v39 }
 0x179   : > { %6058 = vmatpush3.bf16.msra.mxu1 %v6394_v31  ;;  %6093 = vmatprep.subr.bf16.mxu0 %v6401_v42  ;;  %v5207_v31 = vcombine.low %v7215_v17, %v7239_v49  ;;  %v5208_v17 = vcombine.low %v7229_v10, %v7235_v43  ;;  %v3178_v49 = vshll.u32 %v6410_v52, 16  ;;  %v3160_v22 = vor.u32 %v3158_v57, %v3156_v53  ;;  %v6413_v10 = vld [vmem:[#allocation2 + $0x68] sm:$0xff]  }
 0x17a   : > { %6059 = vmatprep.subr.bf16.mxu1 %v6396_v21  ;;  %v3141_v37 = vsel %vm2003_vm1, %v3136_v6, %v3140_v55  ;;  %v3144_v26 = vor.u32 %v3142_v46, %v3140_v55  ;;  %v3519_v43 = vrot.slane %v3517_v35, 3  ;;  %v6424_v6 = vld [vmem:[%s8039_s6 + $0x1c0] sm:$0xff]   ;;  %v3174_v46 = vshrl.u32 %v7354_v45, 16  ;;  %v7414_v35 = vld [vmem:[#allocation2 + $0x54] sm:$0xf] }
 0x17b   : > { %v7419_v57 = vld [vmem:[#allocation2 + $0x48] sm:$0xf] }
 0x17c   : > { %5996 = vmatmul.mubr.bf16.gmra.mxu1 %v5203_v23  ;;  %6094 = vmatpush3.bf16.msra.mxu0 %v6401_v42  ;;  %v3149_v16 = vsel %vm2003_vm1, %v3144_v26, %v3148_v8  ;;  %v6419_v42 = vld [vmem:[%s8039_s6 + $0x1c8] sm:$0xff]   ;;  %v5274_v23 = vcombine.low %v7371_v34, %v7373_v9  ;;  %v7396_v8 = vld [vmem:[#allocation2 + $0x44] sm:$0xf]  ;;  %v3523_v11 = vor.u32 %v3522_v58, %v3519_v43 }
 0x17d   : > { %5999 = vmatprep.mubr.bf16.mxu1 %v5204_v62  ;;  %6060 = vmatpush3.bf16.msra.mxu1 %v6396_v21  ;;  %v7377_v21 = vld [vmem:[#allocation2 + $0x2c] sm:$0xf]  ;;  %v3165_v62 = vsel %vm2003_vm1, %v3160_v22, %v3164_v39  ;;  %v3196_v22 = vrot.slane %v3194_v20, 1 }
 0x17e   : > { %6061 = vmatprep.subr.bf16.mxu1 %v6402_v33  ;;  %6095 = vmatprep.subr.bf16.mxu0 %v6404_v2  ;;  %v5273_v60 = vcombine.low %v7369_v1, %v7377_v21  ;;  %v3543_v55 = vshrl.u32 %v5274_v23, 16  ;;  %v3546_v4 = vshll.u32 %v5274_v23, 16  ;;  %v5278_v23 = vcombine.low %v7412_v28, %v7414_v35  ;;  %v6430_v43 = vld [vmem:[%s8039_s6 + $0x228] sm:$0xff]  }
 0x17f   : > { %6032 = vmatmul.mubr.bf16.gmra.mxu0 %v3133_v27  ;;  %v3182_v27 = vshrl.u32 %v6410_v52, 16 }
 0x180   : > { %6035 = vmatprep.mubr.bf16.mxu0 %v3141_v37  ;;  %6096 = vmatpush3.bf16.msra.mxu0 %v6404_v2  ;;  %v3180_v2 = vrot.slane %v3178_v49, 1  ;;  %v3537_v37 = vshll.u32 %v5273_v60, 16  ;;  %v3545_v51 = vrot.slane %v3543_v55, 3  ;;  %v3548_v13 = vrot.slane %v3546_v4, 4  ;;  %v7436_v4 = vld [vmem:[#allocation2 + $0x60] sm:$0xf] }
 0x181   : > { %6062 = vmatpush3.bf16.msra.mxu1 %v6402_v33  ;;  %6097 = vmatprep.subr.bf16.mxu0 %v6409_v44  ;;  %v3172_v33 = vrot.slane %v3170_v15, 1 }
 0x182   : > { %6063 = vmatprep.subr.bf16.mxu1 %v6408_v54  ;;  %v3539_v26 = vrot.slane %v3537_v37, 4  ;;  %v7443_v37 = vld [vmem:[#allocation2 + $0x58] sm:$0xf] }
 0x183   : > { %v3173_v29 = vsel %vm2003_vm1, %v3168_v59, %v3172_v33  ;;  %v3176_v61 = vor.u32 %v3174_v46, %v3172_v33 }
 0x184   : > { %6000 = vmatmul.mubr.bf16.gmra.mxu1 %v5205_v30  ;;  %6098 = vmatpush3.bf16.msra.mxu0 %v6409_v44  ;;  %v3534_v44 = vshrl.u32 %v5273_v60, 16  ;;  %v3186_v30 = vshll.u32 %v6413_v10, 16 }
 0x185   : > { %6003 = vmatprep.mubr.bf16.mxu1 %v5206_v12  ;;  %6064 = vmatpush3.bf16.msra.mxu1 %v6408_v54  ;;  %v7394_v54 = vld [vmem:[#allocation2 + $0x40] sm:$0xf]  ;;  %v3184_v12 = vor.u32 %v3182_v27, %v3180_v2  ;;  %v3181_v45 = vsel %vm2003_vm1, %v3176_v61, %v3180_v2  ;;  %v7438_v27 = vld [vmem:[#allocation2 + $0x64] sm:$0xf]  ;;  %v5310_v61 = vcombine.low %v7377_v21, %v7371_v34  ;;  %v7468_v21 = vld [vmem:[#allocation2 + $0x70] sm:$0xf] }
 0x186   : > { %6065 = vmatprep.subr.bf16.mxu1 %v6414_v56  ;;  %6099 = vmatprep.subr.bf16.mxu0 %v6411_v5  ;;  %v5276_v24 = vcombine.low %v7394_v54, %v7396_v8  ;;  %v3536_v25 = vrot.slane %v3534_v44, 3  ;;  %v3188_v3 = vrot.slane %v3186_v30, 1  ;;  %v6435_v44 = vld [vmem:[%s8039_s6 + $0x220] sm:$0xff]   ;;  %v5280_v46 = vcombine.low %v7436_v4, %v7438_v27 }
 0x187   : > { %6036 = vmatmul.mubr.bf16.gmra.mxu0 %v3149_v16  ;;  %v3190_v16 = vshrl.u32 %v6413_v10, 16 }
 0x188   : > { %6039 = vmatprep.mubr.bf16.mxu0 %v3157_v19  ;;  %6100 = vmatpush3.bf16.msra.mxu0 %v6411_v5  ;;  %v3532_v5 = vsel %vm1592_vm0, %v3523_v11, %v3531_v47  ;;  %v3189_v52 = vsel %vm2003_vm1, %v3184_v12, %v3188_v3  ;;  %v3561_v19 = vshrl.u32 %v5276_v24, 16  ;;  %v3564_v39 = vshll.u32 %v5276_v24, 16  ;;  %v6437_v24 = vld [vmem:[%s8039_s6 + $0x218] sm:$0xff]  }
 0x189   : > { %6066 = vmatpush3.bf16.msra.mxu1 %v6414_v56  ;;  %6101 = vmatprep.subr.bf16.mxu0 %v6417_v18  ;;  %v7402_v56 = vld [vmem:[#allocation2 + $0x3c] sm:$0xf]  ;;  %v3192_v49 = vor.u32 %v3190_v16, %v3188_v3  ;;  %v7460_v16 = vld [vmem:[#allocation2 + $0x68] sm:$0xf] }
 0x18a   : > { %6131 = vmatprep.subr.bf16.mxu1 %v7360_v40  ;;  %v5275_v53 = vcombine.low %v7400_v48, %v7402_v56  ;;  %v3563_v0 = vrot.slane %v3561_v19, 3  ;;  %v3566_v14 = vrot.slane %v3564_v39, 4 }
 0x18b   : > { %v3197_v58 = vsel %vm2003_vm1, %v3192_v49, %v3196_v22  ;;  %v6446_v49 = vld [vmem:[%s8039_s6 + $0x208] sm:$0xff]  }
 0x18c   : > { %6004 = vmatmul.mubr.bf16.gmra.mxu1 %v5207_v31  ;;  %6102 = vmatpush3.bf16.msra.mxu0 %v6417_v18  ;;  %v3549_v18 = vor.u32 %v3548_v13, %v3545_v51  ;;  %v3540_v31 = vor.u32 %v3539_v26, %v3536_v25  ;;  %v3552_v32 = vshrl.u32 %v5275_v53, 16  ;;  %v3555_v15 = vshll.u32 %v5275_v53, 16 }
 0x18d   : > { %6007 = vmatprep.mubr.bf16.mxu1 %v5208_v17  ;;  %6103 = vmatprep.subr.bf16.mxu0 %v6419_v42  ;;  %v7421_v17 = vld [vmem:[#allocation2 + $0x4c] sm:$0xf]  ;;  %v3567_v2 = vor.u32 %v3566_v14, %v3563_v0  ;;  %v5309_v13 = vcombine.low %v7337_v7, %v7369_v1  ;;  %v3597_v25 = vshrl.u32 %v5280_v46, 16  ;;  %v3600_v26 = vshll.u32 %v5280_v46, 16  ;;  %v6441_v1 = vld [vmem:[%s8039_s6 + $0x210] sm:$0xff]  }
 0x18e   : > { %v3550_v59 = vsel %vm1592_vm0, %v3540_v31, %v3549_v18  ;;  %v3554_v60 = vrot.slane %v3552_v32, 3  ;;  %v3557_v33 = vrot.slane %v3555_v15, 4  ;;  %v5277_v10 = vcombine.low %v7419_v57, %v7421_v17  ;;  %v7462_v7 = vld [vmem:[#allocation2 + $0x6c] sm:$0xf] }
 0x18f   : > { %6040 = vmatmul.mubr.bf16.gmra.mxu0 %v3165_v62  ;;  %v5308_v62 = vcombine.low %v7350_v50, %v7335_v41  ;;  %v7445_v41 = vld [vmem:[#allocation2 + $0x5c] sm:$0xf]  ;;  %v3599_v19 = vrot.slane %v3597_v25, 3  ;;  %v3602_v39 = vrot.slane %v3600_v26, 4  ;;  %v5281_v20 = vcombine.low %v7460_v16, %v7462_v7  ;;  %v6455_v25 = vld [vmem:[#allocation2 + $0x34] sm:$0xff]  }
 0x190   : > { %6043 = vmatprep.mubr.bf16.mxu0 %v3173_v29  ;;  %6104 = vmatpush3.bf16.msra.mxu0 %v6419_v42  ;;  %v3541_v42 = vsel %vm1592_vm0, %v3531_v47, %v3540_v31  ;;  %v3558_v29 = vor.u32 %v3557_v33, %v3554_v60  ;;  %v3570_v47 = vshrl.u32 %v5277_v10, 16  ;;  %v3573_v55 = vshll.u32 %v5277_v10, 16  ;;  %v6450_v60 = vld [vmem:[%s8039_s6 + $0x200] sm:$0xff]  }
 0x191   : > { %6105 = vmatprep.subr.bf16.mxu0 %v6424_v6  ;;  %v5279_v51 = vcombine.low %v7443_v37, %v7445_v41  ;;  %v5311_v15 = vcombine.low %v7373_v9, %v7400_v48  ;;  %v3606_v0 = vshrl.u32 %v5281_v20, 16  ;;  %v3609_v14 = vshll.u32 %v5281_v20, 16  ;;  %v7484_v48 = vld [vmem:[#allocation2 + $0x78] sm:$0xf] }
 0x192   : > { %v3559_v50 = vsel %vm1592_vm0, %v3549_v18, %v3558_v29  ;;  %v3572_v12 = vrot.slane %v3570_v47, 3 }
 0x193   : > { %v3588_v3 = vshrl.u32 %v5279_v51, 16  ;;  %v3611_v10 = vrot.slane %v3609_v14, 4 }
 0x194   : > { %6008 = vmatmul.mubr.bf16.gmra.mxu1 %v5209_v38  ;;  %6106 = vmatpush3.bf16.msra.mxu0 %v6424_v6  ;;  %v3579_v6 = vshrl.u32 %v5278_v23, 16  ;;  %v3568_v38 = vsel %vm1592_vm0, %v3558_v29, %v3567_v2 }
 0x195   : > { %6067 = vmatprep.mubr.bf16.mxu1 %v3532_v5  ;;  %v3575_v5 = vrot.slane %v3573_v55, 4  ;;  %v3590_v31 = vrot.slane %v3588_v3, 3 }
 0x196   : > { %v3581_v30 = vrot.slane %v3579_v6, 3 }
 0x197   : > { %6044 = vmatmul.mubr.bf16.gmra.mxu0 %v3181_v45  ;;  %v3576_v53 = vor.u32 %v3575_v5, %v3572_v12  ;;  %v3591_v45 = vshll.u32 %v5279_v51, 16  ;;  %v5316_v51 = vcombine.low %v7445_v41, %v7436_v4  ;;  %v4216_v4 = vshll.u32 %v6455_v25, 16 }
 0x198   : > { %6047 = vmatprep.mubr.bf16.mxu0 %v3189_v52  ;;  %v7470_v52 = vld [vmem:[#allocation2 + $0x74] sm:$0xf]  ;;  %v5318_v41 = vcombine.low %v7462_v7, %v7468_v21 }
 0x199   : > { %v3577_v34 = vsel %vm1592_vm0, %v3567_v2, %v3576_v53  ;;  %v3593_v32 = vrot.slane %v3591_v45, 4  ;;  %v6456_v45 = vld [vmem:[#allocation2 + $0x3c] sm:$0xff]   ;;  %v4218_v20 = vrot.slane %v4216_v4, 1  ;;  %v5319_v7 = vcombine.low %v7470_v52, %v7484_v48 }
 0x19c   : > { %6068 = vmatmul.mubr.bf16.vlgmr.msra.gmra.mxu1 %v3541_v42  ;;  %v5312_v42 = vcombine.low %v7402_v56, %v7394_v54  ;;  %v3608_v56 = vrot.slane %v3606_v0, 3 }
 0x19d   : > { %6132 = vmatpush3.bf16.msra.mxu1 %v7360_v40  ;;  %6071 = vmatprep.mubr.bf16.mxu1 %v3550_v59  ;;  %v3582_v40 = vshll.u32 %v5278_v23, 16  ;;  %v3603_v59 = vor.u32 %v3602_v39, %v3599_v19  ;;  %v3594_v23 = vor.u32 %v3593_v32, %v3590_v31  ;;  %v6457_v31 = vld [vmem:[#allocation2 + $0x44] sm:$0xff]  }
 0x19e   : > { %6133 = vmatprep.subr.bf16.mxu1 %v6425_v36  ;;  %v3612_v29 = vor.u32 %v3611_v10, %v3608_v56 }
 0x19f   : > { %6048 = vmatmul.mubr.bf16.gmra.mxu0 %v3197_v58  ;;  %v3584_v11 = vrot.slane %v3582_v40, 4  ;;  %v3604_v54 = vsel %vm1592_vm0, %v3594_v23, %v3603_v59  ;;  %v5283_v58 = vcombine.low %v7484_v48, %v7484_v48  ;;  %v5314_v40 = vcombine.low %v7421_v17, %v7412_v28 }
 0x1a0   : > { %6107 = vmatprep.mubr.bf16.mxu0 %v5308_v62  ;;  %v5313_v62 = vcombine.low %v7396_v8, %v7419_v57  ;;  %v5315_v28 = vcombine.low %v7414_v35, %v7443_v37  ;;  %v5317_v35 = vcombine.low %v7438_v27, %v7460_v16 }
 0x1a1   : > { %6134 = vmatpush3.bf16.msra.mxu1 %v6425_v36  ;;  %v3585_v63 = vor.u32 %v3584_v11, %v3581_v30  ;;  %v5282_v36 = vcombine.low %v7468_v21, %v7470_v52  ;;  %v3624_v55 = vshrl.u32 %v5283_v58, 16  ;;  %v3613_v30 = vsel %vm1592_vm0, %v3603_v59, %v3612_v29  ;;  %v6454_v11 = vld [vmem:[#allocation2 + $0x2c] sm:$0xff]  }
 0x1a2   : > { %6135 = vmatprep.subr.bf16.mxu1 %v6430_v43  ;;  %v4212_v37 = vshrl.u32 %v6454_v11, 16  ;;  %v4220_v59 = vshrl.u32 %v6455_v25, 16 }
 0x1a3   : > { %v3586_v18 = vsel %vm1592_vm0, %v3576_v53, %v3585_v63  ;;  %v3615_v22 = vshrl.u32 %v5282_v36, 16  ;;  %v3618_v9 = vshll.u32 %v5282_v36, 16  ;;  %v3595_v33 = vsel %vm1592_vm0, %v3585_v63, %v3594_v23  ;;  %v6458_v36 = vld [vmem:[#allocation2 + $0x4c] sm:$0xff]  }
 0x1a4   : > { %6072 = vmatmul.mubr.bf16.gmra.mxu1 %v3559_v50  ;;  %v3626_v46 = vrot.slane %v3624_v55, 3  ;;  %v4240_v23 = vshll.u32 %v6458_v36, 16 }
 0x1a5   : > { %6075 = vmatprep.mubr.bf16.mxu1 %v3568_v38  ;;  %6136 = vmatpush3.bf16.msra.mxu1 %v6430_v43  ;;  %v6451_v43 = vld [vmem:[#allocation2 + $0x1c] sm:$0xff]   ;;  %v3617_v2 = vrot.slane %v3615_v22, 3  ;;  %v3620_v6 = vrot.slane %v3618_v9, 4  ;;  %v6452_v38 = vld [vmem:[#allocation2 + $0x24] sm:$0xff]   ;;  %v4222_v22 = vor.u32 %v4220_v59, %v4218_v20 }
 0x1a6   : > { %6137 = vmatprep.subr.bf16.mxu1 %v6435_v44  ;;  %v4195_v47 = vshll.u32 %v6451_v43, 16  ;;  %v4193_v17 = vshrl.u32 %v6451_v43, 16  ;;  %v4200_v5 = vshll.u32 %v6452_v38, 16  ;;  %v4242_v48 = vrot.slane %v4240_v23, 1  ;;  %v6460_v43 = vld [vmem:[#allocation2 + $0x5c] sm:$0xff]  }
 0x1a7   : > { %6108 = vmatmul.mubr.bf16.vlgmr.msra.gmra.mxu0 %v5309_v13  ;;  %v3621_v50 = vor.u32 %v3620_v6, %v3617_v2  ;;  %v4244_v6 = vshrl.u32 %v6458_v36, 16 }
 0x1a8   : > { %6111 = vmatprep.mubr.bf16.mxu0 %v5310_v61  ;;  %v4197_v57 = vrot.slane %v4195_v47, 1  ;;  %v4202_v63 = vrot.slane %v4200_v5, 1  ;;  %v4236_v47 = vshrl.u32 %v6457_v31, 16 }
 0x1a9   : > { %6138 = vmatpush3.bf16.msra.mxu1 %v6435_v44  ;;  %v3627_v44 = vshll.u32 %v5283_v58, 16  ;;  %v3622_v8 = vsel %vm1592_vm0, %v3612_v29, %v3621_v50 }
 0x1aa   : > { %6139 = vmatprep.subr.bf16.mxu1 %v6437_v24  ;;  %v4198_v13 = vor.u32 %v4197_v57, %v4193_v17 }
 0x1ab   : > { %v3629_v12 = vrot.slane %v3627_v44, 4 }
 0x1ac   : > { %6076 = vmatmul.mubr.bf16.gmra.mxu1 %v3577_v34  ;;  %v4203_v53 = vsel %vm2003_vm1, %v4198_v13, %v4202_v63 }
 0x1ad   : > { %6079 = vmatprep.mubr.bf16.mxu1 %v3586_v18  ;;  %6140 = vmatpush3.bf16.msra.mxu1 %v6437_v24  ;;  %v4208_v24 = vshll.u32 %v6454_v11, 16  ;;  %v3630_v61 = vor.u32 %v3629_v12, %v3626_v46  ;;  %v4224_v18 = vshll.u32 %v6456_v45, 16  ;;  %v6461_v46 = vld [vmem:[#allocation2 + $0x64] sm:$0xff]  }
 0x1ae   : > { %6141 = vmatprep.subr.bf16.mxu1 %v6441_v1 }
 0x1af   : > { %6112 = vmatmul.mubr.bf16.gmra.mxu0 %v5311_v15  ;;  %v3631_v26 = vsel %vm1592_vm0, %v3621_v50, %v3630_v61  ;;  %v4210_v3 = vrot.slane %v4208_v24, 1  ;;  %v4226_v16 = vrot.slane %v4224_v18, 1  ;;  %v4246_v50 = vor.u32 %v4244_v6, %v4242_v48  ;;  %v6463_v18 = vld [vmem:[#allocation2 + $0x74] sm:$0xff]  }
 0x1b0   : > { %6115 = vmatprep.mubr.bf16.mxu0 %v5312_v42  ;;  %v4232_v42 = vshll.u32 %v6457_v31, 16  ;;  %v4260_v61 = vshrl.u32 %v6460_v43, 16 }
 0x1b1   : > { %6142 = vmatpush3.bf16.msra.mxu1 %v6441_v1  ;;  %v4204_v1 = vshrl.u32 %v6452_v38, 16  ;;  %v4214_v34 = vor.u32 %v4212_v37, %v4210_v3  ;;  %v4256_v38 = vshll.u32 %v6460_v43, 16 }
 0x1b2   : > { %6143 = vmatprep.subr.bf16.mxu1 %v6446_v49 }
 0x1b3   : > { %v4206_v19 = vor.u32 %v4204_v1, %v4202_v63  ;;  %v4219_v15 = vsel %vm2003_vm1, %v4214_v34, %v4218_v20  ;;  %v4258_v5 = vrot.slane %v4256_v38, 1  ;;  %v4264_v63 = vshll.u32 %v6461_v46, 16 }
 0x1b4   : > { %6080 = vmatmul.mubr.bf16.gmra.mxu1 %v3595_v33  ;;  %v6459_v33 = vld [vmem:[#allocation2 + $0x54] sm:$0xff]  }
 0x1b5   : > { %6083 = vmatprep.mubr.bf16.mxu1 %v3604_v54  ;;  %6144 = vmatpush3.bf16.msra.mxu1 %v6446_v49  ;;  %v4211_v32 = vsel %vm2003_vm1, %v4206_v19, %v4210_v3  ;;  %v4228_v49 = vshrl.u32 %v6456_v45, 16  ;;  %v4227_v54 = vsel %vm2003_vm1, %v4222_v22, %v4226_v16  ;;  %v4262_v45 = vor.u32 %v4260_v61, %v4258_v5 }
 0x1b6   : > { %6145 = vmatprep.subr.bf16.mxu1 %v6450_v60  ;;  %v4266_v34 = vrot.slane %v4264_v63, 1 }
 0x1b7   : > { %6116 = vmatmul.mubr.bf16.gmra.mxu0 %v5313_v62  ;;  %v4230_v14 = vor.u32 %v4228_v49, %v4226_v16  ;;  %v4268_v16 = vshrl.u32 %v6461_v46, 16 }
 0x1b8   : > { %6119 = vmatprep.mubr.bf16.mxu0 %v5314_v40  ;;  %v4248_v40 = vshll.u32 %v6459_v33, 16 }
 0x1b9   : > { %6146 = vmatpush3.bf16.msra.mxu1 %v6450_v60  ;;  %v4234_v60 = vrot.slane %v4232_v42, 1  ;;  %v4270_v49 = vor.u32 %v4268_v16, %v4266_v34  ;;  %v6464_v42 = vld [vmem:[#allocation2 + $0x7c] ss:$0 sps:$4 sm:$0x11]  }
 0x1ba   : > { %v4250_v11 = vrot.slane %v4248_v40, 1 }
 0x1bb   : > { %v4235_v10 = vsel %vm2003_vm1, %v4230_v14, %v4234_v60 }
 0x1bc   : > { %6084 = vmatmul.mubr.bf16.gmra.mxu1 %v3613_v30  ;;  %v4251_v17 = vsel %vm2003_vm1, %v4246_v50, %v4250_v11 }
 0x1bd   : > { %6087 = vmatprep.mubr.bf16.mxu1 %v3622_v8  ;;  %v4238_v8 = vor.u32 %v4236_v47, %v4234_v60 }
 0x1bf   : > { %6120 = vmatmul.mubr.bf16.gmra.mxu0 %v5315_v28  ;;  %v4243_v12 = vsel %vm2003_vm1, %v4238_v8, %v4242_v48 }
 0x1c0   : > { %6123 = vmatprep.mubr.bf16.mxu0 %v5316_v51  ;;  %v6462_v51 = vld [vmem:[#allocation2 + $0x6c] sm:$0xff]  }
 0x1c4   : > { %6088 = vmatmul.mubr.bf16.gmra.mxu1 %v3631_v26  ;;  %v4252_v26 = vshrl.u32 %v6459_v33, 16 }
 0x1c5   : > { %6147 = vmatprep.mubr.bf16.mxu1 %v4203_v53 }
 0x1c6   : > { %v4254_v4 = vor.u32 %v4252_v26, %v4250_v11 }
 0x1c7   : > { %6124 = vmatmul.mubr.bf16.gmra.mxu0 %v5317_v35  ;;  %v4272_v35 = vshll.u32 %v6462_v51, 16 }
 0x1c8   : > { %6127 = vmatprep.mubr.bf16.mxu0 %v5318_v41 }
 0x1c9   : > { %v5829_v39 = vpop.f32.mrf.mxu1 }
 0x1cb   : > { %v1482_v27 = vpop.f32.mrf.mxu1 }
 0x1cc   : > { %6148 = vmatmul.mubr.bf16.vlgmr.msra.gmra.mxu1 %v4211_v32  ;;  %v4267_v32 = vsel %vm2003_vm1, %v4262_v45, %v4266_v34 }
 0x1cd   : > { %6151 = vmatprep.mubr.bf16.mxu1 %v4219_v15  ;;  %v5830_v21 = vpop.f32.mrf.mxu1  ;;  %v4274_v15 = vrot.slane %v4272_v35, 1 }
 0x1cf   : > { %6128 = vmatmul.mubr.bf16.gmra.mxu0 %v5319_v7  ;;  %v7513_v0 = vpop.f32.mrf.mxu1  ;;  %v4276_v7 = vshrl.u32 %v6462_v51, 16 }
 0x1d1   : > { %v5833_v9 = vpop.f32.mrf.mxu1  ;;  %v4278_v23 = vor.u32 %v4276_v7, %v4274_v15 }
 0x1d3   : > { %v5869_v56 = vpop.f32.mrf.mxu0  ;;  %v1498_v52 = vpop.f32.mrf.mxu1 }
 0x1d4   : > { %6152 = vmatmul.mubr.bf16.gmra.mxu1 %v4227_v54  ;;  %v7517_v58 = vadd.f32 %v5869_v56, %v5829_v39  ;;  %v4259_v39 = vsel %vm2003_vm1, %v4254_v4, %v4258_v5  ;;  %v4275_v56 = vsel %vm2003_vm1, %v4270_v49, %v4274_v15  ;;  %v6466_v15 = vld [vmem:[%s8041_s8 + $0x30] sm:$0xff]  }
 0x1d5   : > { %6155 = vmatprep.mubr.bf16.mxu1 %v4235_v10  ;;  %v1803_v62 = vpop.f32.mrf.mxu0  ;;  %v5834_v2 = vpop.f32.mrf.mxu1  ;;  %v4288_v10 = vshll.u32 %v6464_v42, 16 }
 0x1d6   : > { %v7519_v29 = vadd.f32 %v1803_v62, %v1482_v27 }
 0x1d7   : > { %v5870_v55 = vpop.f32.mrf.mxu0  ;;  %v1501_v44 = vpop.f32.mrf.mxu1 }
 0x1d8   : > { %v7521_v30 = vadd.f32 %v5870_v55, %v5830_v21  ;;  %v4280_v21 = vshll.u32 %v6463_v18, 16  ;;  %v4290_v55 = vrot.slane %v4288_v10, 1 }
 0x1d9   : > { %v7523_v57 = vpop.f32.mrf.mxu0 }
 0x1da   : > { %v4282_v33 = vrot.slane %v4280_v21, 1  ;;  %v1807_v7 = vadd.f32 %v7523_v57, %v7513_v0  ;;  %v6467_v0 = vld [vmem:[%s8041_s8 + $0x28] sm:$0xff]  }
 0x1dc   : > { %v5837_v28 = vpop.f32.mrf.mxu1  ;;  %6156 = vmatmul.mubr.bf16.gmra.mxu1 %v4243_v12  ;;  %v4283_v43 = vsel %vm2003_vm1, %v4278_v23, %v4282_v33 }
 0x1dd   : > { %6159 = vmatprep.mubr.bf16.mxu1 %v4251_v17  ;;  %v5873_v13 = vpop.f32.mrf.mxu0 }
 0x1de   : > { %v1514_v24 = vpop.f32.mrf.mxu1  ;;  %v7527_v25 = vadd.f32 %v5873_v13, %v5833_v9 }
 0x1df   : > { %v1819_v53 = vpop.f32.mrf.mxu0 }
 0x1e0   : > { %v5838_v3 = vpop.f32.mrf.mxu1  ;;  %v7529_v37 = vadd.f32 %v1819_v53, %v1498_v52  ;;  %v6465_v53 = vld [vmem:[%s8041_s8 + $0x38] sm:$0xff]  }
 0x1e1   : > { %v5874_v41 = vpop.f32.mrf.mxu0  ;;  %6171 = vmatprep.subr.bf16.mxu0 %v6465_v53  ;;  %6211 = vmatprep.subr.bf16.mxu1 %v6465_v53 }
 0x1e2   : > { %v7531_v1 = vpop.f32.mrf.mxu1  ;;  %v7533_v19 = vadd.f32 %v5874_v41, %v5834_v2  ;;  %v4284_v2 = vshrl.u32 %v6463_v18, 16  ;;  %6172 = vmatpush3.bf16.msra.mxu0 %v6465_v53  ;;  %6219 = vmatpush3.bf16.msra.mxu1 %v6465_v53 }
 0x1e3   : > { %v1822_v20 = vpop.f32.mrf.mxu0  ;;  %6173 = vmatprep.subr.bf16.mxu0 %v6466_v15  ;;  %6212 = vmatprep.subr.bf16.mxu1 %v6466_v15 }
 0x1e4   : > { %v5841_v31 = vpop.f32.mrf.mxu1  ;;  %6160 = vmatmul.mubr.bf16.gmra.mxu1 %v4259_v39  ;;  %v7537_v27 = vadd.f32 %v1822_v20, %v1501_v44  ;;  %v4286_v47 = vor.u32 %v4284_v2, %v4282_v33 }
 0x1e5   : > { %6163 = vmatprep.mubr.bf16.mxu1 %v4267_v32 }
 0x1e6   : > { %v1530_v36 = vpop.f32.mrf.mxu1  ;;  %v4291_v12 = vsel %vm2003_vm1, %v4286_v47, %v4290_v55  ;;  %6174 = vmatpush3.bf16.msra.mxu0 %v6466_v15  ;;  %6220 = vmatpush3.bf16.msra.mxu1 %v6466_v15 }
 0x1e7   : > { %v5877_v59 = vpop.f32.mrf.mxu0  ;;  %6175 = vmatprep.subr.bf16.mxu0 %v6467_v0  ;;  %6213 = vmatprep.subr.bf16.mxu1 %v6467_v0 }
 0x1e8   : > { %v5842_v14 = vpop.f32.mrf.mxu1  ;;  %v7539_v22 = vadd.f32 %v5877_v59, %v5837_v28 }
 0x1e9   : > { %v1835_v9 = vpop.f32.mrf.mxu0 }
 0x1ea   : > { %v1533_v60 = vpop.f32.mrf.mxu1  ;;  %v7541_v54 = vadd.f32 %v1835_v9, %v1514_v24  ;;  %6176 = vmatpush3.bf16.msra.mxu0 %v6467_v0  ;;  %6221 = vmatpush3.bf16.msra.mxu1 %v6467_v0 }
 0x1eb   : > { %v5878_v52 = vpop.f32.mrf.mxu0 }
 0x1ec   : > { %v5845_v48 = vpop.f32.mrf.mxu1  ;;  %6164 = vmatmul.mubr.bf16.gmra.mxu1 %v4275_v56  ;;  %v7545_v62 = vadd.f32 %v5878_v52, %v5838_v3 }
 0x1ed   : > { %6167 = vmatprep.mubr.bf16.mxu1 %v4283_v43  ;;  %v7547_v6 = vpop.f32.mrf.mxu0 }
 0x1ee   : > { %v1546_v40 = vpop.f32.mrf.mxu1 }
 0x1ef   : > { %v5881_v44 = vpop.f32.mrf.mxu0 }
 0x1f0   : > { %v5846_v50 = vpop.f32.mrf.mxu1  ;;  %v7549_v38 = vadd.f32 %v5881_v44, %v5841_v31 }
 0x1f1   : > { %v1851_v8 = vpop.f32.mrf.mxu0 }
 0x1f2   : > { %v1549_v11 = vpop.f32.mrf.mxu1  ;;  %v7551_v46 = vadd.f32 %v1851_v8, %v1530_v36 }
 0x1f3   : > { %v5882_v28 = vpop.f32.mrf.mxu0 }
 0x1f4   : > { %v5849_v17 = vpop.f32.mrf.mxu1  ;;  %6168 = vmatmul.mubr.bf16.gmra.mxu1 %v4291_v12  ;;  %v7554_v5 = vadd.f32 %v5882_v28, %v5842_v14 }
 0x1f5   : > { %v1854_v51 = vpop.f32.mrf.mxu0 }
 0x1f6   : > { %v1562_v13 = vpop.f32.mrf.mxu1  ;;  %v7556_v24 = vadd.f32 %v1854_v51, %v1533_v60  ;;  %v1839_v51 = vadd.f32 %v7547_v6, %v7531_v1 }
 0x1f7   : > { %v5885_v61 = vpop.f32.mrf.mxu0 }
 0x1f8   : > { %v5850_v63 = vpop.f32.mrf.mxu1  ;;  %v7558_v26 = vadd.f32 %v5885_v61, %v5845_v48 }
 0x1f9   : > { %v1867_v3 = vpop.f32.mrf.mxu0 }
 0x1fa   : > { %v1565_v45 = vpop.f32.mrf.mxu1  ;;  %v7563_v35 = vadd.f32 %v1867_v3, %v1546_v40 }
 0x1fb   : > { %v5886_v4 = vpop.f32.mrf.mxu0 }
 0x1fc   : > { %v5909_v41 = vpop.f32.mrf.mxu1  ;;  %v7565_v34 = vadd.f32 %v5886_v4, %v5846_v50 }
 0x1fd   : > { %v2295_v18 = vadd.f32 %v5909_v41, %v7517_v58  ;;  %v1870_v39 = vpop.f32.mrf.mxu0 }
 0x1fe   : > { %v2198_v20 = vpop.f32.mrf.mxu1  ;;  %v7568_v31 = vadd.f32 %v1870_v39, %v1549_v11 }
 0x1ff   : > { %v2293_v32 = vadd.f32 %v2198_v20, %v7519_v29  ;;  %v5889_v16 = vpop.f32.mrf.mxu0  ;;  %v6470_v20 = vld [vmem:[%s8041_s8 + $0x10] sm:$0xff]  }
 0x200   : > { %v5910_v36 = vpop.f32.mrf.mxu1  ;;  %v7576_v21 = vadd.f32 %v5889_v16, %v5849_v17 }
 0x201   : > { %v2296_v49 = vadd.f32 %v5910_v36, %v7521_v30  ;;  %v1883_v58 = vpop.f32.mrf.mxu0 }
 0x202   : > { %v2201_v42 = vpop.f32.mrf.mxu1  ;;  %v7579_v29 = vadd.f32 %v1883_v58, %v1562_v13 }
 0x203   : > { %v2294_v59 = vadd.f32 %v2201_v42, %v1807_v7  ;;  %v5890_v14 = vpop.f32.mrf.mxu0 }
 0x204   : > { %v5913_v23 = vpop.f32.mrf.mxu1  ;;  %v7581_v9 = vadd.f32 %v5890_v14, %v5850_v63 }
 0x205   : > { %v2299_v60 = vadd.f32 %v5913_v23, %v7527_v25  ;;  %v1886_v30 = vpop.f32.mrf.mxu0  ;;  %v6472_v23 = vld [vmem:[%s8041_s8] sm:$0xff]  }
 0x206   : > { %v2214_v57 = vpop.f32.mrf.mxu1  ;;  %v7587_v33 = vadd.f32 %v1886_v30, %v1565_v45 }
 0x207   : > { %v2297_v56 = vadd.f32 %v2214_v57, %v7529_v37  ;;  %v5949_v10 = vpop.f32.mrf.mxu0  ;;  %v6468_v37 = vld [vmem:[%s8041_s8 + $0x20] sm:$0xff]  }
 0x208   : > { %v5914_v52 = vpop.f32.mrf.mxu1  ;;  %v7590_v48 = vadd.f32 %v5949_v10, %v2295_v18  ;;  %6177 = vmatprep.subr.bf16.mxu0 %v6468_v37  ;;  %6214 = vmatprep.subr.bf16.mxu1 %v6468_v37 }
 0x209   : > { %v2300_v25 = vadd.f32 %v5914_v52, %v7533_v19  ;;  %v2632_v43 = vpop.f32.mrf.mxu0  ;;  %6178 = vmatpush3.bf16.msra.mxu0 %v6468_v37  ;;  %6222 = vmatpush3.bf16.msra.mxu1 %v6468_v37 }
 0x20a   : > { %v2217_v2 = vpop.f32.mrf.mxu1  ;;  %v7593_v40 = vadd.f32 %v2632_v43, %v2293_v32 }
 0x20b   : > { %v2298_v47 = vadd.f32 %v2217_v2, %v7537_v27  ;;  %v5950_v55 = vpop.f32.mrf.mxu0 }
 0x20c   : > { %v5917_v44 = vpop.f32.mrf.mxu1  ;;  %v7599_v50 = vadd.f32 %v5950_v55, %v2296_v49 }
 0x20d   : > { %v2303_v8 = vadd.f32 %v5917_v44, %v7539_v22  ;;  %v2635_v11 = vpop.f32.mrf.mxu0  ;;  %v6469_v22 = vld [vmem:[%s8041_s8 + $0x18] sm:$0xff]  }
 0x20e   : > { %v2230_v19 = vpop.f32.mrf.mxu1  ;;  %v7602_v12 = vadd.f32 %v2635_v11, %v2294_v59  ;;  %6179 = vmatprep.subr.bf16.mxu0 %v6469_v22  ;;  %6215 = vmatprep.subr.bf16.mxu1 %v6469_v22 }
 0x20f   : > { %v2301_v27 = vadd.f32 %v2230_v19, %v7541_v54  ;;  %v5953_v28 = vpop.f32.mrf.mxu0  ;;  %6180 = vmatpush3.bf16.msra.mxu0 %v6469_v22  ;;  %6223 = vmatpush3.bf16.msra.mxu1 %v6469_v22 }
 0x210   : > { %v5918_v17 = vpop.f32.mrf.mxu1  ;;  %v7607_v13 = vadd.f32 %v5953_v28, %v2299_v60  ;;  %6181 = vmatprep.subr.bf16.mxu0 %v6470_v20  ;;  %6216 = vmatprep.subr.bf16.mxu1 %v6470_v20 }
 0x211   : > { %v2304_v61 = vadd.f32 %v5918_v17, %v7545_v62  ;;  %v2648_v63 = vpop.f32.mrf.mxu0 }
 0x212   : > { %v2233_v53 = vpop.f32.mrf.mxu1  ;;  %v7613_v3 = vadd.f32 %v2648_v63, %v2297_v56 }
 0x213   : > { %v2302_v45 = vadd.f32 %v2233_v53, %v1839_v51  ;;  %v5954_v54 = vpop.f32.mrf.mxu0  ;;  %6182 = vmatpush3.bf16.msra.mxu0 %v6470_v20  ;;  %6224 = vmatpush3.bf16.msra.mxu1 %v6470_v20 }
 0x214   : > { %v5921_v4 = vpop.f32.mrf.mxu1  ;;  %v7615_v1 = vadd.f32 %v5954_v54, %v2300_v25 }
 0x215   : > { %v2307_v6 = vadd.f32 %v5921_v4, %v7549_v38  ;;  %v2651_v62 = vpop.f32.mrf.mxu0  ;;  %v6471_v38 = vld [vmem:[%s8041_s8 + $0x8] sm:$0xff]  }
 0x216   : > { %v2246_v41 = vpop.f32.mrf.mxu1  ;;  %v7618_v18 = vadd.f32 %v2651_v62, %v2298_v47  ;;  %6183 = vmatprep.subr.bf16.mxu0 %v6471_v38  ;;  %6217 = vmatprep.subr.bf16.mxu1 %v6471_v38 }
 0x217   : > { %v2305_v39 = vadd.f32 %v2246_v41, %v7551_v46  ;;  %v5957_v32 = vpop.f32.mrf.mxu0  ;;  %6184 = vmatpush3.bf16.msra.mxu0 %v6471_v38  ;;  %6225 = vmatpush3.bf16.msra.mxu1 %v6471_v38 }
 0x218   : > { %v5922_v15 = vpop.f32.mrf.mxu1  ;;  %v7624_v16 = vadd.f32 %v5957_v32, %v2303_v8  ;;  %6185 = vmatprep.subr.bf16.mxu0 %v6472_v23  ;;  %6218 = vmatprep.subr.bf16.mxu1 %v6472_v23 }
 0x219   : > { %v2308_v36 = vadd.f32 %v5922_v15, %v7554_v5  ;;  %v2664_v7 = vpop.f32.mrf.mxu0 }
 0x21a   : > { %v2249_v49 = vpop.f32.mrf.mxu1  ;;  %v7630_v46 = vadd.f32 %v2664_v7, %v2301_v27 }
 0x21b   : > { %v2306_v58 = vadd.f32 %v2249_v49, %v7556_v24  ;;  %v5958_v42 = vpop.f32.mrf.mxu0  ;;  %6186 = vmatpush3.bf16.msra.mxu0 %v6472_v23  ;;  %6226 = vmatpush3.bf16.msra.mxu1 %v6472_v23 }
 0x21c   : > { %v5925_v59 = vpop.f32.mrf.mxu1  ;;  %v7633_v14 = vadd.f32 %v5958_v42, %v2304_v61 }
 0x21d   : > { %v2311_v5 = vadd.f32 %v5925_v59, %v7558_v26  ;;  %v2667_v60 = vpop.f32.mrf.mxu0 }
 0x21e   : > { %v2262_v0 = vpop.f32.mrf.mxu1  ;;  %v7639_v30 = vadd.f32 %v2667_v60, %v2302_v45 }
 0x21f   : > { %v2309_v24 = vadd.f32 %v2262_v0, %v7563_v35  ;;  %v5961_v57 = vpop.f32.mrf.mxu0 }
 0x220   : > { %v5926_v56 = vpop.f32.mrf.mxu1  ;;  %v7642_v10 = vadd.f32 %v5961_v57, %v2307_v6 }
 0x221   : > { %v2312_v26 = vadd.f32 %v5926_v56, %v7565_v34  ;;  %v2680_v52 = vpop.f32.mrf.mxu0 }
 0x222   : > { %v2265_v25 = vpop.f32.mrf.mxu1  ;;  %v7645_v43 = vadd.f32 %v2680_v52, %v2305_v39 }
 0x223   : > { %v2310_v2 = vadd.f32 %v2265_v25, %v7568_v31  ;;  %v5962_v47 = vpop.f32.mrf.mxu0 }
 0x224   : > { %v5929_v37 = vpop.f32.mrf.mxu1  ;;  %v7648_v55 = vadd.f32 %v5962_v47, %v2308_v36 }
 0x225   : > { %v2315_v35 = vadd.f32 %v5929_v37, %v7576_v21  ;;  %v2683_v44 = vpop.f32.mrf.mxu0 }
 0x226   : > { %v2278_v8 = vpop.f32.mrf.mxu1  ;;  %v7651_v11 = vadd.f32 %v2683_v44, %v2306_v58 }
 0x227   : > { %v2313_v34 = vadd.f32 %v2278_v8, %v7579_v29  ;;  %v5965_v19 = vpop.f32.mrf.mxu0 }
 0x228   : > { %v5930_v27 = vpop.f32.mrf.mxu1  ;;  %v2745_v28 = vadd.f32 %v5965_v19, %v2311_v5 }
 0x229   : > { %v2316_v17 = vadd.f32 %v5930_v27, %v7581_v9  ;;  %v2696_v51 = vpop.f32.mrf.mxu0 }
 0x22a   : > { %v2281_v61 = vpop.f32.mrf.mxu1  ;;  %v2743_v31 = vadd.f32 %v2696_v51, %v2309_v24 }
 0x22b   : > { %v2314_v22 = vadd.f32 %v2281_v61, %v7587_v33  ;;  %v5966_v63 = vpop.f32.mrf.mxu0 }
 0x22c   : > { %v5989_v53 = vpop.f32.mrf.mxu1  ;;  %v2746_v45 = vadd.f32 %v5966_v63, %v2312_v26 }
 0x22d   : > { %v7657_v21 = vadd.f32 %v5989_v53, %v7590_v48  ;;  %v2699_v54 = vpop.f32.mrf.mxu0 }
 0x22e   : > { %v2874_v4 = vpop.f32.mrf.mxu1  ;;  %v2744_v6 = vadd.f32 %v2699_v54, %v2310_v2 }
 0x22f   : > { %v7660_v29 = vadd.f32 %v2874_v4, %v7593_v40  ;;  %v5969_v62 = vpop.f32.mrf.mxu0 }
 0x230   : > { %v5990_v41 = vpop.f32.mrf.mxu1  ;;  %v2749_v9 = vadd.f32 %v5969_v62, %v2315_v35 }
 0x231   : > { %v7663_v39 = vadd.f32 %v5990_v41, %v7599_v50  ;;  %v2712_v20 = vpop.f32.mrf.mxu0 }
 0x232   : > { %v2877_v33 = vpop.f32.mrf.mxu1  ;;  %v2747_v32 = vadd.f32 %v2712_v20, %v2313_v34 }
 0x233   : > { %v7666_v15 = vadd.f32 %v2877_v33, %v7602_v12  ;;  %v5970_v48 = vpop.f32.mrf.mxu0 }
 0x234   : > { %v5993_v36 = vpop.f32.mrf.mxu1  ;;  %v2750_v38 = vadd.f32 %v5970_v48, %v2316_v17 }
 0x235   : > { %v7669_v7 = vadd.f32 %v5993_v36, %v7607_v13  ;;  %v2715_v40 = vpop.f32.mrf.mxu0 }
 0x236   : > { %v2890_v49 = vpop.f32.mrf.mxu1  ;;  %v2748_v58 = vadd.f32 %v2715_v40, %v2314_v22 }
 0x237   : > { %v7672_v42 = vadd.f32 %v2890_v49, %v7613_v3  ;;  %v7674_v50 = vpop.f32.mrf.mxu0 }
 0x238   : > { %v5994_v59 = vpop.f32.mrf.mxu1 }
 0x239   : > { %v7677_v5 = vadd.f32 %v5994_v59, %v7615_v1  ;;  %v7679_v12 = vpop.f32.mrf.mxu0 }
 0x23a   : > { %v2893_v23 = vpop.f32.mrf.mxu1 }
 0x23b   : > { %v7682_v60 = vadd.f32 %v2893_v23, %v7618_v18  ;;  %v7684_v13 = vpop.f32.mrf.mxu0 }
 0x23c   : > { %v5997_v0 = vpop.f32.mrf.mxu1 }
 0x23d   : > { %v7687_v24 = vadd.f32 %v5997_v0, %v7624_v16  ;;  %v7689_v3 = vpop.f32.mrf.mxu0 }
 0x23e   : > { %v2906_v57 = vpop.f32.mrf.mxu1 }
 0x23f   : > { %v7692_v56 = vadd.f32 %v2906_v57, %v7630_v46  ;;  %v7694_v1 = vpop.f32.mrf.mxu0 }
 0x240   : > { %v5998_v26 = vpop.f32.mrf.mxu1 }
 0x241   : > { %v7697_v52 = vadd.f32 %v5998_v26, %v7633_v14  ;;  %v7699_v18 = vpop.f32.mrf.mxu0 }
 0x242   : > { %v2909_v25 = vpop.f32.mrf.mxu1 }
 0x243   : > { %v7702_v2 = vadd.f32 %v2909_v25, %v7639_v30  ;;  %v7704_v16 = vpop.f32.mrf.mxu0 }
 0x244   : > { %v6001_v47 = vpop.f32.mrf.mxu1 }
 0x245   : > { %v7707_v37 = vadd.f32 %v6001_v47, %v7642_v10  ;;  %v7709_v46 = vpop.f32.mrf.mxu0 }
 0x246   : > { %v2922_v35 = vpop.f32.mrf.mxu1 }
 0x247   : > { %v7712_v44 = vadd.f32 %v2922_v35, %v7645_v43  ;;  %v7714_v14 = vpop.f32.mrf.mxu0 }
 0x248   : > { %v6002_v8 = vpop.f32.mrf.mxu1 }
 0x249   : > { %v7717_v34 = vadd.f32 %v6002_v8, %v7648_v55  ;;  %v7719_v30 = vpop.f32.mrf.mxu0 }
 0x24a   : > { %v2925_v19 = vpop.f32.mrf.mxu1 }
 0x24b   : > { %8044 = vst [vmem:[#allocation3_spill] sm:$0xff] %v7717_v34  ;;  %v7722_v27 = vadd.f32 %v2925_v19, %v7651_v11  ;;  %v7724_v10 = vpop.f32.mrf.mxu0 }
 0x24c   : > { %v6005_v17 = vpop.f32.mrf.mxu1 }
 0x24d   : > { %8045 = vst [vmem:[#allocation4_spill] sm:$0xff] %v7722_v27  ;;  %v7726_v51 = vadd.f32 %v6005_v17, %v2745_v28  ;;  %v7728_v61 = vpop.f32.mrf.mxu0 }
 0x24e   : > { %v2938_v43 = vpop.f32.mrf.mxu1 }
 0x24f   : > { %8046 = vst [vmem:[#allocation5_spill] sm:$0xff] %v7726_v51  ;;  %v7730_v22 = vadd.f32 %v2938_v43, %v2743_v31  ;;  %v7732_v63 = vpop.f32.mrf.mxu0 }
 0x250   : > { %v6006_v55 = vpop.f32.mrf.mxu1 }
 0x251   : > { %8047 = vst [vmem:[#allocation6_spill] sm:$0xff] %v7730_v22  ;;  %v7734_v53 = vadd.f32 %v6006_v55, %v2746_v45  ;;  %v7736_v54 = vpop.f32.mrf.mxu0 }
 0x252   : > { %v2941_v4 = vpop.f32.mrf.mxu1 }
 0x253   : > { %8048 = vst [vmem:[#allocation7_spill] sm:$0xff] %v7734_v53  ;;  %v7738_v11 = vadd.f32 %v2941_v4, %v2744_v6  ;;  %v7740_v62 = vpop.f32.mrf.mxu0 }
 0x254   : > { %8050 = vst [vmem:[#allocation9_spill] sm:$0xff] %v7740_v62  ;;  %v6009_v41 = vpop.f32.mrf.mxu1 }
 0x255   : > { %8049 = vst [vmem:[#allocation8_spill] sm:$0xff] %v7738_v11  ;;  %v7742_v28 = vadd.f32 %v6009_v41, %v2749_v9  ;;  %v7744_v20 = vpop.f32.mrf.mxu0 }
 0x256   : > { %8052 = vst [vmem:[#allocation11_spill] sm:$0xff] %v7744_v20  ;;  %v2954_v33 = vpop.f32.mrf.mxu1 }
 0x257   : > { %8051 = vst [vmem:[#allocation10_spill] sm:$0xff] %v7742_v28  ;;  %v7746_v31 = vadd.f32 %v2954_v33, %v2747_v32  ;;  %v7748_v48 = vpop.f32.mrf.mxu0 }
 0x258   : > { %8054 = vst [vmem:[#allocation13_spill] sm:$0xff] %v7748_v48  ;;  %v6010_v36 = vpop.f32.mrf.mxu1 }
 0x259   : > { %8053 = vst [vmem:[#allocation12_spill] sm:$0xff] %v7746_v31  ;;  %v7750_v45 = vadd.f32 %v6010_v36, %v2750_v38  ;;  %v7752_v40 = vpop.f32.mrf.mxu0 }
 0x25a   : > { %8056 = vst [vmem:[#allocation15_spill] sm:$0xff] %v7752_v40  ;;  %v2957_v49 = vpop.f32.mrf.mxu1 }
 0x25b   : > { %8055 = vst [vmem:[#allocation14_spill] sm:$0xff] %v7750_v45  ;;  %v7754_v6 = vadd.f32 %v2957_v49, %v2748_v58  ;;  %v7756_v59 = vpop.f32.mrf.mxu0 }
 0x25c   : > { %8058 = vst [vmem:[#allocation17_spill] sm:$0xff] %v7756_v59  ;;  %v6069_v23 = vpop.f32.mrf.mxu1 }
 0x25d   : > { %8057 = vst [vmem:[#allocation16_spill] sm:$0xff] %v7754_v6  ;;  %v7758_v9 = vpop.f32.mrf.mxu0 }
 0x25e   : > { %8059 = vst [vmem:[#allocation18_spill] sm:$0xff] %v7758_v9  ;;  %v3726_v0 = vpop.f32.mrf.mxu1 }
 0x25f   : > { %v7760_v57 = vpop.f32.mrf.mxu0 }
 0x260   : > { %8060 = vst [vmem:[#allocation19_spill] sm:$0xff] %v7760_v57  ;;  %v6070_v32 = vpop.f32.mrf.mxu1 }
 0x261   : > { %v7762_v26 = vpop.f32.mrf.mxu0 }
 0x262   : > { %8061 = vst [vmem:[#allocation20_spill] sm:$0xff] %v7762_v26  ;;  %v3729_v25 = vpop.f32.mrf.mxu1 }
 0x263   : > { %v7764_v47 = vpop.f32.mrf.mxu0 }
 0x264   : > { %8062 = vst [vmem:[#allocation21_spill] sm:$0xff] %v7764_v47  ;;  %v6073_v38 = vpop.f32.mrf.mxu1 }
 0x265   : > { %v7766_v35 = vpop.f32.mrf.mxu0 }
 0x266   : > { %8063 = vst [vmem:[#allocation22_spill] sm:$0xff] %v7766_v35  ;;  %v7768_v8 = vpop.f32.mrf.mxu1 }
 0x267   : > { %v6109_v58 = vpop.f32.mrf.mxu0 }
 0x268   : > { %v7770_v19 = vpop.f32.mrf.mxu1 }
 0x269   : > { %v3968_v17 = vpop.f32.mrf.mxu0 }
 0x26a   : > { %v7772_v43 = vpop.f32.mrf.mxu1 }
 0x26b   : > { %v6110_v55 = vpop.f32.mrf.mxu0 }
 0x26c   : > { %v7774_v4 = vpop.f32.mrf.mxu1 }
 0x26d   : > { %v3971_v41 = vpop.f32.mrf.mxu0 }
 0x26e   : > { %v7776_v33 = vpop.f32.mrf.mxu1 }
 0x26f   : > { %v6113_v36 = vpop.f32.mrf.mxu0 }
 0x270   : > { %v7778_v49 = vpop.f32.mrf.mxu1 }
 0x271   : > { %v3984_v6 = vpop.f32.mrf.mxu0 }
 0x272   : > { %v7780_v47 = vpop.f32.mrf.mxu1 }
 0x273   : > { %v7782_v35 = vpop.f32.mrf.mxu0 }
 0x274   : > { %v7784_v45 = vpop.f32.mrf.mxu1 }
 0x275   : > { %v7786_v26 = vpop.f32.mrf.mxu0 }
 0x276   : > { %v7788_v31 = vpop.f32.mrf.mxu1 }
 0x277   : > { %8064 = vst [vmem:[#allocation23_spill] sm:$0xff] %v7788_v31  ;;  %v7792_v28 = vpop.f32.mrf.mxu0 }
 0x278   : > { %v7790_v57 = vpop.f32.mrf.mxu1 }
 0x279   : > { %8065 = vst [vmem:[#allocation24_spill] sm:$0xff] %v7790_v57  ;;  %v7798_v59 = vpop.f32.mrf.mxu0 }
 0x27a   : > { %v7794_v9 = vpop.f32.mrf.mxu1 }
 0x27b   : > { %8066 = vst [vmem:[#allocation25_spill] sm:$0xff] %v7794_v9  ;;  %v7804_v22 = vpop.f32.mrf.mxu0  ;;  %v3389_v9 = vadd.f32 %v7674_v50, %v7657_v21 }
 0x27c   : > { %v7796_v11 = vpop.f32.mrf.mxu1 }
 0x27d   : > { %8067 = vst [vmem:[#allocation26_spill] sm:$0xff] %v7796_v11  ;;  %v7810_v20 = vpop.f32.mrf.mxu0  ;;  %v3823_v27 = vadd.f32 %v6069_v23, %v3389_v9 }
 0x27e   : > { %v7800_v53 = vpop.f32.mrf.mxu1  ;;  %8072 = vst [vmem:[#allocation31_spill] sm:$0xff] %v7810_v20 }
 0x27f   : > { %8068 = vst [vmem:[#allocation27_spill] sm:$0xff] %v7800_v53  ;;  %v3387_v53 = vadd.f32 %v7679_v12, %v7660_v29  ;;  %v4065_v62 = vadd.f32 %v6109_v58, %v3823_v27  ;;  %v7833_v29 = vld [vmem:[%s8040_s7] ss:$0 sm:$0xff] }
 0x280   : > { %v7802_v40 = vpop.f32.mrf.mxu1 }
 0x281   : > { %8069 = vst [vmem:[#allocation28_spill] sm:$0xff] %v7802_v40  ;;  %v7820_v40 = vpop.f32.mrf.mxu0 }
 0x282   : > { %v7806_v48 = vpop.f32.mrf.mxu1 }
 0x283   : > { %8070 = vst [vmem:[#allocation29_spill] sm:$0xff] %v7806_v48  ;;  %v3821_v48 = vadd.f32 %v3726_v0, %v3387_v53  ;;  %v7828_v20 = vpop.f32.mrf.mxu0 }
 0x284   : > { %v7808_v51 = vpop.f32.mrf.mxu1 }
 0x285   : > { %8071 = vst [vmem:[#allocation30_spill] sm:$0xff] %v7808_v51  ;;  %v3390_v51 = vadd.f32 %v7684_v13, %v7663_v39  ;;  %v4063_v50 = vadd.f32 %v3968_v17, %v3821_v48  ;;  %v3393_v39 = vadd.f32 %v7694_v1, %v7669_v7  ;;  %v7842_v48 = vpop.f32.mrf.mxu0  ;;  %v3397_v17 = vadd.f32 %v7714_v14, %v7687_v24 }
 0x286   : > { %v7812_v57 = vpop.f32.mrf.mxu1 }
 0x287   : > { %8073 = vst [vmem:[#allocation32_spill] sm:$0xff] %v7812_v57  ;;  %v3388_v57 = vadd.f32 %v7689_v3, %v7666_v15  ;;  %v3824_v21 = vadd.f32 %v6070_v32, %v3390_v51  ;;  %v3827_v9 = vadd.f32 %v6073_v38, %v3393_v39  ;;  %v3391_v51 = vadd.f32 %v7699_v18, %v7672_v42 }
 0x288   : > { %v7816_v11 = vpop.f32.mrf.mxu1 }
 0x289   : > { %8074 = vst [vmem:[#allocation33_spill] sm:$0xff] %v7816_v11  ;;  %v3822_v13 = vadd.f32 %v3729_v25, %v3388_v57  ;;  %v4066_v27 = vadd.f32 %v6110_v55, %v3824_v21  ;;  %v4069_v32 = vadd.f32 %v6113_v36, %v3827_v9  ;;  %v3392_v25 = vadd.f32 %v7709_v46, %v7682_v60  ;;  %v7854_v36 = vpop.f32.mrf.mxu0 }
 0x28a   : > { %v7822_v31 = vpop.f32.mrf.mxu1 }
 0x28b   : > { %v4064_v15 = vadd.f32 %v3971_v41, %v3822_v13  ;;  %v3826_v55 = vadd.f32 %v7772_v43, %v3392_v25 }
 0x28c   : > { %v6149_v34 = vpop.f32.mrf.mxu1 }
 0x28d   : > { %v4483_v11 = vadd.f32 %v6149_v34, %v4065_v62  ;;  %v3394_v62 = vadd.f32 %v7704_v16, %v7677_v5  ;;  %v4068_v24 = vadd.f32 %v7786_v26, %v3826_v55  ;;  %v3396_v26 = vadd.f32 %v7728_v61, %v7702_v2 }
 0x28e   : > { %v4386_v12 = vpop.f32.mrf.mxu1 }
 0x28f   : > { %v4481_v53 = vadd.f32 %v4386_v12, %v4063_v50  ;;  %v4514_v3 = vadd.f32 %v7833_v29, %v4483_v11  ;;  %v3825_v11 = vadd.f32 %v7768_v8, %v3391_v51  ;;  %v3828_v38 = vadd.f32 %v7770_v19, %v3394_v62 }
 0x290   : > { %v6150_v23 = vpop.f32.mrf.mxu1  ;;  %v3395_v50 = vadd.f32 %v7719_v30, %v7692_v56  ;;  %v3831_v12 = vadd.f32 %v7774_v4, %v3397_v17  ;;  %v3401_v51 = vadd.f32 %v7732_v63, %v7707_v37  ;;  %v3830_v62 = vadd.f32 %v7780_v47, %v3396_v26  ;;  %v8085_v26 = vld [vmem:[#allocation6_spill] sm:$0xff] }
 0x291   : > { %v4484_v34 = vadd.f32 %v6150_v23, %v4066_v27  ;;  %v4512_v7 = vadd.f32 %v7833_v29, %v4481_v53  ;;  %v4538_v18 = vmax.f32 %v4514_v3, 0.0  ;;  %v4067_v41 = vadd.f32 %v3984_v6, %v3825_v11  ;;  %v7865_v53 = vpop.f32.mrf.mxu0  ;;  %v8075_v11 = vld [vmem:[#allocation31_spill] sm:$0xff] }
 0x292   : > { %v4389_v0 = vpop.f32.mrf.mxu1  ;;  %v4070_v60 = vadd.f32 %v7782_v35, %v3828_v38  ;;  %v3398_v27 = vadd.f32 %v7724_v10, %v7697_v52  ;;  %v3829_v35 = vadd.f32 %v7776_v33, %v3395_v50  ;;  %v4073_v56 = vadd.f32 %v7792_v28, %v3831_v12 }
 0x293   : > { %v4515_v1 = vadd.f32 %v7833_v29, %v4484_v34  ;;  %v4482_v57 = vadd.f32 %v4389_v0, %v4064_v15  ;;  %v4536_v46 = vmax.f32 %v4512_v7, 0.0  ;;  %v4072_v38 = vadd.f32 %v8075_v11, %v3830_v62 }
 0x294   : > { %v6153_v42 = vpop.f32.mrf.mxu1  ;;  %v3832_v15 = vadd.f32 %v7778_v49, %v3398_v27  ;;  %v4071_v52 = vadd.f32 %v7798_v59, %v3829_v35 }
 0x295   : > { %v4539_v58 = vmax.f32 %v4515_v1, 0.0  ;;  %v4513_v5 = vadd.f32 %v7833_v29, %v4482_v57  ;;  %v4487_v16 = vadd.f32 %v6153_v42, %v4069_v32  ;;  %v4032_v32 = vpop.f32.mrf.mxu0  ;;  %v3399_v1 = vadd.f32 %v7736_v54, %v7712_v44  ;;  %v8076_v42 = vld [vmem:[#allocation3_spill] sm:$0xff] }
 0x296   : > { %v4402_v21 = vpop.f32.mrf.mxu1  ;;  %v4074_v0 = vadd.f32 %v7804_v22, %v3832_v15  ;;  %v3835_v57 = vadd.f32 %v7784_v45, %v3401_v51  ;;  %v8077_v22 = vld [vmem:[#allocation9_spill] sm:$0xff]  ;;  %v8086_v15 = vld [vmem:[#allocation15_spill] sm:$0xff] }
 0x297   : > { %v4561_v8 = vpack.c.bf16 %v4539_v58, %v4538_v18  ;;  %v4537_v19 = vmax.f32 %v4513_v5, 0.0  ;;  %v4485_v39 = vadd.f32 %v4402_v21, %v4067_v41  ;;  %v4518_v14 = vadd.f32 %v7833_v29, %v4487_v16  ;;  %v8078_v58 = vld [vmem:[#allocation23_spill] sm:$0xff]  ;;  %v6126_v16 = vpop.f32.mrf.mxu0  ;;  %v8079_v41 = vld [vmem:[#allocation4_spill] sm:$0xff] }
 0x298   : > { %v6154_v13 = vpop.f32.mrf.mxu1  ;;  %v3402_v18 = vadd.f32 %v8077_v22, %v8076_v42  ;;  %v3833_v5 = vadd.f32 %v8078_v58, %v3399_v1  ;;  %v4077_v55 = vadd.f32 %v7820_v40, %v3835_v57  ;;  %v8080_v21 = vld [vmem:[#allocation11_spill] sm:$0xff] }
 0x299   : > { %v4488_v6 = vadd.f32 %v6154_v13, %v4070_v60  ;;  %v4560_v43 = vpack.c.bf16 %v4537_v19, %v4536_v46  ;;  %v4516_v30 = vadd.f32 %v7833_v29, %v4485_v39  ;;  %v4542_v33 = vmax.f32 %v4518_v14, 0.0  ;;  %v8081_v46 = vld [vmem:[#allocation24_spill] sm:$0xff]  ;;  %v8083_v14 = vld [vmem:[#allocation13_spill] sm:$0xff] }
 0x29a   : > { %v4405_v23 = vpop.f32.mrf.mxu1  ;;  %v3400_v60 = vadd.f32 %v8080_v21, %v8079_v41  ;;  %v4075_v19 = vadd.f32 %v7828_v20, %v3833_v5 }
 0x29b   : > { %v4519_v4 = vadd.f32 %v7833_v29, %v4488_v6  ;;  %v4486_v9 = vadd.f32 %v4405_v23, %v4068_v24  ;;  %6187 = vmatprep.mubr.bf16.mxu0 %v4560_v43  ;;  %v4540_v61 = vmax.f32 %v4516_v30, 0.0  ;;  %v8082_v24 = vld [vmem:[#allocation5_spill] sm:$0xff]  ;;  %v4035_v23 = vpop.f32.mrf.mxu0 }
 0x29c   : > { %v6157_v10 = vpop.f32.mrf.mxu1  ;;  %6188 = vmatmul.mubr.bf16.vlgmr.msra.gmra.mxu0 %v4561_v8  ;;  %v3836_v8 = vadd.f32 %v8081_v46, %v3402_v18  ;;  %v3405_v6 = vadd.f32 %v8083_v14, %v8082_v24  ;;  %v8084_v43 = vld [vmem:[#allocation25_spill] sm:$0xff] }
 0x29d   : > { %v4543_v3 = vmax.f32 %v4519_v4, 0.0  ;;  %v4517_v34 = vadd.f32 %v7833_v29, %v4486_v9  ;;  %v4491_v28 = vadd.f32 %v6157_v10, %v4073_v56  ;;  %v3834_v27 = vadd.f32 %v8084_v43, %v3400_v60  ;;  %v8087_v10 = vld [vmem:[#allocation26_spill] sm:$0xff] }
 0x29e   : > { %v4418_v2 = vpop.f32.mrf.mxu1  ;;  %v4078_v35 = vadd.f32 %v7842_v48, %v3836_v8  ;;  %v8089_v48 = vld [vmem:[#allocation17_spill] sm:$0xff] }
 0x29f   : > { %v4541_v49 = vmax.f32 %v4517_v34, 0.0  ;;  %v4489_v7 = vadd.f32 %v4418_v2, %v4071_v52  ;;  %v4563_v59 = vpack.c.bf16 %v4543_v3, %v4542_v33  ;;  %v4522_v37 = vadd.f32 %v7833_v29, %v4491_v28 }
 0x2a0   : > { %v6158_v25 = vpop.f32.mrf.mxu1  ;;  %v3403_v52 = vadd.f32 %v8086_v15, %v8085_v26  ;;  %v3839_v33 = vadd.f32 %v8087_v10, %v3405_v6  ;;  %v4076_v34 = vadd.f32 %v7854_v36, %v3834_v27  ;;  %v8091_v36 = vld [vmem:[#allocation8_spill] sm:$0xff] }
 0x2a1   : > { %v4492_v63 = vadd.f32 %v6158_v25, %v4074_v0  ;;  %v4562_v47 = vpack.c.bf16 %v4541_v49, %v4540_v61  ;;  %v4520_v44 = vadd.f32 %v7833_v29, %v4489_v7  ;;  %v4546_v12 = vmax.f32 %v4522_v37, 0.0  ;;  %v8088_v0 = vld [vmem:[#allocation7_spill] sm:$0xff]  ;;  %v6129_v7 = vpop.f32.mrf.mxu0 }
 0x2a2   : > { %v4421_v17 = vpop.f32.mrf.mxu1  ;;  %v3406_v2 = vadd.f32 %v8089_v48, %v8088_v0  ;;  %v8090_v61 = vld [vmem:[#allocation27_spill] sm:$0xff]  ;;  %v4081_v1 = vadd.f32 %v7865_v53, %v3839_v33  ;;  %v8094_v53 = vld [vmem:[#allocation10_spill] sm:$0xff]  ;;  %v8103_v33 = vld [vmem:[#allocation16_spill] sm:$0xff] }
 0x2a3   : > { %v4523_v54 = vadd.f32 %v7833_v29, %v4492_v63  ;;  %v4490_v45 = vadd.f32 %v4421_v17, %v4072_v38  ;;  %6191 = vmatprep.mubr.bf16.mxu0 %v4562_v47  ;;  %v4544_v30 = vmax.f32 %v4520_v44, 0.0  ;;  %v3837_v49 = vadd.f32 %v8090_v61, %v3403_v52  ;;  %v8092_v38 = vld [vmem:[#allocation18_spill] sm:$0xff]  ;;  %v8093_v63 = vld [vmem:[#allocation28_spill] sm:$0xff]  ;;  %v4048_v21 = vpop.f32.mrf.mxu0 }
 0x2a4   : > { %v6161_v50 = vpop.f32.mrf.mxu1  ;;  %6192 = vmatmul.mubr.bf16.gmra.mxu0 %v4563_v59  ;;  %v3404_v37 = vadd.f32 %v8092_v38, %v8091_v36  ;;  %v3840_v47 = vadd.f32 %v8093_v63, %v3406_v2 }
 0x2a5   : > { %v4547_v39 = vmax.f32 %v4523_v54, 0.0  ;;  %v4521_v13 = vadd.f32 %v7833_v29, %v4490_v45  ;;  %v4495_v40 = vadd.f32 %v6161_v50, %v4077_v55  ;;  %v4079_v42 = vadd.f32 %v4032_v32, %v3837_v49  ;;  %v8095_v55 = vld [vmem:[#allocation19_spill] sm:$0xff]  ;;  %v8096_v54 = vld [vmem:[#allocation29_spill] sm:$0xff]  ;;  %v8097_v32 = vld [vmem:[#allocation12_spill] sm:$0xff] }
 0x2a6   : > { %v4434_v56 = vpop.f32.mrf.mxu1  ;;  %v3409_v44 = vadd.f32 %v8095_v55, %v8094_v53  ;;  %v3838_v45 = vadd.f32 %v8096_v54, %v3404_v37  ;;  %v4082_v41 = vadd.f32 %v6126_v16, %v3840_v47 }
 0x2a7   : > { %v4565_v4 = vpack.c.bf16 %v4547_v39, %v4546_v12  ;;  %v4545_v9 = vmax.f32 %v4521_v13, 0.0  ;;  %v4493_v20 = vadd.f32 %v4434_v56, %v4075_v19  ;;  %v4526_v28 = vadd.f32 %v7833_v29, %v4495_v40  ;;  %v8098_v12 = vld [vmem:[#allocation20_spill] sm:$0xff]  ;;  %v8099_v13 = vld [vmem:[#allocation30_spill] sm:$0xff]  ;;  %v8101_v56 = vld [vmem:[#allocation21_spill] sm:$0xff] }
 0x2a8   : > { %v6162_v3 = vpop.f32.mrf.mxu1  ;;  %v3407_v39 = vadd.f32 %v8098_v12, %v8097_v32  ;;  %v3843_v40 = vadd.f32 %v8099_v13, %v3409_v44  ;;  %v4080_v14 = vadd.f32 %v4035_v23, %v3838_v45  ;;  %v8104_v23 = vld [vmem:[#allocation22_spill] sm:$0xff] }
 0x2a9   : > { %v4496_v51 = vadd.f32 %v6162_v3, %v4078_v35  ;;  %v4564_v62 = vpack.c.bf16 %v4545_v9, %v4544_v30  ;;  %v4524_v57 = vadd.f32 %v7833_v29, %v4493_v20  ;;  %v4550_v18 = vmax.f32 %v4526_v28, 0.0  ;;  %v8100_v35 = vld [vmem:[#allocation14_spill] sm:$0xff]  ;;  %v8102_v30 = vld [vmem:[#allocation32_spill] sm:$0xff]  ;;  %v6130_v9 = vpop.f32.mrf.mxu0 }
 0x2aa   : > { %v4437_v59 = vpop.f32.mrf.mxu1  ;;  %v3410_v16 = vadd.f32 %v8101_v56, %v8100_v35  ;;  %v4085_v26 = vadd.f32 %v6129_v7, %v3843_v40  ;;  %v3408_v3 = vadd.f32 %v8104_v23, %v8103_v33  ;;  %v4775_v12 = vld [vmem:[%s6642_s23 + $0x18] sm:$0xff]  ;;  %v4778_v56 = vld [vmem:[%s6642_s23 + $0x30] sm:$0xff] }
 0x2ab   : > { %v4527_v25 = vadd.f32 %v7833_v29, %v4496_v51  ;;  %v4494_v11 = vadd.f32 %v4437_v59, %v4076_v34  ;;  %6195 = vmatprep.mubr.bf16.mxu0 %v4564_v62  ;;  %v4548_v46 = vmax.f32 %v4524_v57, 0.0  ;;  %v8105_v34 = vld [vmem:[#allocation33_spill] sm:$0xff]  ;;  %v4051_v59 = vpop.f32.mrf.mxu0  ;;  %v4779_v33 = vld [vmem:[%s6642_s23 + $0x38] sm:$0xff] }
 0x2ac   : > { %v6165_v22 = vpop.f32.mrf.mxu1  ;;  %6196 = vmatmul.mubr.bf16.gmra.mxu0 %v4565_v4  ;;  %v3841_v4 = vadd.f32 %v8102_v30, %v3407_v39  ;;  %v3844_v28 = vadd.f32 %v8105_v34, %v3410_v16  ;;  %v3842_v49 = vadd.f32 %v7822_v31, %v3408_v3 }
 0x2ad   : > { %v4551_v58 = vmax.f32 %v4527_v25, 0.0  ;;  %v4525_v5 = vadd.f32 %v7833_v29, %v4494_v11  ;;  %v4499_v17 = vadd.f32 %v6165_v22, %v4081_v1 }
 0x2ae   : > { %v4450_v60 = vpop.f32.mrf.mxu1  ;;  %v4083_v51 = vadd.f32 %v4048_v21, %v3841_v4  ;;  %v4086_v7 = vadd.f32 %v6130_v9, %v3844_v28  ;;  %v4084_v37 = vadd.f32 %v4051_v59, %v3842_v49 }
 0x2af   : > { %v4567_v8 = vpack.c.bf16 %v4551_v58, %v4550_v18  ;;  %v4549_v19 = vmax.f32 %v4525_v5, 0.0  ;;  %v4497_v50 = vadd.f32 %v4450_v60, %v4079_v42  ;;  %v4530_v6 = vadd.f32 %v7833_v29, %v4499_v17  ;;  %v4774_v60 = vld [vmem:[%s6642_s23 + $0x10] sm:$0xff] }
 0x2b0   : > { %v6166_v24 = vpop.f32.mrf.mxu1 }
 0x2b1   : > { %v4500_v43 = vadd.f32 %v6166_v24, %v4082_v41  ;;  %v4566_v27 = vpack.c.bf16 %v4549_v19, %v4548_v46  ;;  %v4528_v15 = vadd.f32 %v7833_v29, %v4497_v50  ;;  %v4554_v0 = vmax.f32 %v4530_v6, 0.0  ;;  %v7938_v41 = vld [vmem:[%s8042_s9] ss:$0 sm:$0xff] }
 0x2b2   : > { %v4453_v20 = vpop.f32.mrf.mxu1  ;;  %v4772_v19 = vld [vmem:[%s6642_s23] sm:$0xff] }
 0x2b3   : > { %v4531_v52 = vadd.f32 %v7833_v29, %v4500_v43  ;;  %v4498_v10 = vadd.f32 %v4453_v20, %v4080_v14  ;;  %6199 = vmatprep.mubr.bf16.mxu0 %v4566_v27  ;;  %v4552_v57 = vmax.f32 %v4528_v15, 0.0  ;;  %v4773_v14 = vld [vmem:[%s6642_s23 + $0x8] sm:$0xff]  ;;  %v4776_v20 = vld [vmem:[%s6642_s23 + $0x20] sm:$0xff] }
 0x2b4   : > { %v6169_v62 = vpop.f32.mrf.mxu1  ;;  %6200 = vmatmul.mubr.bf16.gmra.mxu0 %v4567_v8 }
 0x2b5   : > { %v4555_v48 = vmax.f32 %v4531_v52, 0.0  ;;  %v4529_v2 = vadd.f32 %v7833_v29, %v4498_v10  ;;  %v4503_v61 = vadd.f32 %v6169_v62, %v4085_v26 }
 0x2b6   : > { %v4466_v1 = vpop.f32.mrf.mxu1 }
 0x2b7   : > { %v4569_v25 = vpack.c.bf16 %v4555_v48, %v4554_v0  ;;  %v4553_v11 = vmax.f32 %v4529_v2, 0.0  ;;  %v4501_v36 = vadd.f32 %v4466_v1, %v4083_v51  ;;  %v4534_v63 = vadd.f32 %v7833_v29, %v4503_v61  ;;  %v4777_v51 = vld [vmem:[%s6642_s23 + $0x28] sm:$0xff]  ;;  %v4782_v61 = vld [vmem:[%s6642_s23 + $0x50] sm:$0xff] }
 0x2b8   : > { %v6170_v38 = vpop.f32.mrf.mxu1 }
 0x2b9   : > { %v4504_v47 = vadd.f32 %v6170_v38, %v4086_v7  ;;  %v4568_v42 = vpack.c.bf16 %v4553_v11, %v4552_v57  ;;  %v4532_v18 = vadd.f32 %v7833_v29, %v4501_v36  ;;  %v4558_v5 = vmax.f32 %v4534_v63, 0.0  ;;  %v4780_v57 = vld [vmem:[%s6642_s23 + $0x40] sm:$0xff] }
 0x2ba   : > { %v4469_v22 = vpop.f32.mrf.mxu1 }
 0x2bb   : > { %v4535_v58 = vadd.f32 %v7833_v29, %v4504_v47  ;;  %v4502_v31 = vadd.f32 %v4469_v22, %v4084_v37  ;;  %6203 = vmatprep.mubr.bf16.mxu0 %v4568_v42  ;;  %v4556_v55 = vmax.f32 %v4532_v18, 0.0  ;;  %v4783_v37 = vld [vmem:[%s6642_s23 + $0x58] sm:$0xff]  ;;  %v4781_v18 = vld [vmem:[%s6642_s23 + $0x48] sm:$0xff] }
 0x2bc   : > { %6204 = vmatmul.mubr.bf16.gmra.mxu0 %v4569_v25 }
 0x2bd   : > { %v4559_v17 = vmax.f32 %v4535_v58, 0.0  ;;  %v4533_v53 = vadd.f32 %v7833_v29, %v4502_v31 }
 0x2bf   : > { %v4571_v44 = vpack.c.bf16 %v4559_v17, %v4558_v5  ;;  %v4557_v54 = vmax.f32 %v4533_v53, 0.0  ;;  %v4786_v53 = vld [vmem:[%s6642_s23 + $0x70] sm:$0xff] }
 0x2c1   : > { %v4570_v45 = vpack.c.bf16 %v4557_v54, %v4556_v55 }
 0x2c3   : > { %6207 = vmatprep.mubr.bf16.mxu1 %v4570_v45 }
 0x2c4   : > { %6208 = vmatmul.mubr.bf16.vlgmr.msra.gmra.mxu1 %v4571_v44 }
 0x35c   : > { %v6189_v21 = vpop.f32.mrf.mxu0 }
 0x35d   : > { %v4686_v46 = vadd.f32 %v6189_v21, %v7938_v41  ;;  %v4784_v21 = vld [vmem:[%s6642_s23 + $0x60] sm:$0xff] }
 0x35e   : > { %v4677_v8 = vpop.f32.mrf.mxu0 }
 0x35f   : > { %v4798_v29 = vadd.f32 %v4774_v60, %v4686_v46  ;;  %v4678_v50 = vadd.f32 %v7938_v41, %v4677_v8 }
 0x360   : > { %v6190_v32 = vpop.f32.mrf.mxu0 }
 0x361   : > { %v4822_v39 = vmax.f32 %v4798_v29, 0.0  ;;  %v4796_v13 = vadd.f32 %v4772_v19, %v4678_v50  ;;  %v4689_v40 = vadd.f32 %v6190_v32, %v7938_v41  ;;  %v4787_v29 = vld [vmem:[%s6642_s23 + $0x78] sm:$0xff] }
 0x362   : > { %v4680_v24 = vpop.f32.mrf.mxu0 }
 0x363   : > { %4846 = vst [vmem:[%s7948_s28 + $0x10] sm:$0xff] %v4822_v39  ;;  %v4820_v6 = vmax.f32 %v4796_v13, 0.0  ;;  %v4799_v43 = vadd.f32 %v4775_v12, %v4689_v40  ;;  %v4681_v27 = vadd.f32 %v7938_v41, %v4680_v24  ;;  %v4785_v13 = vld [vmem:[%s6642_s23 + $0x68] sm:$0xff] }
 0x364   : > { %v6193_v35 = vpop.f32.mrf.mxu0 }
 0x365   : > { %4844 = vst [vmem:[%s7948_s28] sm:$0xff] %v4820_v6  ;;  %v4823_v16 = vmax.f32 %v4799_v43, 0.0  ;;  %v4797_v30 = vadd.f32 %v4773_v14, %v4681_v27  ;;  %v4702_v4 = vadd.f32 %v6193_v35, %v7938_v41  ;;  %v4790_v43 = vld [vmem:[%s6642_s23 + $0x90] sm:$0xff] }
 0x366   : > { %v4693_v9 = vpop.f32.mrf.mxu0 }
 0x367   : > { %4847 = vst [vmem:[%s7948_s28 + $0x18] sm:$0xff] %v4823_v16  ;;  %v4821_v26 = vmax.f32 %v4797_v30, 0.0  ;;  %v4802_v15 = vadd.f32 %v4778_v56, %v4702_v4  ;;  %v4694_v52 = vadd.f32 %v7938_v41, %v4693_v9  ;;  %v4788_v30 = vld [vmem:[%s6642_s23 + $0x80] sm:$0xff] }
 0x368   : > { %v6194_v10 = vpop.f32.mrf.mxu0 }
 0x369   : > { %4845 = vst [vmem:[%s7948_s28 + $0x8] sm:$0xff] %v4821_v26  ;;  %v4826_v23 = vmax.f32 %v4802_v15, 0.0  ;;  %v4800_v3 = vadd.f32 %v4776_v20, %v4694_v52  ;;  %v4705_v34 = vadd.f32 %v6194_v10, %v7938_v41  ;;  %v4791_v15 = vld [vmem:[%s6642_s23 + $0x98] sm:$0xff] }
 0x36a   : > { %v4696_v28 = vpop.f32.mrf.mxu0 }
 0x36b   : > { %4850 = vst [vmem:[%s7948_s28 + $0x30] sm:$0xff] %v4826_v23  ;;  %v4824_v62 = vmax.f32 %v4800_v3, 0.0  ;;  %v4803_v0 = vadd.f32 %v4779_v33, %v4705_v34  ;;  %v4697_v48 = vadd.f32 %v7938_v41, %v4696_v28  ;;  %v4789_v3 = vld [vmem:[%s6642_s23 + $0x88] sm:$0xff] }
 0x36c   : > { %v6197_v2 = vpop.f32.mrf.mxu0 }
 0x36d   : > { %4848 = vst [vmem:[%s7948_s28 + $0x20] sm:$0xff] %v4824_v62  ;;  %v4827_v49 = vmax.f32 %v4803_v0, 0.0  ;;  %v4801_v7 = vadd.f32 %v4777_v51, %v4697_v48  ;;  %v4718_v59 = vadd.f32 %v6197_v2, %v7938_v41  ;;  %v4794_v0 = vld [vmem:[%s6642_s23 + $0xb0] sm:$0xff] }
 0x36e   : > { %v4709_v1 = vpop.f32.mrf.mxu0 }
 0x36f   : > { %4851 = vst [vmem:[%s7948_s28 + $0x38] sm:$0xff] %v4827_v49  ;;  %v4825_v25 = vmax.f32 %v4801_v7, 0.0  ;;  %v4806_v11 = vadd.f32 %v4782_v61, %v4718_v59  ;;  %v4710_v36 = vadd.f32 %v7938_v41, %v4709_v1  ;;  %v4792_v7 = vld [vmem:[%s6642_s23 + $0xa0] sm:$0xff] }
 0x370   : > { %v6198_v38 = vpop.f32.mrf.mxu0 }
 0x371   : > { %4849 = vst [vmem:[%s7948_s28 + $0x28] sm:$0xff] %v4825_v25  ;;  %v4830_v63 = vmax.f32 %v4806_v11, 0.0  ;;  %v4804_v47 = vadd.f32 %v4780_v57, %v4710_v36  ;;  %v4721_v42 = vadd.f32 %v6198_v38, %v7938_v41  ;;  %v4795_v11 = vld [vmem:[%s6642_s23 + $0xb8] sm:$0xff] }
 0x372   : > { %v4712_v22 = vpop.f32.mrf.mxu0 }
 0x373   : > { %4854 = vst [vmem:[%s7948_s28 + $0x50] sm:$0xff] %v4830_v63  ;;  %v4828_v58 = vmax.f32 %v4804_v47, 0.0  ;;  %v4807_v31 = vadd.f32 %v4783_v37, %v4721_v42  ;;  %v4713_v5 = vadd.f32 %v7938_v41, %v4712_v22  ;;  %v4793_v47 = vld [vmem:[%s6642_s23 + $0xa8] sm:$0xff] }
 0x374   : > { %v6201_v17 = vpop.f32.mrf.mxu0 }
 0x375   : > { %4852 = vst [vmem:[%s7948_s28 + $0x40] sm:$0xff] %v4828_v58  ;;  %v4831_v55 = vmax.f32 %v4807_v31, 0.0  ;;  %v4805_v44 = vadd.f32 %v4781_v18, %v4713_v5  ;;  %v4734_v54 = vadd.f32 %v6201_v17, %v7938_v41 }
 0x376   : > { %v4725_v45 = vpop.f32.mrf.mxu0 }
 0x377   : > { %4855 = vst [vmem:[%s7948_s28 + $0x58] sm:$0xff] %v4831_v55  ;;  %v4829_v60 = vmax.f32 %v4805_v44, 0.0  ;;  %v4810_v46 = vadd.f32 %v4786_v53, %v4734_v54  ;;  %v4726_v8 = vadd.f32 %v7938_v41, %v4725_v45 }
 0x378   : > { %v6202_v19 = vpop.f32.mrf.mxu0 }
 0x379   : > { %4853 = vst [vmem:[%s7948_s28 + $0x48] sm:$0xff] %v4829_v60  ;;  %v4834_v50 = vmax.f32 %v4810_v46, 0.0  ;;  %v4808_v32 = vadd.f32 %v4784_v21, %v4726_v8  ;;  %v4737_v12 = vadd.f32 %v6202_v19, %v7938_v41 }
 0x37a   : > { %v4728_v39 = vpop.f32.mrf.mxu0 }
 0x37b   : > { %4858 = vst [vmem:[%s7948_s28 + $0x70] sm:$0xff] %v4834_v50  ;;  %v4832_v40 = vmax.f32 %v4808_v32, 0.0  ;;  %v4811_v24 = vadd.f32 %v4787_v29, %v4737_v12  ;;  %v4729_v14 = vadd.f32 %v7938_v41, %v4728_v39 }
 0x37c   : > { %v6205_v6 = vpop.f32.mrf.mxu0 }
 0x37d   : > { %4856 = vst [vmem:[%s7948_s28 + $0x60] sm:$0xff] %v4832_v40  ;;  %v4835_v27 = vmax.f32 %v4811_v24, 0.0  ;;  %v4809_v35 = vadd.f32 %v4785_v13, %v4729_v14  ;;  %v4750_v56 = vadd.f32 %v6205_v6, %v7938_v41 }
 0x37e   : > { %v4741_v16 = vpop.f32.mrf.mxu0 }
 0x37f   : > { %4859 = vst [vmem:[%s7948_s28 + $0x78] sm:$0xff] %v4835_v27  ;;  %v4833_v4 = vmax.f32 %v4809_v35, 0.0  ;;  %v4814_v9 = vadd.f32 %v4790_v43, %v4750_v56  ;;  %v4742_v20 = vadd.f32 %v7938_v41, %v4741_v16 }
 0x380   : > { %v6206_v26 = vpop.f32.mrf.mxu0 }
 0x381   : > { %4857 = vst [vmem:[%s7948_s28 + $0x68] sm:$0xff] %v4833_v4  ;;  %v4838_v52 = vmax.f32 %v4814_v9, 0.0  ;;  %v4812_v10 = vadd.f32 %v4788_v30, %v4742_v20  ;;  %v4753_v33 = vadd.f32 %v6206_v26, %v7938_v41 }
 0x382   : > { %v4744_v23 = vpop.f32.mrf.mxu0 }
 0x383   : > { %4862 = vst [vmem:[%s7948_s28 + $0x90] sm:$0xff] %v4838_v52  ;;  %v4836_v34 = vmax.f32 %v4812_v10, 0.0  ;;  %v4815_v28 = vadd.f32 %v4791_v15, %v4753_v33  ;;  %v4745_v51 = vadd.f32 %v7938_v41, %v4744_v23 }
 0x384   : > { %v6209_v62 = vpop.f32.mrf.mxu1 }
 0x385   : > { %4860 = vst [vmem:[%s7948_s28 + $0x80] sm:$0xff] %v4836_v34  ;;  %v4839_v48 = vmax.f32 %v4815_v28, 0.0  ;;  %v4813_v2 = vadd.f32 %v4789_v3, %v4745_v51  ;;  %v4766_v61 = vadd.f32 %v6209_v62, %v7938_v41 }
 0x386   : > { %v4757_v49 = vpop.f32.mrf.mxu1 }
 0x387   : > { %4863 = vst [vmem:[%s7948_s28 + $0x98] sm:$0xff] %v4839_v48  ;;  %v4837_v59 = vmax.f32 %v4813_v2, 0.0  ;;  %v4818_v1 = vadd.f32 %v4794_v0, %v4766_v61  ;;  %v4758_v57 = vadd.f32 %v7938_v41, %v4757_v49 }
 0x388   : > { %v6210_v25 = vpop.f32.mrf.mxu1 }
 0x389   : > { %4861 = vst [vmem:[%s7948_s28 + $0x88] sm:$0xff] %v4837_v59  ;;  %v4842_v36 = vmax.f32 %v4818_v1, 0.0  ;;  %v4816_v38 = vadd.f32 %v4792_v7, %v4758_v57  ;;  %v4769_v37 = vadd.f32 %v6210_v25, %v7938_v41 }
 0x38a   : > { %v4760_v63 = vpop.f32.mrf.mxu1 }
 0x38b   : > { %4866 = vst [vmem:[%s7948_s28 + $0xb0] sm:$0xff] %v4842_v36  ;;  %v4840_v42 = vmax.f32 %v4816_v38, 0.0  ;;  %v4819_v22 = vadd.f32 %v4795_v11, %v4769_v37  ;;  %v4761_v18 = vadd.f32 %v7938_v41, %v4760_v63 }
 0x38d   : > { %4864 = vst [vmem:[%s7948_s28 + $0xa0] sm:$0xff] %v4840_v42  ;;  %v4843_v58 = vmax.f32 %v4819_v22, 0.0  ;;  %v4817_v31 = vadd.f32 %v4793_v47, %v4761_v18 }
 0x38f   : > { %4867 = vst [vmem:[%s7948_s28 + $0xb8] sm:$0xff] %v4843_v58  ;;  %v4841_v5 = vmax.f32 %v4817_v31, 0.0 }
 0x391   : > { %4865 = vst [vmem:[%s7948_s28 + $0xa8] sm:$0xff] %v4841_v5 }
 0x392 PF: > { %s20_s17 = sadd.s32 1, %s6511_s17   ;;  %s8106_s13 = smov %s6503_s15 }
 0x393   : > { %p17_p13 = scmp.ge.s32.totalorder %s20_s17, 6   ;;  %s8107_s14 = smov %s6507_s16 }
 0x394   : > { %s8108_s15 = smov %s8111_s18  ;;  %s8109_s16 = smov %s8115_s19 }
 0x395   :  { %19 = sbr.rel (!%p17_p13) target bundleno = 3 (0x3), region = 104 }

</bundles_post_ra>
